<compile_context>
chip_gen: v6e
topology: v6e:2x2x1
jax: 0.10.0
libtpu: 0.0.40
codegen_flags: <defaults>
</compile_context>

<pallas_src>
import functools

import numpy as np
import jax
import jax.numpy as jnp
from jax.experimental import pallas as pl
from jax.experimental.pallas import tpu as pltpu


_TILE_R = 1024                # row tile for edge/triplet domains (multiple of 16)
_TILE_NODE = 256              # row tile for the node domain
_MXU_DTYPE = jnp.bfloat16     # MXU operand dtype (accumulate in f32)
_ACT_DTYPE = jnp.bfloat16     # inter-kernel activation storage dtype
_VMEM_LIMIT = 32 * 1024 * 1024


def _swish(x):
    return x * jax.nn.sigmoid(x)


def _dot(a, w):
    """MXU matmul with bf16 operands and f32 accumulation (w is pre-cast bf16)."""
    return jnp.dot(a.astype(_MXU_DTYPE), w.astype(_MXU_DTYPE),
                   preferred_element_type=jnp.float32)


def _round_up(n, m):
    return ((n + m - 1) // m) * m


def _domain(rows, pk, max_tile):
    """Padded row count / packed row count / tile for one row-domain (edges/triplets/nodes)."""
    rows_pk = max(1, -(-rows // pk))
    tile = min(max_tile, _round_up(rows_pk, 16))
    rows_pk = _round_up(rows_pk, tile)
    return rows_pk * pk, rows_pk, tile


def _pad_pack(x, rows_padded, pk, dtype=_ACT_DTYPE):
    """[rows, C] -> zero-pad rows -> packed [rows_padded/pk, pk*C] in `dtype`."""
    r, c = x.shape
    if rows_padded != r:
        x = jnp.pad(x, ((0, rows_padded - r), (0, 0)))
    return x.reshape(rows_padded // pk, pk * c).astype(dtype)


def _unpack(x, pk, cols):
    return x.reshape(x.shape[0] * pk, cols)


def _pad_idx(idx, rows_padded):
    return jnp.pad(idx, (0, rows_padded - idx.shape[0]))


# ----------------------------------------------------------------------------------------
# Generic fused row-tiled Pallas launcher (inputs are pre-padded & lane-packed).
#   body(row_vals, const_vals) -> tuple of [tile_r, out_cols[k]] arrays
# ----------------------------------------------------------------------------------------
def _pallas_row_op(body, row_ins, const_ins, out_cols, tile_r, out_dtype=_ACT_DTYPE):
    rows_pk = row_ins[0].shape[0]
    assert rows_pk % tile_r == 0
    grid = (rows_pk // tile_r,)

    n_row, n_const, n_out = len(row_ins), len(const_ins), len(out_cols)

    def kernel(*refs):
        in_refs, out_refs = refs[:n_row + n_const], refs[n_row + n_const:]
        row_vals = [in_refs[k][...] for k in range(n_row)]
        const_vals = [in_refs[n_row + k][...] for k in range(n_const)]
        outs = body(row_vals, const_vals)
        for r, o in zip(out_refs, outs):
            r[...] = o.astype(r.dtype)

    in_specs = ([pl.BlockSpec((tile_r, x.shape[1]), lambda i: (i, 0)) for x in row_ins]
                + [pl.BlockSpec(c.shape, lambda i: (0, 0)) for c in const_ins])
    out_specs = [pl.BlockSpec((tile_r, oc), lambda i: (i, 0)) for oc in out_cols]
    out_shape = [jax.ShapeDtypeStruct((rows_pk, oc), out_dtype) for oc in out_cols]

    call = pl.pallas_call(
        kernel,
        grid=grid,
        in_specs=in_specs,
        out_specs=out_specs if n_out > 1 else out_specs[0],
        out_shape=out_shape if n_out > 1 else out_shape[0],
        compiler_params=pltpu.CompilerParams(
            dimension_semantics=("parallel",),
            vmem_limit_bytes=_VMEM_LIMIT),
    )
    outs = call(*row_ins, *const_ins)
    if n_out == 1:
        outs = (outs,)
    return outs


# ----------------------------------------------------------------------------------------
# Basis functions (plain-JAX glue, matches torch_geometric DimeNet basis layers)
# ----------------------------------------------------------------------------------------
def envelope(x, exponent):
    p = exponent + 1
    a = -(p + 1) * (p + 2) / 2.0
    b = p * (p + 2)
    c = -p * (p + 1) / 2.0
    xp0 = x ** (p - 1)
    xp1 = xp0 * x
    xp2 = xp1 * x
    return (1.0 / x + a * xp0 + b * xp1 + c * xp2) * (x < 1.0).astype(x.dtype)


def bessel_rbf(dist, num_radial, cutoff, exponent):
    d = (dist / cutoff)[:, None]                                        # [E, 1]
    freq = jnp.arange(1, num_radial + 1, dtype=jnp.float32) * jnp.pi    # n * pi
    return envelope(d, exponent) * jnp.sin(freq * d)                    # [E, R]


def _jn_np(l, x):
    """Spherical Bessel j_l (float64 numpy, upward recurrence)."""
    x = np.asarray(x, dtype=np.float64)
    j_prev = np.sin(x) / x
    if l == 0:
        return j_prev
    j_cur = np.sin(x) / x ** 2 - np.cos(x) / x
    for ll in range(1, l):
        j_prev, j_cur = j_cur, (2 * ll + 1) / x * j_cur - j_prev
    return j_cur


def _spherical_bessel_zeros(num_l, num_n):
    """First num_n positive zeros of j_l, l = 0..num_l-1 (host-side bisection)."""
    zeros = np.zeros((num_l, num_n), dtype=np.float64)
    xs = np.linspace(0.5, 50.0, 50001)
    for l in range(num_l):
        y = _jn_np(l, xs)
        cross = np.where(np.sign(y[:-1]) * np.sign(y[1:]) < 0)[0]
        roots = []
        for c in cross[:num_n]:
            lo, hi = xs[c], xs[c + 1]
            flo = _jn_np(l, lo)
            for _ in range(60):
                mid = 0.5 * (lo + hi)
                if flo * _jn_np(l, mid) <= 0:
                    hi = mid
                else:
                    lo, flo = mid, _jn_np(l, mid)
            roots.append(0.5 * (lo + hi))
        zeros[l] = roots
    return zeros


def _jl_jax(l, x):
    """Spherical Bessel j_l at x (JAX, x > 0)."""
    j0 = jnp.sin(x) / x
    if l == 0:
        return j0
    j1 = jnp.sin(x) / x ** 2 - jnp.cos(x) / x
    if l == 1:
        return j1
    jm1, jcur = j0, j1
    for ll in range(1, l):
        jm1, jcur = jcur, (2 * ll + 1) / x * jcur - jm1
    return jcur


def spherical_sbf(dist, angle, idx_kj, num_spherical, num_radial, cutoff, exponent,
                  zeros, norms):
    d = dist / cutoff                                   # [E]
    env = envelope(d, exponent)                         # [E]
    rad = []
    for l in range(num_spherical):
        xl = jnp.asarray(zeros[l], jnp.float32)[None, :] * d[:, None]   # [E, R]
        rad.append(jnp.asarray(norms[l], jnp.float32)[None, :] * _jl_jax(l, xl))
    rad = env[:, None, None] * jnp.stack(rad, axis=1)   # [E, S, R]

    cos_t = jnp.cos(angle)                              # [T]
    P = [jnp.ones_like(cos_t), cos_t]
    for l in range(1, num_spherical - 1):
        P.append(((2 * l + 1) * cos_t * P[l] - l * P[l - 1]) / (l + 1))
    P = jnp.stack(P[:num_spherical], axis=1)            # [T, S]
    pref = jnp.sqrt((2 * jnp.arange(num_spherical, dtype=jnp.float32) + 1) / (4 * jnp.pi))
    cbf = pref[None, :] * P                             # [T, S]  (real sph. harm., m = 0)

    out = rad[idx_kj] * cbf[:, :, None]                 # [T, S, R]
    return out.reshape(-1, num_spherical * num_radial)


# ----------------------------------------------------------------------------------------
# Triplet construction (host-side glue; replaces SparseTensor logic in DimeNetPlusPlus)
# ----------------------------------------------------------------------------------------
def compute_triplets(edge_index, num_nodes):
    # TODO(synk): host-side Python loops; for large graphs precompute/vectorize this.
    src, dst = edge_index                               # edge e : src[e] (j) -> dst[e] (i)
    E = src.shape[0]
    in_edges = [[] for _ in range(num_nodes)]
    for e in range(E):
        in_edges[int(dst[e])].append(e)
    idx_i, idx_j, idx_k, idx_kj, idx_ji = [], [], [], [], []
    for e in range(E):
        j, i = int(src[e]), int(dst[e])
        for e2 in in_edges[j]:                          # edges k -> j
            k = int(src[e2])
            if k == i:
                continue
            idx_i.append(i); idx_j.append(j); idx_k.append(k)
            idx_kj.append(e2); idx_ji.append(e)
    return tuple(jnp.asarray(np.asarray(v, dtype=np.int32))
                 for v in (idx_i, idx_j, idx_k, idx_kj, idx_ji))


# ----------------------------------------------------------------------------------------
# Parameters (deterministic init; shapes follow the PyTorch module's __init__)
# ----------------------------------------------------------------------------------------
def init_params(key, cfg):
    H, I, Be = cfg["hidden"], cfg["int_emb"], cfg["basis_emb"]
    OE, S, R, NT = cfg["out_emb"], cfg["num_spherical"], cfg["num_radial"], cfg["num_targets"]
    keys = iter(jax.random.split(key, 1024))

    def W(fi, fo, scale=2.0):
        # TODO(synk): glorot_orthogonal replaced by glorot-normal with the same variance.
        std = float(np.sqrt(scale * 2.0 / (fi + fo)))
        return std * jax.random.normal(next(keys), (fi, fo), jnp.float32)

    def bz(fo):
        return jnp.zeros((fo,), jnp.float32)

    def res():
        return dict(w1=W(H, H), b1=bz(H), w2=W(H, H), b2=bz(H))

    params = dict(
        emb_table=0.5 * jax.random.normal(next(keys), (95, H), jnp.float32),
        emb=dict(w_rbf=W(R, H), b_rbf=bz(H), w=W(3 * H, H), b=bz(H)),
        interactions=[], outputs=[],
    )
    for _ in range(cfg["num_blocks"]):
        params["interactions"].append(dict(
            w_rbf1=W(R, Be), w_rbf2=W(Be, H),
            w_sbf1=W(S * R, Be), w_sbf2=W(Be, I),
            w_kj=W(H, H), b_kj=bz(H), w_ji=W(H, H), b_ji=bz(H),
            w_down=W(H, I), w_up=W(I, H),
            before=[res() for _ in range(cfg["num_before_skip"])],
            w_lin=W(H, H), b_lin=bz(H),
            after=[res() for _ in range(cfg["num_after_skip"])],
        ))
    for _ in range(cfg["num_blocks"] + 1):
        params["outputs"].append(dict(
            w_rbf=W(R, H),
            w_up=W(H, OE), b_up=bz(OE),
            lins=[dict(w=W(OE, OE), b=bz(OE)) for _ in range(cfg["num_output_layers"])],
            # reference init zeros this weight (output would be all-zero); use small values
            # so the kernel path is actually exercised.
            w_out=0.1 * jax.random.normal(next(keys), (OE, NT), jnp.float32),
        ))
    return params


def _bdiag(w, pk):
    """Block-diagonal expansion [Ci,Co] -> [pk*Ci, pk*Co] (lane packing), pre-cast bf16."""
    w = jnp.asarray(w, jnp.float32)
    if pk > 1:
        w = jnp.kron(jnp.eye(pk, dtype=jnp.float32), w)
    return w.astype(_MXU_DTYPE)


def _btile(b, pk):
    """Bias [Co] -> [1, pk*Co] row (kept f32; negligible bytes, exact adds)."""
    b = jnp.reshape(jnp.asarray(b, jnp.float32), (1, -1))
    return jnp.tile(b, (1, pk)) if pk > 1 else b


def prepare_params(params, pk):
    """Host-side layout prep: fold bias-free weight pairs, lane-pack (block-diagonal)
    weights, tile biases, pre-cast weights to bf16."""
    H = params["emb"]["w"].shape[1]
    bd = lambda w: _bdiag(w, pk)
    bt = lambda b: _btile(b, pk)

    def res(r):
        return dict(w1=bd(r["w1"]), b1=bt(r["b1"]), w2=bd(r["w2"]), b2=bt(r["b2"]))

    emb = params["emb"]
    w = emb["w"]
    prep = dict(
        emb_table=params["emb_table"],
        emb=dict(w_rbf=bd(emb["w_rbf"]), b_rbf=bt(emb["b_rbf"]),
                 w_i=bd(w[:H]), w_j=bd(w[H:2 * H]), w_r=bd(w[2 * H:]), b=bt(emb["b"])),
        interactions=[], outputs=[],
    )
    for ip in params["interactions"]:
        prep["interactions"].append(dict(
            w_rbf=bd(ip["w_rbf1"] @ ip["w_rbf2"]),        # exact fold (no bias / act)
            w_sbf=bd(ip["w_sbf1"] @ ip["w_sbf2"]),        # exact fold (no bias / act)
            w_ji=bd(ip["w_ji"]), b_ji=bt(ip["b_ji"]),
            w_kj=bd(ip["w_kj"]), b_kj=bt(ip["b_kj"]),
            w_down=bd(ip["w_down"]), w_up=bd(ip["w_up"]),
            before=[res(r) for r in ip["before"]],
            w_lin=bd(ip["w_lin"]), b_lin=bt(ip["b_lin"]),
            after=[res(r) for r in ip["after"]],
        ))
    for op in params["outputs"]:
        prep["outputs"].append(dict(
            w_rbf=bd(op["w_rbf"]),
            w_up=bd(op["w_up"]), b_up=bt(op["b_up"]),
            lins=[dict(w=bd(l["w"]), b=bt(l["b"])) for l in op["lins"]],
            w_out=bd(op["w_out"]),
        ))
    return prep


# ----------------------------------------------------------------------------------------
# Fused blocks (each block's matmul/bias/swish chain stays inside one Pallas kernel;
# all row inputs/outputs are lane-packed [rows/pk, pk*C])
# ----------------------------------------------------------------------------------------
def embedding_and_out0_edge(p_emb, w_orbf0, ni, nj, rbf, tile):
    cols_x = ni.shape[1]                                # pk*H

    def body(rv, cv):
        ni_, nj_, rb = rv
        w_rbf, b_rbf, w_i, w_j, w_r, b, w_orbf = cv
        rbf_h = _swish(_dot(rb, w_rbf) + b_rbf)
        x = _swish(_dot(ni_, w_i) + _dot(nj_, w_j) + _dot(rbf_h, w_r) + b)
        t = _dot(rb, w_orbf) * x                        # output block 0 edge-side (fused)
        return x, t

    return _pallas_row_op(
        body, [ni, nj, rbf],
        [p_emb["w_rbf"], p_emb["b_rbf"], p_emb["w_i"], p_emb["w_j"], p_emb["w_r"],
         p_emb["b"], w_orbf0],
        [cols_x, cols_x], tile)


def interaction_pre(p, x, rbf, tile):
    cols_h, cols_i = x.shape[1], p["w_down"].shape[1]

    def body(rv, cv):
        xx, rb = rv
        w_ji, b_ji, w_kj, b_kj, w_rbf, w_down = cv
        x_ji = _swish(_dot(xx, w_ji) + b_ji)
        x_kj = _swish(_dot(xx, w_kj) + b_kj) * _dot(rb, w_rbf)
        x_kj = _swish(_dot(x_kj, w_down))
        return x_ji, x_kj

    return _pallas_row_op(
        body, [x, rbf],
        [p["w_ji"], p["b_ji"], p["w_kj"], p["b_kj"], p["w_rbf"], p["w_down"]],
        [cols_h, cols_i], tile)


def triplet_kernel(p, sbf, x_kj_g, tile):
    cols_i = x_kj_g.shape[1]

    def body(rv, cv):
        sb, xg = rv
        (w_sbf,) = cv
        return (_dot(sb, w_sbf) * xg,)

    return _pallas_row_op(body, [sbf, x_kj_g], [p["w_sbf"]], [cols_i], tile)


def interaction_post(p, w_orbf_next, agg, x_ji, x, rbf, tile):
    cols_h = x.shape[1]
    n_before, n_after = len(p["before"]), len(p["after"])

    def body(rv, cv):
        ag, xji, xx, rb = rv
        k = 0
        w_up = cv[k]; k += 1
        h = xji + _swish(_dot(ag, w_up))
        for _ in range(n_before):
            w1, b1, w2, b2 = cv[k], cv[k + 1], cv[k + 2], cv[k + 3]; k += 4
            h = h + _swish(_dot(_swish(_dot(h, w1) + b1), w2) + b2)
        w_lin, b_lin = cv[k], cv[k + 1]; k += 2
        h = _swish(_dot(h, w_lin) + b_lin) + xx
        for _ in range(n_after):
            w1, b1, w2, b2 = cv[k], cv[k + 1], cv[k + 2], cv[k + 3]; k += 4
            h = h + _swish(_dot(_swish(_dot(h, w1) + b1), w2) + b2)
        t = _dot(rb, cv[k]) * h                         # next output block edge-side (fused)
        return h, t

    consts = [p["w_up"]]
    for r in p["before"]:
        consts += [r["w1"], r["b1"], r["w2"], r["b2"]]
    consts += [p["w_lin"], p["b_lin"]]
    for r in p["after"]:
        consts += [r["w1"], r["b1"], r["w2"], r["b2"]]
    consts += [w_orbf_next]
    return _pallas_row_op(body, [agg, x_ji, x, rbf], consts, [cols_h, cols_h], tile)


def output_node(p, xn, tile):
    cols_nt = p["w_out"].shape[1]
    n_lins = len(p["lins"])

    def body(rv, cv):
        (h,) = rv
        k = 0
        w_up, b_up = cv[k], cv[k + 1]; k += 2
        h = _dot(h, w_up) + b_up
        for _ in range(n_lins):
            w, b = cv[k], cv[k + 1]; k += 2
            h = _swish(_dot(h, w) + b)
        return (_dot(h, cv[k]),)

    consts = [p["w_up"], p["b_up"]]
    for l in p["lins"]:
        consts += [l["w"], l["b"]]
    consts += [p["w_out"]]
    return _pallas_row_op(body, [xn], consts, [cols_nt], tile, out_dtype=jnp.float32)


# ----------------------------------------------------------------------------------------
# Whole forward (jitted once; all Pallas calls live inside the single XLA program)
# ----------------------------------------------------------------------------------------
def dimenetpp_forward(cfg, pk, zeros, norms, num_graphs, params, atom_types, pos,
                      src, dst, batch, idx_i, idx_j, idx_k, idx_kj, idx_ji):
    # TODO(synk): PBC handling (frac_to_cart_coords / get_pbc_distances / radius_graph_pbc)
    # omitted; plain Cartesian coordinates with zero image offsets are used.
    H, R = cfg["hidden"], cfg["num_radial"]
    I, NT = cfg["int_emb"], cfg["num_targets"]
    num_nodes = pos.shape[0]
    E, T = src.shape[0], idx_kj.shape[0]

    vec = pos[src] - pos[dst]
    dist = jnp.sqrt(jnp.sum(vec * vec, axis=-1))

    pos_ji = pos[idx_j] - pos[idx_i]
    pos_kj = pos[idx_k] - pos[idx_j]
    a = jnp.sum(pos_ji * pos_kj, axis=-1)
    b = jnp.linalg.norm(jnp.cross(pos_ji, pos_kj), axis=-1)
    angle = jnp.arctan2(b, a)

    rbf = bessel_rbf(dist, R, cfg["cutoff"], cfg["envelope_exponent"])
    sbf = spherical_sbf(dist, angle, idx_kj, cfg["num_spherical"], R,
                        cfg["cutoff"], cfg["envelope_exponent"], zeros, norms)

    # --- pad each row-domain ONCE, lane-pack, cast to bf16 ------------------------------
    E_p, E_pk, tile_e = _domain(E, pk, _TILE_R)
    T_p, T_pk, tile_t = _domain(T, pk, _TILE_R)
    N_p, N_pk, tile_n = _domain(num_nodes, pk, _TILE_NODE)

    rbf_p = _pad_pack(rbf, E_p, pk)                                # [E_pk, pk*R]
    sbf_p = _pad_pack(sbf, T_p, pk)                                # [T_pk, pk*S*R]
    dst_p = _pad_idx(dst, E_p)
    kj_p = _pad_idx(idx_kj, T_p)
    ji_p = _pad_idx(idx_ji, T_p)

    node = params["emb_table"][atom_types]                         # [N, H] gather (glue)
    ni = _pad_pack(node[dst], E_p, pk)                             # [E_pk, pk*H]
    nj = _pad_pack(node[src], E_p, pk)

    # --- embedding block (+ fused edge side of output block 0) --------------------------
    x, t0 = embedding_and_out0_edge(params["emb"], params["outputs"][0]["w_rbf"],
                                    ni, nj, rbf_p, tile_e)

    def node_output(op, t_packed):
        t_full = _unpack(t_packed, pk, H)                          # [E_p, H]
        xn = jax.ops.segment_sum(t_full, dst_p, num_segments=N_p)  # scatter-add (glue)
        (p_packed,) = output_node(op, xn.reshape(N_pk, pk * H), tile_n)
        return _unpack(p_packed, pk, NT)                           # [N_p, NT] f32

    P = node_output(params["outputs"][0], t0)

    for ib, ob in zip(params["interactions"], params["outputs"][1:]):
        x_ji, x_kj = interaction_pre(ib, x, rbf_p, tile_e)
        # TODO(synk): fuse this gather + the idx_ji segment-sum into the triplet kernel
        # (scalar-prefetch over sorted triplets); kept as XLA glue here.
        x_kj_g = _unpack(x_kj, pk, I)[kj_p].reshape(T_pk, pk * I)  # gather + repack
        (sbf_m,) = triplet_kernel(ib, sbf_p, x_kj_g, tile_t)
        agg = jax.ops.segment_sum(_unpack(sbf_m, pk, I), ji_p, num_segments=E_p)
        agg_p = agg.reshape(E_pk, pk * I)
        x, t = interaction_post(ib, ob["w_rbf"], agg_p, x_ji, x, rbf_p, tile_e)
        P = P + node_output(ob, t)

    # readout == 'mean' over each graph in the batch
    P = P[:num_nodes]
    sums = jax.ops.segment_sum(P, batch, num_segments=num_graphs)
    counts = jax.ops.segment_sum(jnp.ones((num_nodes, 1), jnp.float32), batch,
                                 num_segments=num_graphs)
    energy = sums / jnp.maximum(counts, 1.0)
    # TODO(synk): train_loss / StandardScaler path not implemented; this is the
    # `type != 'train'` branch returning per-graph energy.
    return energy


# ----------------------------------------------------------------------------------------
if __name__ == "__main__":
    cfg = dict(
        num_targets=2, hidden=32, num_blocks=2, int_emb=16, basis_emb=8, out_emb=32,
        num_spherical=4, num_radial=6, cutoff=5.0, envelope_exponent=5,
        num_before_skip=1, num_after_skip=2, num_output_layers=2, readout="mean",
    )
    pk = 128 // cfg["hidden"] if (cfg["hidden"] <= 128 and 128 % cfg["hidden"] == 0) else 1

    key = jax.random.PRNGKey(0)
    k_pos, k_z, k_par = jax.random.split(key, 3)

    # small synthetic "crystal" batch: 2 graphs x 4 atoms, fully connected within each graph
    num_atoms = 8
    pos = 2.0 * jax.random.uniform(k_pos, (num_atoms, 3), jnp.float32)
    atom_types = jax.random.randint(k_z, (num_atoms,), 1, 10)
    batch = jnp.asarray(np.array([0] * 4 + [1] * 4, dtype=np.int32))
    num_graphs = int(np.asarray(batch).max()) + 1

    edges = []
    for g in range(2):
        nodes = list(range(4 * g, 4 * g + 4))
        for a_ in nodes:
            for b_ in nodes:
                if a_ != b_:
                    edges.append((a_, b_))                 # (j = source, i = target)
    edge_index_np = np.array(edges, dtype=np.int32).T      # [2, 24]
    src = jnp.asarray(edge_index_np[0])
    dst = jnp.asarray(edge_index_np[1])

    # triplets (host-side, outside jit)
    idx_i, idx_j, idx_k, idx_kj, idx_ji = compute_triplets(edge_index_np, num_atoms)

    # spherical-Bessel zeros & DimeNet normalizers (host-side, deterministic)
    zeros = _spherical_bessel_zeros(cfg["num_spherical"], cfg["num_radial"])
    norms = np.stack([np.sqrt(2.0) / np.abs(_jn_np(l + 1, zeros[l]))
                      for l in range(cfg["num_spherical"])], axis=0)

    params = prepare_params(init_params(k_par, cfg), pk)

    fwd = jax.jit(functools.partial(dimenetpp_forward, cfg, pk, zeros, norms, num_graphs))
    energy = fwd(params, atom_types, pos, src, dst, batch,
                 idx_i, idx_j, idx_k, idx_kj, idx_ji)
    energy = jax.block_until_ready(energy)

    assert energy.shape == (num_graphs, cfg["num_targets"])
    assert bool(jnp.all(jnp.isfinite(energy)))
    print("KERNEL_OK")
</pallas_src>

<mosaic_0001>
module attributes {stable_mosaic.version = 11 : i64} {
  func.func private @main(%arg0: i32) attributes {dimension_semantics = [#tpu.dimension_semantics<core_parallel>], iteration_bounds = array<i64: 2>, tpu.core_type = #tpu.core_type<sc_scalar_subcore>, window_params = []} {
    return
  }
}

module attributes {stable_mosaic.version = 11 : i64} {
  func.func private @main(%arg0: i32) attributes {dimension_semantics = [#tpu.dimension_semantics<core_parallel>], iteration_bounds = array<i64: 2>, tpu.core_type = #tpu.core_type<sc_scalar_subcore>, window_params = []} {
    return
  }
}

module attributes {stable_mosaic.version = 11 : i64} {
  func.func @kernel(%arg0: i32, %arg1: memref<16x128xbf16, #tpu.memory_space<vmem>>, %arg2: memref<16x128xbf16, #tpu.memory_space<vmem>>, %arg3: memref<16x24xbf16, #tpu.memory_space<vmem>>, %arg4: memref<24x128xbf16, #tpu.memory_space<vmem>>, %arg5: memref<1x128xf32, #tpu.memory_space<vmem>>, %arg6: memref<128x128xbf16, #tpu.memory_space<vmem>>, %arg7: memref<128x128xbf16, #tpu.memory_space<vmem>>, %arg8: memref<128x128xbf16, #tpu.memory_space<vmem>>, %arg9: memref<1x128xf32, #tpu.memory_space<vmem>>, %arg10: memref<24x128xbf16, #tpu.memory_space<vmem>>, %arg11: memref<16x128xbf16, #tpu.memory_space<vmem>>, %arg12: memref<16x128xbf16, #tpu.memory_space<vmem>>) attributes {dimension_semantics = [#tpu.dimension_semantics<parallel>], iteration_bounds = array<i64: 1>, scalar_prefetch = 0 : i64, scratch_operands = 0 : i64, tpu.core_type = #tpu.core_type<tc>, window_params = [{transform_indices = @transform_0, window_bounds = array<i64: 16, 128>}, {transform_indices = @transform_1, window_bounds = array<i64: 16, 128>}, {transform_indices = @transform_2, window_bounds = array<i64: 16, 24>}, {pipeline_mode = #tpu.pipeline_mode<synchronous>, transform_indices = @transform_3, window_bounds = array<i64: 24, 128>}, {pipeline_mode = #tpu.pipeline_mode<synchronous>, transform_indices = @transform_4, window_bounds = array<i64: 1, 128>}, {pipeline_mode = #tpu.pipeline_mode<synchronous>, transform_indices = @transform_5, window_bounds = array<i64: 128, 128>}, {pipeline_mode = #tpu.pipeline_mode<synchronous>, transform_indices = @transform_6, window_bounds = array<i64: 128, 128>}, {pipeline_mode = #tpu.pipeline_mode<synchronous>, transform_indices = @transform_7, window_bounds = array<i64: 128, 128>}, {pipeline_mode = #tpu.pipeline_mode<synchronous>, transform_indices = @transform_8, window_bounds = array<i64: 1, 128>}, {pipeline_mode = #tpu.pipeline_mode<synchronous>, transform_indices = @transform_9, window_bounds = array<i64: 24, 128>}, {transform_indices = @transform_10, window_bounds = array<i64: 16, 128>}, {transform_indices = @transform_11, window_bounds = array<i64: 16, 128>}]} {
    %c0 = arith.constant 0 : index
    %c0_0 = arith.constant 0 : index
    %0 = vector.load %arg1[%c0, %c0_0] : memref<16x128xbf16, #tpu.memory_space<vmem>>, vector<16x128xbf16>
    %c0_1 = arith.constant 0 : index
    %c0_2 = arith.constant 0 : index
    %1 = vector.load %arg2[%c0_1, %c0_2] : memref<16x128xbf16, #tpu.memory_space<vmem>>, vector<16x128xbf16>
    %c0_3 = arith.constant 0 : index
    %c0_4 = arith.constant 0 : index
    %2 = vector.load %arg3[%c0_3, %c0_4] : memref<16x24xbf16, #tpu.memory_space<vmem>>, vector<16x24xbf16>
    %c0_5 = arith.constant 0 : index
    %c0_6 = arith.constant 0 : index
    %3 = vector.load %arg4[%c0_5, %c0_6] : memref<24x128xbf16, #tpu.memory_space<vmem>>, vector<24x128xbf16>
    %c0_7 = arith.constant 0 : index
    %c0_8 = arith.constant 0 : index
    %4 = vector.load %arg5[%c0_7, %c0_8] : memref<1x128xf32, #tpu.memory_space<vmem>>, vector<1x128xf32>
    %c0_9 = arith.constant 0 : index
    %c0_10 = arith.constant 0 : index
    %5 = vector.load %arg6[%c0_9, %c0_10] : memref<128x128xbf16, #tpu.memory_space<vmem>>, vector<128x128xbf16>
    %c0_11 = arith.constant 0 : index
    %c0_12 = arith.constant 0 : index
    %6 = vector.load %arg7[%c0_11, %c0_12] : memref<128x128xbf16, #tpu.memory_space<vmem>>, vector<128x128xbf16>
    %c0_13 = arith.constant 0 : index
    %c0_14 = arith.constant 0 : index
    %7 = vector.load %arg8[%c0_13, %c0_14] : memref<128x128xbf16, #tpu.memory_space<vmem>>, vector<128x128xbf16>
    %c0_15 = arith.constant 0 : index
    %c0_16 = arith.constant 0 : index
    %8 = vector.load %arg9[%c0_15, %c0_16] : memref<1x128xf32, #tpu.memory_space<vmem>>, vector<1x128xf32>
    %c0_17 = arith.constant 0 : index
    %c0_18 = arith.constant 0 : index
    %9 = vector.load %arg10[%c0_17, %c0_18] : memref<24x128xbf16, #tpu.memory_space<vmem>>, vector<24x128xbf16>
    %cst = arith.constant dense<0.000000e+00> : vector<16x128xf32>
    %10 = tpu.matmul %2, %3, %cst {dimension_numbers = #tpu.dot_dimension_numbers<[1], [0], [0], [1], [0, 0, 1, 1], [], []>} : vector<16x24xbf16>, vector<24x128xbf16>, vector<16x128xf32> -> vector<16x128xf32>
    %11 = vector.broadcast %4 : vector<1x128xf32> to vector<16x128xf32>
    %12 = arith.addf %10, %11 : vector<16x128xf32>
    %13 = arith.negf %12 : vector<16x128xf32>
    %14 = math.exp %13 : vector<16x128xf32>
    %cst_19 = arith.constant 1.000000e+00 : f32
    %15 = vector.broadcast %cst_19 : f32 to vector<16x128xf32>
    %16 = arith.addf %15, %14 : vector<16x128xf32>
    %17 = arith.divf %15, %16 : vector<16x128xf32>
    %18 = arith.mulf %12, %17 : vector<16x128xf32>
    %cst_20 = arith.constant dense<0.000000e+00> : vector<16x128xf32>
    %19 = tpu.matmul %0, %5, %cst_20 {dimension_numbers = #tpu.dot_dimension_numbers<[1], [0], [0], [1], [0, 0, 1, 1], [], []>} : vector<16x128xbf16>, vector<128x128xbf16>, vector<16x128xf32> -> vector<16x128xf32>
    %cst_21 = arith.constant dense<0.000000e+00> : vector<16x128xf32>
    %20 = tpu.matmul %1, %6, %cst_21 {dimension_numbers = #tpu.dot_dimension_numbers<[1], [0], [0], [1], [0, 0, 1, 1], [], []>} : vector<16x128xbf16>, vector<128x128xbf16>, vector<16x128xf32> -> vector<16x128xf32>
    %21 = arith.addf %19, %20 : vector<16x128xf32>
    %22 = arith.truncf %18 : vector<16x128xf32> to vector<16x128xbf16>
    %cst_22 = arith.constant dense<0.000000e+00> : vector<16x128xf32>
    %23 = tpu.matmul %22, %7, %cst_22 {dimension_numbers = #tpu.dot_dimension_numbers<[1], [0], [0], [1], [0, 0, 1, 1], [], []>} : vector<16x128xbf16>, vector<128x128xbf16>, vector<16x128xf32> -> vector<16x128xf32>
    %24 = arith.addf %21, %23 : vector<16x128xf32>
    %25 = vector.broadcast %8 : vector<1x128xf32> to vector<16x128xf32>
    %26 = arith.addf %24, %25 : vector<16x128xf32>
    %27 = arith.negf %26 : vector<16x128xf32>
    %28 = math.exp %27 : vector<16x128xf32>
    %cst_23 = arith.constant 1.000000e+00 : f32
    %29 = vector.broadcast %cst_23 : f32 to vector<16x128xf32>
    %30 = arith.addf %29, %28 : vector<16x128xf32>
    %31 = arith.divf %29, %30 : vector<16x128xf32>
    %32 = arith.mulf %26, %31 : vector<16x128xf32>
    %cst_24 = arith.constant dense<0.000000e+00> : vector<16x128xf32>
    %33 = tpu.matmul %2, %9, %cst_24 {dimension_numbers = #tpu.dot_dimension_numbers<[1], [0], [0], [1], [0, 0, 1, 1], [], []>} : vector<16x24xbf16>, vector<24x128xbf16>, vector<16x128xf32> -> vector<16x128xf32>
    %34 = arith.mulf %33, %32 : vector<16x128xf32>
    %35 = arith.truncf %32 : vector<16x128xf32> to vector<16x128xbf16>
    %c0_25 = arith.constant 0 : index
    %c0_26 = arith.constant 0 : index
    %36 = vector.load %arg11[%c0_25, %c0_26] : memref<16x128xbf16, #tpu.memory_space<vmem>>, vector<16x128xbf16>
    tpu.vector_store %arg11[%c0_25, %c0_26], %35 {strides = array<i32>} : memref<16x128xbf16, #tpu.memory_space<vmem>>, vector<16x128xbf16>,
    %37 = arith.truncf %34 : vector<16x128xf32> to vector<16x128xbf16>
    %c0_27 = arith.constant 0 : index
    %c0_28 = arith.constant 0 : index
    %38 = vector.load %arg12[%c0_27, %c0_28] : memref<16x128xbf16, #tpu.memory_space<vmem>>, vector<16x128xbf16>
    tpu.vector_store %arg12[%c0_27, %c0_28], %37 {strides = array<i32>} : memref<16x128xbf16, #tpu.memory_space<vmem>>, vector<16x128xbf16>,
    return
  }
  func.func @transform_0(%arg0: i32) -> (i32, i32) {
    %c0_i32 = arith.constant 0 : i32
    %c0_i32_0 = arith.constant 0 : i32
    return %arg0, %c0_i32 : i32, i32
  }
  func.func @transform_1(%arg0: i32) -> (i32, i32) {
    %c0_i32 = arith.constant 0 : i32
    %c0_i32_0 = arith.constant 0 : i32
    return %arg0, %c0_i32 : i32, i32
  }
  func.func @transform_2(%arg0: i32) -> (i32, i32) {
    %c0_i32 = arith.constant 0 : i32
    %c0_i32_0 = arith.constant 0 : i32
    return %arg0, %c0_i32 : i32, i32
  }
  func.func @transform_3(%arg0: i32) -> (i32, i32) {
    %c0_i32 = arith.constant 0 : i32
    %c0_i32_0 = arith.constant 0 : i32
    %c0_i32_1 = arith.constant 0 : i32
    return %c0_i32, %c0_i32_0 : i32, i32
  }
  func.func @transform_4(%arg0: i32) -> (i32, i32) {
    %c0_i32 = arith.constant 0 : i32
    %c0_i32_0 = arith.constant 0 : i32
    %c0_i32_1 = arith.constant 0 : i32
    return %c0_i32, %c0_i32_0 : i32, i32
  }
  func.func @transform_5(%arg0: i32) -> (i32, i32) {
    %c0_i32 = arith.constant 0 : i32
    %c0_i32_0 = arith.constant 0 : i32
    %c0_i32_1 = arith.constant 0 : i32
    return %c0_i32, %c0_i32_0 : i32, i32
  }
  func.func @transform_6(%arg0: i32) -> (i32, i32) {
    %c0_i32 = arith.constant 0 : i32
    %c0_i32_0 = arith.constant 0 : i32
    %c0_i32_1 = arith.constant 0 : i32
    return %c0_i32, %c0_i32_0 : i32, i32
  }
  func.func @transform_7(%arg0: i32) -> (i32, i32) {
    %c0_i32 = arith.constant 0 : i32
    %c0_i32_0 = arith.constant 0 : i32
    %c0_i32_1 = arith.constant 0 : i32
    return %c0_i32, %c0_i32_0 : i32, i32
  }
  func.func @transform_8(%arg0: i32) -> (i32, i32) {
    %c0_i32 = arith.constant 0 : i32
    %c0_i32_0 = arith.constant 0 : i32
    %c0_i32_1 = arith.constant 0 : i32
    return %c0_i32, %c0_i32_0 : i32, i32
  }
  func.func @transform_9(%arg0: i32) -> (i32, i32) {
    %c0_i32 = arith.constant 0 : i32
    %c0_i32_0 = arith.constant 0 : i32
    %c0_i32_1 = arith.constant 0 : i32
    return %c0_i32, %c0_i32_0 : i32, i32
  }
  func.func @transform_10(%arg0: i32) -> (i32, i32) {
    %c0_i32 = arith.constant 0 : i32
    %c0_i32_0 = arith.constant 0 : i32
    return %arg0, %c0_i32 : i32, i32
  }
  func.func @transform_11(%arg0: i32) -> (i32, i32) {
    %c0_i32 = arith.constant 0 : i32
    %c0_i32_0 = arith.constant 0 : i32
    return %arg0, %c0_i32 : i32, i32
  }
}

module attributes {stable_mosaic.version = 11 : i64} {
  func.func @kernel(%arg0: i32, %arg1: memref<16x128xbf16, #tpu.memory_space<vmem>>, %arg2: memref<16x24xbf16, #tpu.memory_space<vmem>>, %arg3: memref<128x128xbf16, #tpu.memory_space<vmem>>, %arg4: memref<1x128xf32, #tpu.memory_space<vmem>>, %arg5: memref<128x128xbf16, #tpu.memory_space<vmem>>, %arg6: memref<1x128xf32, #tpu.memory_space<vmem>>, %arg7: memref<24x128xbf16, #tpu.memory_space<vmem>>, %arg8: memref<128x64xbf16, #tpu.memory_space<vmem>>, %arg9: memref<16x128xbf16, #tpu.memory_space<vmem>>, %arg10: memref<16x64xbf16, #tpu.memory_space<vmem>>) attributes {dimension_semantics = [#tpu.dimension_semantics<parallel>], iteration_bounds = array<i64: 1>, scalar_prefetch = 0 : i64, scratch_operands = 0 : i64, tpu.core_type = #tpu.core_type<tc>, window_params = [{transform_indices = @transform_0, window_bounds = array<i64: 16, 128>}, {transform_indices = @transform_1, window_bounds = array<i64: 16, 24>}, {pipeline_mode = #tpu.pipeline_mode<synchronous>, transform_indices = @transform_2, window_bounds = array<i64: 128, 128>}, {pipeline_mode = #tpu.pipeline_mode<synchronous>, transform_indices = @transform_3, window_bounds = array<i64: 1, 128>}, {pipeline_mode = #tpu.pipeline_mode<synchronous>, transform_indices = @transform_4, window_bounds = array<i64: 128, 128>}, {pipeline_mode = #tpu.pipeline_mode<synchronous>, transform_indices = @transform_5, window_bounds = array<i64: 1, 128>}, {pipeline_mode = #tpu.pipeline_mode<synchronous>, transform_indices = @transform_6, window_bounds = array<i64: 24, 128>}, {pipeline_mode = #tpu.pipeline_mode<synchronous>, transform_indices = @transform_7, window_bounds = array<i64: 128, 64>}, {transform_indices = @transform_8, window_bounds = array<i64: 16, 128>}, {transform_indices = @transform_9, window_bounds = array<i64: 16, 64>}]} {
    %c0 = arith.constant 0 : index
    %c0_0 = arith.constant 0 : index
    %0 = vector.load %arg1[%c0, %c0_0] : memref<16x128xbf16, #tpu.memory_space<vmem>>, vector<16x128xbf16>
    %c0_1 = arith.constant 0 : index
    %c0_2 = arith.constant 0 : index
    %1 = vector.load %arg2[%c0_1, %c0_2] : memref<16x24xbf16, #tpu.memory_space<vmem>>, vector<16x24xbf16>
    %c0_3 = arith.constant 0 : index
    %c0_4 = arith.constant 0 : index
    %2 = vector.load %arg3[%c0_3, %c0_4] : memref<128x128xbf16, #tpu.memory_space<vmem>>, vector<128x128xbf16>
    %c0_5 = arith.constant 0 : index
    %c0_6 = arith.constant 0 : index
    %3 = vector.load %arg4[%c0_5, %c0_6] : memref<1x128xf32, #tpu.memory_space<vmem>>, vector<1x128xf32>
    %c0_7 = arith.constant 0 : index
    %c0_8 = arith.constant 0 : index
    %4 = vector.load %arg5[%c0_7, %c0_8] : memref<128x128xbf16, #tpu.memory_space<vmem>>, vector<128x128xbf16>
    %c0_9 = arith.constant 0 : index
    %c0_10 = arith.constant 0 : index
    %5 = vector.load %arg6[%c0_9, %c0_10] : memref<1x128xf32, #tpu.memory_space<vmem>>, vector<1x128xf32>
    %c0_11 = arith.constant 0 : index
    %c0_12 = arith.constant 0 : index
    %6 = vector.load %arg7[%c0_11, %c0_12] : memref<24x128xbf16, #tpu.memory_space<vmem>>, vector<24x128xbf16>
    %c0_13 = arith.constant 0 : index
    %c0_14 = arith.constant 0 : index
    %7 = vector.load %arg8[%c0_13, %c0_14] : memref<128x64xbf16, #tpu.memory_space<vmem>>, vector<128x64xbf16>
    %cst = arith.constant dense<0.000000e+00> : vector<16x128xf32>
    %8 = tpu.matmul %0, %2, %cst {dimension_numbers = #tpu.dot_dimension_numbers<[1], [0], [0], [1], [0, 0, 1, 1], [], []>} : vector<16x128xbf16>, vector<128x128xbf16>, vector<16x128xf32> -> vector<16x128xf32>
    %9 = vector.broadcast %3 : vector<1x128xf32> to vector<16x128xf32>
    %10 = arith.addf %8, %9 : vector<16x128xf32>
    %11 = arith.negf %10 : vector<16x128xf32>
    %12 = math.exp %11 : vector<16x128xf32>
    %cst_15 = arith.constant 1.000000e+00 : f32
    %13 = vector.broadcast %cst_15 : f32 to vector<16x128xf32>
    %14 = arith.addf %13, %12 : vector<16x128xf32>
    %15 = arith.divf %13, %14 : vector<16x128xf32>
    %16 = arith.mulf %10, %15 : vector<16x128xf32>
    %cst_16 = arith.constant dense<0.000000e+00> : vector<16x128xf32>
    %17 = tpu.matmul %0, %4, %cst_16 {dimension_numbers = #tpu.dot_dimension_numbers<[1], [0], [0], [1], [0, 0, 1, 1], [], []>} : vector<16x128xbf16>, vector<128x128xbf16>, vector<16x128xf32> -> vector<16x128xf32>
    %18 = vector.broadcast %5 : vector<1x128xf32> to vector<16x128xf32>
    %19 = arith.addf %17, %18 : vector<16x128xf32>
    %20 = arith.negf %19 : vector<16x128xf32>
    %21 = math.exp %20 : vector<16x128xf32>
    %cst_17 = arith.constant 1.000000e+00 : f32
    %22 = vector.broadcast %cst_17 : f32 to vector<16x128xf32>
    %23 = arith.addf %22, %21 : vector<16x128xf32>
    %24 = arith.divf %22, %23 : vector<16x128xf32>
    %25 = arith.mulf %19, %24 : vector<16x128xf32>
    %cst_18 = arith.constant dense<0.000000e+00> : vector<16x128xf32>
    %26 = tpu.matmul %1, %6, %cst_18 {dimension_numbers = #tpu.dot_dimension_numbers<[1], [0], [0], [1], [0, 0, 1, 1], [], []>} : vector<16x24xbf16>, vector<24x128xbf16>, vector<16x128xf32> -> vector<16x128xf32>
    %27 = arith.mulf %25, %26 : vector<16x128xf32>
    %28 = arith.truncf %27 : vector<16x128xf32> to vector<16x128xbf16>
    %cst_19 = arith.constant dense<0.000000e+00> : vector<16x64xf32>
    %29 = tpu.matmul %28, %7, %cst_19 {dimension_numbers = #tpu.dot_dimension_numbers<[1], [0], [0], [1], [0, 0, 1, 1], [], []>} : vector<16x128xbf16>, vector<128x64xbf16>, vector<16x64xf32> -> vector<16x64xf32>
    %30 = arith.negf %29 : vector<16x64xf32>
    %31 = math.exp %30 : vector<16x64xf32>
    %cst_20 = arith.constant 1.000000e+00 : f32
    %32 = vector.broadcast %cst_20 : f32 to vector<16x64xf32>
    %33 = arith.addf %32, %31 : vector<16x64xf32>
    %34 = arith.divf %32, %33 : vector<16x64xf32>
    %35 = arith.mulf %29, %34 : vector<16x64xf32>
    %36 = arith.truncf %16 : vector<16x128xf32> to vector<16x128xbf16>
    %c0_21 = arith.constant 0 : index
    %c0_22 = arith.constant 0 : index
    %37 = vector.load %arg9[%c0_21, %c0_22] : memref<16x128xbf16, #tpu.memory_space<vmem>>, vector<16x128xbf16>
    tpu.vector_store %arg9[%c0_21, %c0_22], %36 {strides = array<i32>} : memref<16x128xbf16, #tpu.memory_space<vmem>>, vector<16x128xbf16>,
    %38 = arith.truncf %35 : vector<16x64xf32> to vector<16x64xbf16>
    %c0_23 = arith.constant 0 : index
    %c0_24 = arith.constant 0 : index
    %39 = vector.load %arg10[%c0_23, %c0_24] : memref<16x64xbf16, #tpu.memory_space<vmem>>, vector<16x64xbf16>
    tpu.vector_store %arg10[%c0_23, %c0_24], %38 {strides = array<i32>} : memref<16x64xbf16, #tpu.memory_space<vmem>>, vector<16x64xbf16>,
    return
  }
  func.func @transform_0(%arg0: i32) -> (i32, i32) {
    %c0_i32 = arith.constant 0 : i32
    %c0_i32_0 = arith.constant 0 : i32
    return %arg0, %c0_i32 : i32, i32
  }
  func.func @transform_1(%arg0: i32) -> (i32, i32) {
    %c0_i32 = arith.constant 0 : i32
    %c0_i32_0 = arith.constant 0 : i32
    return %arg0, %c0_i32 : i32, i32
  }
  func.func @transform_2(%arg0: i32) -> (i32, i32) {
    %c0_i32 = arith.constant 0 : i32
    %c0_i32_0 = arith.constant 0 : i32
    %c0_i32_1 = arith.constant 0 : i32
    return %c0_i32, %c0_i32_0 : i32, i32
  }
  func.func @transform_3(%arg0: i32) -> (i32, i32) {
    %c0_i32 = arith.constant 0 : i32
    %c0_i32_0 = arith.constant 0 : i32
    %c0_i32_1 = arith.constant 0 : i32
    return %c0_i32, %c0_i32_0 : i32, i32
  }
  func.func @transform_4(%arg0: i32) -> (i32, i32) {
    %c0_i32 = arith.constant 0 : i32
    %c0_i32_0 = arith.constant 0 : i32
    %c0_i32_1 = arith.constant 0 : i32
    return %c0_i32, %c0_i32_0 : i32, i32
  }
  func.func @transform_5(%arg0: i32) -> (i32, i32) {
    %c0_i32 = arith.constant 0 : i32
    %c0_i32_0 = arith.constant 0 : i32
    %c0_i32_1 = arith.constant 0 : i32
    return %c0_i32, %c0_i32_0 : i32, i32
  }
  func.func @transform_6(%arg0: i32) -> (i32, i32) {
    %c0_i32 = arith.constant 0 : i32
    %c0_i32_0 = arith.constant 0 : i32
    %c0_i32_1 = arith.constant 0 : i32
    return %c0_i32, %c0_i32_0 : i32, i32
  }
  func.func @transform_7(%arg0: i32) -> (i32, i32) {
    %c0_i32 = arith.constant 0 : i32
    %c0_i32_0 = arith.constant 0 : i32
    %c0_i32_1 = arith.constant 0 : i32
    return %c0_i32, %c0_i32_0 : i32, i32
  }
  func.func @transform_8(%arg0: i32) -> (i32, i32) {
    %c0_i32 = arith.constant 0 : i32
    %c0_i32_0 = arith.constant 0 : i32
    return %arg0, %c0_i32 : i32, i32
  }
  func.func @transform_9(%arg0: i32) -> (i32, i32) {
    %c0_i32 = arith.constant 0 : i32
    %c0_i32_0 = arith.constant 0 : i32
    return %arg0, %c0_i32 : i32, i32
  }
}

module attributes {stable_mosaic.version = 11 : i64} {
  func.func @kernel(%arg0: i32, %arg1: memref<16x96xbf16, #tpu.memory_space<vmem>>, %arg2: memref<16x64xbf16, #tpu.memory_space<vmem>>, %arg3: memref<96x64xbf16, #tpu.memory_space<vmem>>, %arg4: memref<16x64xbf16, #tpu.memory_space<vmem>>) attributes {dimension_semantics = [#tpu.dimension_semantics<parallel>], iteration_bounds = array<i64: 1>, scalar_prefetch = 0 : i64, scratch_operands = 0 : i64, tpu.core_type = #tpu.core_type<tc>, window_params = [{transform_indices = @transform_0, window_bounds = array<i64: 16, 96>}, {transform_indices = @transform_1, window_bounds = array<i64: 16, 64>}, {pipeline_mode = #tpu.pipeline_mode<synchronous>, transform_indices = @transform_2, window_bounds = array<i64: 96, 64>}, {transform_indices = @transform_3, window_bounds = array<i64: 16, 64>}]} {
    %c0 = arith.constant 0 : index
    %c0_0 = arith.constant 0 : index
    %0 = vector.load %arg1[%c0, %c0_0] : memref<16x96xbf16, #tpu.memory_space<vmem>>, vector<16x96xbf16>
    %c0_1 = arith.constant 0 : index
    %c0_2 = arith.constant 0 : index
    %1 = vector.load %arg2[%c0_1, %c0_2] : memref<16x64xbf16, #tpu.memory_space<vmem>>, vector<16x64xbf16>
    %c0_3 = arith.constant 0 : index
    %c0_4 = arith.constant 0 : index
    %2 = vector.load %arg3[%c0_3, %c0_4] : memref<96x64xbf16, #tpu.memory_space<vmem>>, vector<96x64xbf16>
    %cst = arith.constant dense<0.000000e+00> : vector<16x64xf32>
    %3 = tpu.matmul %0, %2, %cst {dimension_numbers = #tpu.dot_dimension_numbers<[1], [0], [0], [1], [0, 0, 1, 1], [], []>} : vector<16x96xbf16>, vector<96x64xbf16>, vector<16x64xf32> -> vector<16x64xf32>
    %4 = arith.extf %1 : vector<16x64xbf16> to vector<16x64xf32>
    %5 = arith.mulf %3, %4 : vector<16x64xf32>
    %6 = arith.truncf %5 : vector<16x64xf32> to vector<16x64xbf16>
    %c0_5 = arith.constant 0 : index
    %c0_6 = arith.constant 0 : index
    %7 = vector.load %arg4[%c0_5, %c0_6] : memref<16x64xbf16, #tpu.memory_space<vmem>>, vector<16x64xbf16>
    tpu.vector_store %arg4[%c0_5, %c0_6], %6 {strides = array<i32>} : memref<16x64xbf16, #tpu.memory_space<vmem>>, vector<16x64xbf16>,
    return
  }
  func.func @transform_0(%arg0: i32) -> (i32, i32) {
    %c0_i32 = arith.constant 0 : i32
    %c0_i32_0 = arith.constant 0 : i32
    return %arg0, %c0_i32 : i32, i32
  }
  func.func @transform_1(%arg0: i32) -> (i32, i32) {
    %c0_i32 = arith.constant 0 : i32
    %c0_i32_0 = arith.constant 0 : i32
    return %arg0, %c0_i32 : i32, i32
  }
  func.func @transform_2(%arg0: i32) -> (i32, i32) {
    %c0_i32 = arith.constant 0 : i32
    %c0_i32_0 = arith.constant 0 : i32
    %c0_i32_1 = arith.constant 0 : i32
    return %c0_i32, %c0_i32_0 : i32, i32
  }
  func.func @transform_3(%arg0: i32) -> (i32, i32) {
    %c0_i32 = arith.constant 0 : i32
    %c0_i32_0 = arith.constant 0 : i32
    return %arg0, %c0_i32 : i32, i32
  }
}

module attributes {stable_mosaic.version = 11 : i64} {
  func.func @kernel(%arg0: i32, %arg1: memref<16x64xbf16, #tpu.memory_space<vmem>>, %arg2: memref<16x128xbf16, #tpu.memory_space<vmem>>, %arg3: memref<16x128xbf16, #tpu.memory_space<vmem>>, %arg4: memref<16x24xbf16, #tpu.memory_space<vmem>>, %arg5: memref<64x128xbf16, #tpu.memory_space<vmem>>, %arg6: memref<128x128xbf16, #tpu.memory_space<vmem>>, %arg7: memref<1x128xf32, #tpu.memory_space<vmem>>, %arg8: memref<128x128xbf16, #tpu.memory_space<vmem>>, %arg9: memref<1x128xf32, #tpu.memory_space<vmem>>, %arg10: memref<128x128xbf16, #tpu.memory_space<vmem>>, %arg11: memref<1x128xf32, #tpu.memory_space<vmem>>, %arg12: memref<128x128xbf16, #tpu.memory_space<vmem>>, %arg13: memref<1x128xf32, #tpu.memory_space<vmem>>, %arg14: memref<128x128xbf16, #tpu.memory_space<vmem>>, %arg15: memref<1x128xf32, #tpu.memory_space<vmem>>, %arg16: memref<128x128xbf16, #tpu.memory_space<vmem>>, %arg17: memref<1x128xf32, #tpu.memory_space<vmem>>, %arg18: memref<128x128xbf16, #tpu.memory_space<vmem>>, %arg19: memref<1x128xf32, #tpu.memory_space<vmem>>, %arg20: memref<24x128xbf16, #tpu.memory_space<vmem>>, %arg21: memref<16x128xbf16, #tpu.memory_space<vmem>>, %arg22: memref<16x128xbf16, #tpu.memory_space<vmem>>) attributes {dimension_semantics = [#tpu.dimension_semantics<parallel>], iteration_bounds = array<i64: 1>, scalar_prefetch = 0 : i64, scratch_operands = 0 : i64, tpu.core_type = #tpu.core_type<tc>, window_params = [{transform_indices = @transform_0, window_bounds = array<i64: 16, 64>}, {transform_indices = @transform_1, window_bounds = array<i64: 16, 128>}, {transform_indices = @transform_2, window_bounds = array<i64: 16, 128>}, {transform_indices = @transform_3, window_bounds = array<i64: 16, 24>}, {pipeline_mode = #tpu.pipeline_mode<synchronous>, transform_indices = @transform_4, window_bounds = array<i64: 64, 128>}, {pipeline_mode = #tpu.pipeline_mode<synchronous>, transform_indices = @transform_5, window_bounds = array<i64: 128, 128>}, {pipeline_mode = #tpu.pipeline_mode<synchronous>, transform_indices = @transform_6, window_bounds = array<i64: 1, 128>}, {pipeline_mode = #tpu.pipeline_mode<synchronous>, transform_indices = @transform_7, window_bounds = array<i64: 128, 128>}, {pipeline_mode = #tpu.pipeline_mode<synchronous>, transform_indices = @transform_8, window_bounds = array<i64: 1, 128>}, {pipeline_mode = #tpu.pipeline_mode<synchronous>, transform_indices = @transform_9, window_bounds = array<i64: 128, 128>}, {pipeline_mode = #tpu.pipeline_mode<synchronous>, transform_indices = @transform_10, window_bounds = array<i64: 1, 128>}, {pipeline_mode = #tpu.pipeline_mode<synchronous>, transform_indices = @transform_11, window_bounds = array<i64: 128, 128>}, {pipeline_mode = #tpu.pipeline_mode<synchronous>, transform_indices = @transform_12, window_bounds = array<i64: 1, 128>}, {pipeline_mode = #tpu.pipeline_mode<synchronous>, transform_indices = @transform_13, window_bounds = array<i64: 128, 128>}, {pipeline_mode = #tpu.pipeline_mode<synchronous>, transform_indices = @transform_14, window_bounds = array<i64: 1, 128>}, {pipeline_mode = #tpu.pipeline_mode<synchronous>, transform_indices = @transform_15, window_bounds = array<i64: 128, 128>}, {pipeline_mode = #tpu.pipeline_mode<synchronous>, transform_indices = @transform_16, window_bounds = array<i64: 1, 128>}, {pipeline_mode = #tpu.pipeline_mode<synchronous>, transform_indices = @transform_17, window_bounds = array<i64: 128, 128>}, {pipeline_mode = #tpu.pipeline_mode<synchronous>, transform_indices = @transform_18, window_bounds = array<i64: 1, 128>}, {pipeline_mode = #tpu.pipeline_mode<synchronous>, transform_indices = @transform_19, window_bounds = array<i64: 24, 128>}, {transform_indices = @transform_20, window_bounds = array<i64: 16, 128>}, {transform_indices = @transform_21, window_bounds = array<i64: 16, 128>}]} {
    %c0 = arith.constant 0 : index
    %c0_0 = arith.constant 0 : index
    %0 = vector.load %arg1[%c0, %c0_0] : memref<16x64xbf16, #tpu.memory_space<vmem>>, vector<16x64xbf16>
    %c0_1 = arith.constant 0 : index
    %c0_2 = arith.constant 0 : index
    %1 = vector.load %arg2[%c0_1, %c0_2] : memref<16x128xbf16, #tpu.memory_space<vmem>>, vector<16x128xbf16>
    %c0_3 = arith.constant 0 : index
    %c0_4 = arith.constant 0 : index
    %2 = vector.load %arg3[%c0_3, %c0_4] : memref<16x128xbf16, #tpu.memory_space<vmem>>, vector<16x128xbf16>
    %c0_5 = arith.constant 0 : index
    %c0_6 = arith.constant 0 : index
    %3 = vector.load %arg4[%c0_5, %c0_6] : memref<16x24xbf16, #tpu.memory_space<vmem>>, vector<16x24xbf16>
    %c0_7 = arith.constant 0 : index
    %c0_8 = arith.constant 0 : index
    %4 = vector.load %arg5[%c0_7, %c0_8] : memref<64x128xbf16, #tpu.memory_space<vmem>>, vector<64x128xbf16>
    %c0_9 = arith.constant 0 : index
    %c0_10 = arith.constant 0 : index
    %5 = vector.load %arg6[%c0_9, %c0_10] : memref<128x128xbf16, #tpu.memory_space<vmem>>, vector<128x128xbf16>
    %c0_11 = arith.constant 0 : index
    %c0_12 = arith.constant 0 : index
    %6 = vector.load %arg7[%c0_11, %c0_12] : memref<1x128xf32, #tpu.memory_space<vmem>>, vector<1x128xf32>
    %c0_13 = arith.constant 0 : index
    %c0_14 = arith.constant 0 : index
    %7 = vector.load %arg8[%c0_13, %c0_14] : memref<128x128xbf16, #tpu.memory_space<vmem>>, vector<128x128xbf16>
    %c0_15 = arith.constant 0 : index
    %c0_16 = arith.constant 0 : index
    %8 = vector.load %arg9[%c0_15, %c0_16] : memref<1x128xf32, #tpu.memory_space<vmem>>, vector<1x128xf32>
    %c0_17 = arith.constant 0 : index
    %c0_18 = arith.constant 0 : index
    %9 = vector.load %arg10[%c0_17, %c0_18] : memref<128x128xbf16, #tpu.memory_space<vmem>>, vector<128x128xbf16>
    %c0_19 = arith.constant 0 : index
    %c0_20 = arith.constant 0 : index
    %10 = vector.load %arg11[%c0_19, %c0_20] : memref<1x128xf32, #tpu.memory_space<vmem>>, vector<1x128xf32>
    %c0_21 = arith.constant 0 : index
    %c0_22 = arith.constant 0 : index
    %11 = vector.load %arg12[%c0_21, %c0_22] : memref<128x128xbf16, #tpu.memory_space<vmem>>, vector<128x128xbf16>
    %c0_23 = arith.constant 0 : index
    %c0_24 = arith.constant 0 : index
    %12 = vector.load %arg13[%c0_23, %c0_24] : memref<1x128xf32, #tpu.memory_space<vmem>>, vector<1x128xf32>
    %c0_25 = arith.constant 0 : index
    %c0_26 = arith.constant 0 : index
    %13 = vector.load %arg14[%c0_25, %c0_26] : memref<128x128xbf16, #tpu.memory_space<vmem>>, vector<128x128xbf16>
    %c0_27 = arith.constant 0 : index
    %c0_28 = arith.constant 0 : index
    %14 = vector.load %arg15[%c0_27, %c0_28] : memref<1x128xf32, #tpu.memory_space<vmem>>, vector<1x128xf32>
    %c0_29 = arith.constant 0 : index
    %c0_30 = arith.constant 0 : index
    %15 = vector.load %arg16[%c0_29, %c0_30] : memref<128x128xbf16, #tpu.memory_space<vmem>>, vector<128x128xbf16>
    %c0_31 = arith.constant 0 : index
    %c0_32 = arith.constant 0 : index
    %16 = vector.load %arg17[%c0_31, %c0_32] : memref<1x128xf32, #tpu.memory_space<vmem>>, vector<1x128xf32>
    %c0_33 = arith.constant 0 : index
    %c0_34 = arith.constant 0 : index
    %17 = vector.load %arg18[%c0_33, %c0_34] : memref<128x128xbf16, #tpu.memory_space<vmem>>, vector<128x128xbf16>
    %c0_35 = arith.constant 0 : index
    %c0_36 = arith.constant 0 : index
    %18 = vector.load %arg19[%c0_35, %c0_36] : memref<1x128xf32, #tpu.memory_space<vmem>>, vector<1x128xf32>
    %c0_37 = arith.constant 0 : index
    %c0_38 = arith.constant 0 : index
    %19 = vector.load %arg20[%c0_37, %c0_38] : memref<24x128xbf16, #tpu.memory_space<vmem>>, vector<24x128xbf16>
    %cst = arith.constant dense<0.000000e+00> : vector<16x128xf32>
    %20 = tpu.matmul %0, %4, %cst {dimension_numbers = #tpu.dot_dimension_numbers<[1], [0], [0], [1], [0, 0, 1, 1], [], []>} : vector<16x64xbf16>, vector<64x128xbf16>, vector<16x128xf32> -> vector<16x128xf32>
    %21 = arith.negf %20 : vector<16x128xf32>
    %22 = math.exp %21 : vector<16x128xf32>
    %cst_39 = arith.constant 1.000000e+00 : f32
    %23 = vector.broadcast %cst_39 : f32 to vector<16x128xf32>
    %24 = arith.addf %23, %22 : vector<16x128xf32>
    %25 = arith.divf %23, %24 : vector<16x128xf32>
    %26 = arith.mulf %20, %25 : vector<16x128xf32>
    %27 = arith.extf %1 : vector<16x128xbf16> to vector<16x128xf32>
    %28 = arith.addf %27, %26 : vector<16x128xf32>
    %29 = arith.truncf %28 : vector<16x128xf32> to vector<16x128xbf16>
    %cst_40 = arith.constant dense<0.000000e+00> : vector<16x128xf32>
    %30 = tpu.matmul %29, %5, %cst_40 {dimension_numbers = #tpu.dot_dimension_numbers<[1], [0], [0], [1], [0, 0, 1, 1], [], []>} : vector<16x128xbf16>, vector<128x128xbf16>, vector<16x128xf32> -> vector<16x128xf32>
    %31 = vector.broadcast %6 : vector<1x128xf32> to vector<16x128xf32>
    %32 = arith.addf %30, %31 : vector<16x128xf32>
    %33 = arith.negf %32 : vector<16x128xf32>
    %34 = math.exp %33 : vector<16x128xf32>
    %cst_41 = arith.constant 1.000000e+00 : f32
    %35 = vector.broadcast %cst_41 : f32 to vector<16x128xf32>
    %36 = arith.addf %35, %34 : vector<16x128xf32>
    %37 = arith.divf %35, %36 : vector<16x128xf32>
    %38 = arith.mulf %32, %37 : vector<16x128xf32>
    %39 = arith.truncf %38 : vector<16x128xf32> to vector<16x128xbf16>
    %cst_42 = arith.constant dense<0.000000e+00> : vector<16x128xf32>
    %40 = tpu.matmul %39, %7, %cst_42 {dimension_numbers = #tpu.dot_dimension_numbers<[1], [0], [0], [1], [0, 0, 1, 1], [], []>} : vector<16x128xbf16>, vector<128x128xbf16>, vector<16x128xf32> -> vector<16x128xf32>
    %41 = vector.broadcast %8 : vector<1x128xf32> to vector<16x128xf32>
    %42 = arith.addf %40, %41 : vector<16x128xf32>
    %43 = arith.negf %42 : vector<16x128xf32>
    %44 = math.exp %43 : vector<16x128xf32>
    %cst_43 = arith.constant 1.000000e+00 : f32
    %45 = vector.broadcast %cst_43 : f32 to vector<16x128xf32>
    %46 = arith.addf %45, %44 : vector<16x128xf32>
    %47 = arith.divf %45, %46 : vector<16x128xf32>
    %48 = arith.mulf %42, %47 : vector<16x128xf32>
    %49 = arith.addf %28, %48 : vector<16x128xf32>
    %50 = arith.truncf %49 : vector<16x128xf32> to vector<16x128xbf16>
    %cst_44 = arith.constant dense<0.000000e+00> : vector<16x128xf32>
    %51 = tpu.matmul %50, %9, %cst_44 {dimension_numbers = #tpu.dot_dimension_numbers<[1], [0], [0], [1], [0, 0, 1, 1], [], []>} : vector<16x128xbf16>, vector<128x128xbf16>, vector<16x128xf32> -> vector<16x128xf32>
    %52 = vector.broadcast %10 : vector<1x128xf32> to vector<16x128xf32>
    %53 = arith.addf %51, %52 : vector<16x128xf32>
    %54 = arith.negf %53 : vector<16x128xf32>
    %55 = math.exp %54 : vector<16x128xf32>
    %cst_45 = arith.constant 1.000000e+00 : f32
    %56 = vector.broadcast %cst_45 : f32 to vector<16x128xf32>
    %57 = arith.addf %56, %55 : vector<16x128xf32>
    %58 = arith.divf %56, %57 : vector<16x128xf32>
    %59 = arith.mulf %53, %58 : vector<16x128xf32>
    %60 = arith.extf %2 : vector<16x128xbf16> to vector<16x128xf32>
    %61 = arith.addf %59, %60 : vector<16x128xf32>
    %62 = arith.truncf %61 : vector<16x128xf32> to vector<16x128xbf16>
    %cst_46 = arith.constant dense<0.000000e+00> : vector<16x128xf32>
    %63 = tpu.matmul %62, %11, %cst_46 {dimension_numbers = #tpu.dot_dimension_numbers<[1], [0], [0], [1], [0, 0, 1, 1], [], []>} : vector<16x128xbf16>, vector<128x128xbf16>, vector<16x128xf32> -> vector<16x128xf32>
    %64 = vector.broadcast %12 : vector<1x128xf32> to vector<16x128xf32>
    %65 = arith.addf %63, %64 : vector<16x128xf32>
    %66 = arith.negf %65 : vector<16x128xf32>
    %67 = math.exp %66 : vector<16x128xf32>
    %cst_47 = arith.constant 1.000000e+00 : f32
    %68 = vector.broadcast %cst_47 : f32 to vector<16x128xf32>
    %69 = arith.addf %68, %67 : vector<16x128xf32>
    %70 = arith.divf %68, %69 : vector<16x128xf32>
    %71 = arith.mulf %65, %70 : vector<16x128xf32>
    %72 = arith.truncf %71 : vector<16x128xf32> to vector<16x128xbf16>
    %cst_48 = arith.constant dense<0.000000e+00> : vector<16x128xf32>
    %73 = tpu.matmul %72, %13, %cst_48 {dimension_numbers = #tpu.dot_dimension_numbers<[1], [0], [0], [1], [0, 0, 1, 1], [], []>} : vector<16x128xbf16>, vector<128x128xbf16>, vector<16x128xf32> -> vector<16x128xf32>
    %74 = vector.broadcast %14 : vector<1x128xf32> to vector<16x128xf32>
    %75 = arith.addf %73, %74 : vector<16x128xf32>
    %76 = arith.negf %75 : vector<16x128xf32>
    %77 = math.exp %76 : vector<16x128xf32>
    %cst_49 = arith.constant 1.000000e+00 : f32
    %78 = vector.broadcast %cst_49 : f32 to vector<16x128xf32>
    %79 = arith.addf %78, %77 : vector<16x128xf32>
    %80 = arith.divf %78, %79 : vector<16x128xf32>
    %81 = arith.mulf %75, %80 : vector<16x128xf32>
    %82 = arith.addf %61, %81 : vector<16x128xf32>
    %83 = arith.truncf %82 : vector<16x128xf32> to vector<16x128xbf16>
    %cst_50 = arith.constant dense<0.000000e+00> : vector<16x128xf32>
    %84 = tpu.matmul %83, %15, %cst_50 {dimension_numbers = #tpu.dot_dimension_numbers<[1], [0], [0], [1], [0, 0, 1, 1], [], []>} : vector<16x128xbf16>, vector<128x128xbf16>, vector<16x128xf32> -> vector<16x128xf32>
    %85 = vector.broadcast %16 : vector<1x128xf32> to vector<16x128xf32>
    %86 = arith.addf %84, %85 : vector<16x128xf32>
    %87 = arith.negf %86 : vector<16x128xf32>
    %88 = math.exp %87 : vector<16x128xf32>
    %cst_51 = arith.constant 1.000000e+00 : f32
    %89 = vector.broadcast %cst_51 : f32 to vector<16x128xf32>
    %90 = arith.addf %89, %88 : vector<16x128xf32>
    %91 = arith.divf %89, %90 : vector<16x128xf32>
    %92 = arith.mulf %86, %91 : vector<16x128xf32>
    %93 = arith.truncf %92 : vector<16x128xf32> to vector<16x128xbf16>
    %cst_52 = arith.constant dense<0.000000e+00> : vector<16x128xf32>
    %94 = tpu.matmul %93, %17, %cst_52 {dimension_numbers = #tpu.dot_dimension_numbers<[1], [0], [0], [1], [0, 0, 1, 1], [], []>} : vector<16x128xbf16>, vector<128x128xbf16>, vector<16x128xf32> -> vector<16x128xf32>
    %95 = vector.broadcast %18 : vector<1x128xf32> to vector<16x128xf32>
    %96 = arith.addf %94, %95 : vector<16x128xf32>
    %97 = arith.negf %96 : vector<16x128xf32>
    %98 = math.exp %97 : vector<16x128xf32>
    %cst_53 = arith.constant 1.000000e+00 : f32
    %99 = vector.broadcast %cst_53 : f32 to vector<16x128xf32>
    %100 = arith.addf %99, %98 : vector<16x128xf32>
    %101 = arith.divf %99, %100 : vector<16x128xf32>
    %102 = arith.mulf %96, %101 : vector<16x128xf32>
    %103 = arith.addf %82, %102 : vector<16x128xf32>
    %cst_54 = arith.constant dense<0.000000e+00> : vector<16x128xf32>
    %104 = tpu.matmul %3, %19, %cst_54 {dimension_numbers = #tpu.dot_dimension_numbers<[1], [0], [0], [1], [0, 0, 1, 1], [], []>} : vector<16x24xbf16>, vector<24x128xbf16>, vector<16x128xf32> -> vector<16x128xf32>
    %105 = arith.mulf %104, %103 : vector<16x128xf32>
    %106 = arith.truncf %103 : vector<16x128xf32> to vector<16x128xbf16>
    %c0_55 = arith.constant 0 : index
    %c0_56 = arith.constant 0 : index
    %107 = vector.load %arg21[%c0_55, %c0_56] : memref<16x128xbf16, #tpu.memory_space<vmem>>, vector<16x128xbf16>
    tpu.vector_store %arg21[%c0_55, %c0_56], %106 {strides = array<i32>} : memref<16x128xbf16, #tpu.memory_space<vmem>>, vector<16x128xbf16>,
    %108 = arith.truncf %105 : vector<16x128xf32> to vector<16x128xbf16>
    %c0_57 = arith.constant 0 : index
    %c0_58 = arith.constant 0 : index
    %109 = vector.load %arg22[%c0_57, %c0_58] : memref<16x128xbf16, #tpu.memory_space<vmem>>, vector<16x128xbf16>
    tpu.vector_store %arg22[%c0_57, %c0_58], %108 {strides = array<i32>} : memref<16x128xbf16, #tpu.memory_space<vmem>>, vector<16x128xbf16>,
    return
  }
  func.func @transform_0(%arg0: i32) -> (i32, i32) {
    %c0_i32 = arith.constant 0 : i32
    %c0_i32_0 = arith.constant 0 : i32
    return %arg0, %c0_i32 : i32, i32
  }
  func.func @transform_1(%arg0: i32) -> (i32, i32) {
    %c0_i32 = arith.constant 0 : i32
    %c0_i32_0 = arith.constant 0 : i32
    return %arg0, %c0_i32 : i32, i32
  }
  func.func @transform_2(%arg0: i32) -> (i32, i32) {
    %c0_i32 = arith.constant 0 : i32
    %c0_i32_0 = arith.constant 0 : i32
    return %arg0, %c0_i32 : i32, i32
  }
  func.func @transform_3(%arg0: i32) -> (i32, i32) {
    %c0_i32 = arith.constant 0 : i32
    %c0_i32_0 = arith.constant 0 : i32
    return %arg0, %c0_i32 : i32, i32
  }
  func.func @transform_4(%arg0: i32) -> (i32, i32) {
    %c0_i32 = arith.constant 0 : i32
    %c0_i32_0 = arith.constant 0 : i32
    %c0_i32_1 = arith.constant 0 : i32
    return %c0_i32, %c0_i32_0 : i32, i32
  }
  func.func @transform_5(%arg0: i32) -> (i32, i32) {
    %c0_i32 = arith.constant 0 : i32
    %c0_i32_0 = arith.constant 0 : i32
    %c0_i32_1 = arith.constant 0 : i32
    return %c0_i32, %c0_i32_0 : i32, i32
  }
  func.func @transform_6(%arg0: i32) -> (i32, i32) {
    %c0_i32 = arith.constant 0 : i32
    %c0_i32_0 = arith.constant 0 : i32
    %c0_i32_1 = arith.constant 0 : i32
    return %c0_i32, %c0_i32_0 : i32, i32
  }
  func.func @transform_7(%arg0: i32) -> (i32, i32) {
    %c0_i32 = arith.constant 0 : i32
    %c0_i32_0 = arith.constant 0 : i32
    %c0_i32_1 = arith.constant 0 : i32
    return %c0_i32, %c0_i32_0 : i32, i32
  }
  func.func @transform_8(%arg0: i32) -> (i32, i32) {
    %c0_i32 = arith.constant 0 : i32
    %c0_i32_0 = arith.constant 0 : i32
    %c0_i32_1 = arith.constant 0 : i32
    return %c0_i32, %c0_i32_0 : i32, i32
  }
  func.func @transform_9(%arg0: i32) -> (i32, i32) {
    %c0_i32 = arith.constant 0 : i32
    %c0_i32_0 = arith.constant 0 : i32
    %c0_i32_1 = arith.constant 0 : i32
    return %c0_i32, %c0_i32_0 : i32, i32
  }
  func.func @transform_10(%arg0: i32) -> (i32, i32) {
    %c0_i32 = arith.constant 0 : i32
    %c0_i32_0 = arith.constant 0 : i32
    %c0_i32_1 = arith.constant 0 : i32
    return %c0_i32, %c0_i32_0 : i32, i32
  }
  func.func @transform_11(%arg0: i32) -> (i32, i32) {
    %c0_i32 = arith.constant 0 : i32
    %c0_i32_0 = arith.constant 0 : i32
    %c0_i32_1 = arith.constant 0 : i32
    return %c0_i32, %c0_i32_0 : i32, i32
  }
  func.func @transform_12(%arg0: i32) -> (i32, i32) {
    %c0_i32 = arith.constant 0 : i32
    %c0_i32_0 = arith.constant 0 : i32
    %c0_i32_1 = arith.constant 0 : i32
    return %c0_i32, %c0_i32_0 : i32, i32
  }
  func.func @transform_13(%arg0: i32) -> (i32, i32) {
    %c0_i32 = arith.constant 0 : i32
    %c0_i32_0 = arith.constant 0 : i32
    %c0_i32_1 = arith.constant 0 : i32
    return %c0_i32, %c0_i32_0 : i32, i32
  }
  func.func @transform_14(%arg0: i32) -> (i32, i32) {
    %c0_i32 = arith.constant 0 : i32
    %c0_i32_0 = arith.constant 0 : i32
    %c0_i32_1 = arith.constant 0 : i32
    return %c0_i32, %c0_i32_0 : i32, i32
  }
  func.func @transform_15(%arg0: i32) -> (i32, i32) {
    %c0_i32 = arith.constant 0 : i32
    %c0_i32_0 = arith.constant 0 : i32
    %c0_i32_1 = arith.constant 0 : i32
    return %c0_i32, %c0_i32_0 : i32, i32
  }
  func.func @transform_16(%arg0: i32) -> (i32, i32) {
    %c0_i32 = arith.constant 0 : i32
    %c0_i32_0 = arith.constant 0 : i32
    %c0_i32_1 = arith.constant 0 : i32
    return %c0_i32, %c0_i32_0 : i32, i32
  }
  func.func @transform_17(%arg0: i32) -> (i32, i32) {
    %c0_i32 = arith.constant 0 : i32
    %c0_i32_0 = arith.constant 0 : i32
    %c0_i32_1 = arith.constant 0 : i32
    return %c0_i32, %c0_i32_0 : i32, i32
  }
  func.func @transform_18(%arg0: i32) -> (i32, i32) {
    %c0_i32 = arith.constant 0 : i32
    %c0_i32_0 = arith.constant 0 : i32
    %c0_i32_1 = arith.constant 0 : i32
    return %c0_i32, %c0_i32_0 : i32, i32
  }
  func.func @transform_19(%arg0: i32) -> (i32, i32) {
    %c0_i32 = arith.constant 0 : i32
    %c0_i32_0 = arith.constant 0 : i32
    %c0_i32_1 = arith.constant 0 : i32
    return %c0_i32, %c0_i32_0 : i32, i32
  }
  func.func @transform_20(%arg0: i32) -> (i32, i32) {
    %c0_i32 = arith.constant 0 : i32
    %c0_i32_0 = arith.constant 0 : i32
    return %arg0, %c0_i32 : i32, i32
  }
  func.func @transform_21(%arg0: i32) -> (i32, i32) {
    %c0_i32 = arith.constant 0 : i32
    %c0_i32_0 = arith.constant 0 : i32
    return %arg0, %c0_i32 : i32, i32
  }
}

module attributes {stable_mosaic.version = 11 : i64} {
  func.func @kernel(%arg0: i32, %arg1: memref<16x64xbf16, #tpu.memory_space<vmem>>, %arg2: memref<16x128xbf16, #tpu.memory_space<vmem>>, %arg3: memref<16x128xbf16, #tpu.memory_space<vmem>>, %arg4: memref<16x24xbf16, #tpu.memory_space<vmem>>, %arg5: memref<64x128xbf16, #tpu.memory_space<vmem>>, %arg6: memref<128x128xbf16, #tpu.memory_space<vmem>>, %arg7: memref<1x128xf32, #tpu.memory_space<vmem>>, %arg8: memref<128x128xbf16, #tpu.memory_space<vmem>>, %arg9: memref<1x128xf32, #tpu.memory_space<vmem>>, %arg10: memref<128x128xbf16, #tpu.memory_space<vmem>>, %arg11: memref<1x128xf32, #tpu.memory_space<vmem>>, %arg12: memref<128x128xbf16, #tpu.memory_space<vmem>>, %arg13: memref<1x128xf32, #tpu.memory_space<vmem>>, %arg14: memref<128x128xbf16, #tpu.memory_space<vmem>>, %arg15: memref<1x128xf32, #tpu.memory_space<vmem>>, %arg16: memref<128x128xbf16, #tpu.memory_space<vmem>>, %arg17: memref<1x128xf32, #tpu.memory_space<vmem>>, %arg18: memref<128x128xbf16, #tpu.memory_space<vmem>>, %arg19: memref<1x128xf32, #tpu.memory_space<vmem>>, %arg20: memref<24x128xbf16, #tpu.memory_space<vmem>>, %arg21: memref<16x128xbf16, #tpu.memory_space<vmem>>, %arg22: memref<16x128xbf16, #tpu.memory_space<vmem>>) attributes {dimension_semantics = [#tpu.dimension_semantics<parallel>], iteration_bounds = array<i64: 1>, scalar_prefetch = 0 : i64, scratch_operands = 0 : i64, tpu.core_type = #tpu.core_type<tc>, window_params = [{transform_indices = @transform_0, window_bounds = array<i64: 16, 64>}, {transform_indices = @transform_1, window_bounds = array<i64: 16, 128>}, {transform_indices = @transform_2, window_bounds = array<i64: 16, 128>}, {transform_indices = @transform_3, window_bounds = array<i64: 16, 24>}, {pipeline_mode = #tpu.pipeline_mode<synchronous>, transform_indices = @transform_4, window_bounds = array<i64: 64, 128>}, {pipeline_mode = #tpu.pipeline_mode<synchronous>, transform_indices = @transform_5, window_bounds = array<i64: 128, 128>}, {pipeline_mode = #tpu.pipeline_mode<synchronous>, transform_indices = @transform_6, window_bounds = array<i64: 1, 128>}, {pipeline_mode = #tpu.pipeline_mode<synchronous>, transform_indices = @transform_7, window_bounds = array<i64: 128, 128>}, {pipeline_mode = #tpu.pipeline_mode<synchronous>, transform_indices = @transform_8, window_bounds = array<i64: 1, 128>}, {pipeline_mode = #tpu.pipeline_mode<synchronous>, transform_indices = @transform_9, window_bounds = array<i64: 128, 128>}, {pipeline_mode = #tpu.pipeline_mode<synchronous>, transform_indices = @transform_10, window_bounds = array<i64: 1, 128>}, {pipeline_mode = #tpu.pipeline_mode<synchronous>, transform_indices = @transform_11, window_bounds = array<i64: 128, 128>}, {pipeline_mode = #tpu.pipeline_mode<synchronous>, transform_indices = @transform_12, window_bounds = array<i64: 1, 128>}, {pipeline_mode = #tpu.pipeline_mode<synchronous>, transform_indices = @transform_13, window_bounds = array<i64: 128, 128>}, {pipeline_mode = #tpu.pipeline_mode<synchronous>, transform_indices = @transform_14, window_bounds = array<i64: 1, 128>}, {pipeline_mode = #tpu.pipeline_mode<synchronous>, transform_indices = @transform_15, window_bounds = array<i64: 128, 128>}, {pipeline_mode = #tpu.pipeline_mode<synchronous>, transform_indices = @transform_16, window_bounds = array<i64: 1, 128>}, {pipeline_mode = #tpu.pipeline_mode<synchronous>, transform_indices = @transform_17, window_bounds = array<i64: 128, 128>}, {pipeline_mode = #tpu.pipeline_mode<synchronous>, transform_indices = @transform_18, window_bounds = array<i64: 1, 128>}, {pipeline_mode = #tpu.pipeline_mode<synchronous>, transform_indices = @transform_19, window_bounds = array<i64: 24, 128>}, {transform_indices = @transform_20, window_bounds = array<i64: 16, 128>}, {transform_indices = @transform_21, window_bounds = array<i64: 16, 128>}]} {
    %c0 = arith.constant 0 : index
    %c0_0 = arith.constant 0 : index
    %0 = vector.load %arg1[%c0, %c0_0] : memref<16x64xbf16, #tpu.memory_space<vmem>>, vector<16x64xbf16>
    %c0_1 = arith.constant 0 : index
    %c0_2 = arith.constant 0 : index
    %1 = vector.load %arg2[%c0_1, %c0_2] : memref<16x128xbf16, #tpu.memory_space<vmem>>, vector<16x128xbf16>
    %c0_3 = arith.constant 0 : index
    %c0_4 = arith.constant 0 : index
    %2 = vector.load %arg3[%c0_3, %c0_4] : memref<16x128xbf16, #tpu.memory_space<vmem>>, vector<16x128xbf16>
    %c0_5 = arith.constant 0 : index
    %c0_6 = arith.constant 0 : index
    %3 = vector.load %arg4[%c0_5, %c0_6] : memref<16x24xbf16, #tpu.memory_space<vmem>>, vector<16x24xbf16>
    %c0_7 = arith.constant 0 : index
    %c0_8 = arith.constant 0 : index
    %4 = vector.load %arg5[%c0_7, %c0_8] : memref<64x128xbf16, #tpu.memory_space<vmem>>, vector<64x128xbf16>
    %c0_9 = arith.constant 0 : index
    %c0_10 = arith.constant 0 : index
    %5 = vector.load %arg6[%c0_9, %c0_10] : memref<128x128xbf16, #tpu.memory_space<vmem>>, vector<128x128xbf16>
    %c0_11 = arith.constant 0 : index
    %c0_12 = arith.constant 0 : index
    %6 = vector.load %arg7[%c0_11, %c0_12] : memref<1x128xf32, #tpu.memory_space<vmem>>, vector<1x128xf32>
    %c0_13 = arith.constant 0 : index
    %c0_14 = arith.constant 0 : index
    %7 = vector.load %arg8[%c0_13, %c0_14] : memref<128x128xbf16, #tpu.memory_space<vmem>>, vector<128x128xbf16>
    %c0_15 = arith.constant 0 : index
    %c0_16 = arith.constant 0 : index
    %8 = vector.load %arg9[%c0_15, %c0_16] : memref<1x128xf32, #tpu.memory_space<vmem>>, vector<1x128xf32>
    %c0_17 = arith.constant 0 : index
    %c0_18 = arith.constant 0 : index
    %9 = vector.load %arg10[%c0_17, %c0_18] : memref<128x128xbf16, #tpu.memory_space<vmem>>, vector<128x128xbf16>
    %c0_19 = arith.constant 0 : index
    %c0_20 = arith.constant 0 : index
    %10 = vector.load %arg11[%c0_19, %c0_20] : memref<1x128xf32, #tpu.memory_space<vmem>>, vector<1x128xf32>
    %c0_21 = arith.constant 0 : index
    %c0_22 = arith.constant 0 : index
    %11 = vector.load %arg12[%c0_21, %c0_22] : memref<128x128xbf16, #tpu.memory_space<vmem>>, vector<128x128xbf16>
    %c0_23 = arith.constant 0 : index
    %c0_24 = arith.constant 0 : index
    %12 = vector.load %arg13[%c0_23, %c0_24] : memref<1x128xf32, #tpu.memory_space<vmem>>, vector<1x128xf32>
    %c0_25 = arith.constant 0 : index
    %c0_26 = arith.constant 0 : index
    %13 = vector.load %arg14[%c0_25, %c0_26] : memref<128x128xbf16, #tpu.memory_space<vmem>>, vector<128x128xbf16>
    %c0_27 = arith.constant 0 : index
    %c0_28 = arith.constant 0 : index
    %14 = vector.load %arg15[%c0_27, %c0_28] : memref<1x128xf32, #tpu.memory_space<vmem>>, vector<1x128xf32>
    %c0_29 = arith.constant 0 : index
    %c0_30 = arith.constant 0 : index
    %15 = vector.load %arg16[%c0_29, %c0_30] : memref<128x128xbf16, #tpu.memory_space<vmem>>, vector<128x128xbf16>
    %c0_31 = arith.constant 0 : index
    %c0_32 = arith.constant 0 : index
    %16 = vector.load %arg17[%c0_31, %c0_32] : memref<1x128xf32, #tpu.memory_space<vmem>>, vector<1x128xf32>
    %c0_33 = arith.constant 0 : index
    %c0_34 = arith.constant 0 : index
    %17 = vector.load %arg18[%c0_33, %c0_34] : memref<128x128xbf16, #tpu.memory_space<vmem>>, vector<128x128xbf16>
    %c0_35 = arith.constant 0 : index
    %c0_36 = arith.constant 0 : index
    %18 = vector.load %arg19[%c0_35, %c0_36] : memref<1x128xf32, #tpu.memory_space<vmem>>, vector<1x128xf32>
    %c0_37 = arith.constant 0 : index
    %c0_38 = arith.constant 0 : index
    %19 = vector.load %arg20[%c0_37, %c0_38] : memref<24x128xbf16, #tpu.memory_space<vmem>>, vector<24x128xbf16>
    %cst = arith.constant dense<0.000000e+00> : vector<16x128xf32>
    %20 = tpu.matmul %0, %4, %cst {dimension_numbers = #tpu.dot_dimension_numbers<[1], [0], [0], [1], [0, 0, 1, 1], [], []>} : vector<16x64xbf16>, vector<64x128xbf16>, vector<16x128xf32> -> vector<16x128xf32>
    %21 = arith.negf %20 : vector<16x128xf32>
    %22 = math.exp %21 : vector<16x128xf32>
    %cst_39 = arith.constant 1.000000e+00 : f32
    %23 = vector.broadcast %cst_39 : f32 to vector<16x128xf32>
    %24 = arith.addf %23, %22 : vector<16x128xf32>
    %25 = arith.divf %23, %24 : vector<16x128xf32>
    %26 = arith.mulf %20, %25 : vector<16x128xf32>
    %27 = arith.extf %1 : vector<16x128xbf16> to vector<16x128xf32>
    %28 = arith.addf %27, %26 : vector<16x128xf32>
    %29 = arith.truncf %28 : vector<16x128xf32> to vector<16x128xbf16>
    %cst_40 = arith.constant dense<0.000000e+00> : vector<16x128xf32>
    %30 = tpu.matmul %29, %5, %cst_40 {dimension_numbers = #tpu.dot_dimension_numbers<[1], [0], [0], [1], [0, 0, 1, 1], [], []>} : vector<16x128xbf16>, vector<128x128xbf16>, vector<16x128xf32> -> vector<16x128xf32>
    %31 = vector.broadcast %6 : vector<1x128xf32> to vector<16x128xf32>
    %32 = arith.addf %30, %31 : vector<16x128xf32>
    %33 = arith.negf %32 : vector<16x128xf32>
    %34 = math.exp %33 : vector<16x128xf32>
    %cst_41 = arith.constant 1.000000e+00 : f32
    %35 = vector.broadcast %cst_41 : f32 to vector<16x128xf32>
    %36 = arith.addf %35, %34 : vector<16x128xf32>
    %37 = arith.divf %35, %36 : vector<16x128xf32>
    %38 = arith.mulf %32, %37 : vector<16x128xf32>
    %39 = arith.truncf %38 : vector<16x128xf32> to vector<16x128xbf16>
    %cst_42 = arith.constant dense<0.000000e+00> : vector<16x128xf32>
    %40 = tpu.matmul %39, %7, %cst_42 {dimension_numbers = #tpu.dot_dimension_numbers<[1], [0], [0], [1], [0, 0, 1, 1], [], []>} : vector<16x128xbf16>, vector<128x128xbf16>, vector<16x128xf32> -> vector<16x128xf32>
    %41 = vector.broadcast %8 : vector<1x128xf32> to vector<16x128xf32>
    %42 = arith.addf %40, %41 : vector<16x128xf32>
    %43 = arith.negf %42 : vector<16x128xf32>
    %44 = math.exp %43 : vector<16x128xf32>
    %cst_43 = arith.constant 1.000000e+00 : f32
    %45 = vector.broadcast %cst_43 : f32 to vector<16x128xf32>
    %46 = arith.addf %45, %44 : vector<16x128xf32>
    %47 = arith.divf %45, %46 : vector<16x128xf32>
    %48 = arith.mulf %42, %47 : vector<16x128xf32>
    %49 = arith.addf %28, %48 : vector<16x128xf32>
    %50 = arith.truncf %49 : vector<16x128xf32> to vector<16x128xbf16>
    %cst_44 = arith.constant dense<0.000000e+00> : vector<16x128xf32>
    %51 = tpu.matmul %50, %9, %cst_44 {dimension_numbers = #tpu.dot_dimension_numbers<[1], [0], [0], [1], [0, 0, 1, 1], [], []>} : vector<16x128xbf16>, vector<128x128xbf16>, vector<16x128xf32> -> vector<16x128xf32>
    %52 = vector.broadcast %10 : vector<1x128xf32> to vector<16x128xf32>
    %53 = arith.addf %51, %52 : vector<16x128xf32>
    %54 = arith.negf %53 : vector<16x128xf32>
    %55 = math.exp %54 : vector<16x128xf32>
    %cst_45 = arith.constant 1.000000e+00 : f32
    %56 = vector.broadcast %cst_45 : f32 to vector<16x128xf32>
    %57 = arith.addf %56, %55 : vector<16x128xf32>
    %58 = arith.divf %56, %57 : vector<16x128xf32>
    %59 = arith.mulf %53, %58 : vector<16x128xf32>
    %60 = arith.extf %2 : vector<16x128xbf16> to vector<16x128xf32>
    %61 = arith.addf %59, %60 : vector<16x128xf32>
    %62 = arith.truncf %61 : vector<16x128xf32> to vector<16x128xbf16>
    %cst_46 = arith.constant dense<0.000000e+00> : vector<16x128xf32>
    %63 = tpu.matmul %62, %11, %cst_46 {dimension_numbers = #tpu.dot_dimension_numbers<[1], [0], [0], [1], [0, 0, 1, 1], [], []>} : vector<16x128xbf16>, vector<128x128xbf16>, vector<16x128xf32> -> vector<16x128xf32>
    %64 = vector.broadcast %12 : vector<1x128xf32> to vector<16x128xf32>
    %65 = arith.addf %63, %64 : vector<16x128xf32>
    %66 = arith.negf %65 : vector<16x128xf32>
    %67 = math.exp %66 : vector<16x128xf32>
    %cst_47 = arith.constant 1.000000e+00 : f32
    %68 = vector.broadcast %cst_47 : f32 to vector<16x128xf32>
    %69 = arith.addf %68, %67 : vector<16x128xf32>
    %70 = arith.divf %68, %69 : vector<16x128xf32>
    %71 = arith.mulf %65, %70 : vector<16x128xf32>
    %72 = arith.truncf %71 : vector<16x128xf32> to vector<16x128xbf16>
    %cst_48 = arith.constant dense<0.000000e+00> : vector<16x128xf32>
    %73 = tpu.matmul %72, %13, %cst_48 {dimension_numbers = #tpu.dot_dimension_numbers<[1], [0], [0], [1], [0, 0, 1, 1], [], []>} : vector<16x128xbf16>, vector<128x128xbf16>, vector<16x128xf32> -> vector<16x128xf32>
    %74 = vector.broadcast %14 : vector<1x128xf32> to vector<16x128xf32>
    %75 = arith.addf %73, %74 : vector<16x128xf32>
    %76 = arith.negf %75 : vector<16x128xf32>
    %77 = math.exp %76 : vector<16x128xf32>
    %cst_49 = arith.constant 1.000000e+00 : f32
    %78 = vector.broadcast %cst_49 : f32 to vector<16x128xf32>
    %79 = arith.addf %78, %77 : vector<16x128xf32>
    %80 = arith.divf %78, %79 : vector<16x128xf32>
    %81 = arith.mulf %75, %80 : vector<16x128xf32>
    %82 = arith.addf %61, %81 : vector<16x128xf32>
    %83 = arith.truncf %82 : vector<16x128xf32> to vector<16x128xbf16>
    %cst_50 = arith.constant dense<0.000000e+00> : vector<16x128xf32>
    %84 = tpu.matmul %83, %15, %cst_50 {dimension_numbers = #tpu.dot_dimension_numbers<[1], [0], [0], [1], [0, 0, 1, 1], [], []>} : vector<16x128xbf16>, vector<128x128xbf16>, vector<16x128xf32> -> vector<16x128xf32>
    %85 = vector.broadcast %16 : vector<1x128xf32> to vector<16x128xf32>
    %86 = arith.addf %84, %85 : vector<16x128xf32>
    %87 = arith.negf %86 : vector<16x128xf32>
    %88 = math.exp %87 : vector<16x128xf32>
    %cst_51 = arith.constant 1.000000e+00 : f32
    %89 = vector.broadcast %cst_51 : f32 to vector<16x128xf32>
    %90 = arith.addf %89, %88 : vector<16x128xf32>
    %91 = arith.divf %89, %90 : vector<16x128xf32>
    %92 = arith.mulf %86, %91 : vector<16x128xf32>
    %93 = arith.truncf %92 : vector<16x128xf32> to vector<16x128xbf16>
    %cst_52 = arith.constant dense<0.000000e+00> : vector<16x128xf32>
    %94 = tpu.matmul %93, %17, %cst_52 {dimension_numbers = #tpu.dot_dimension_numbers<[1], [0], [0], [1], [0, 0, 1, 1], [], []>} : vector<16x128xbf16>, vector<128x128xbf16>, vector<16x128xf32> -> vector<16x128xf32>
    %95 = vector.broadcast %18 : vector<1x128xf32> to vector<16x128xf32>
    %96 = arith.addf %94, %95 : vector<16x128xf32>
    %97 = arith.negf %96 : vector<16x128xf32>
    %98 = math.exp %97 : vector<16x128xf32>
    %cst_53 = arith.constant 1.000000e+00 : f32
    %99 = vector.broadcast %cst_53 : f32 to vector<16x128xf32>
    %100 = arith.addf %99, %98 : vector<16x128xf32>
    %101 = arith.divf %99, %100 : vector<16x128xf32>
    %102 = arith.mulf %96, %101 : vector<16x128xf32>
    %103 = arith.addf %82, %102 : vector<16x128xf32>
    %cst_54 = arith.constant dense<0.000000e+00> : vector<16x128xf32>
    %104 = tpu.matmul %3, %19, %cst_54 {dimension_numbers = #tpu.dot_dimension_numbers<[1], [0], [0], [1], [0, 0, 1, 1], [], []>} : vector<16x24xbf16>, vector<24x128xbf16>, vector<16x128xf32> -> vector<16x128xf32>
    %105 = arith.mulf %104, %103 : vector<16x128xf32>
    %106 = arith.truncf %103 : vector<16x128xf32> to vector<16x128xbf16>
    %c0_55 = arith.constant 0 : index
    %c0_56 = arith.constant 0 : index
    %107 = vector.load %arg21[%c0_55, %c0_56] : memref<16x128xbf16, #tpu.memory_space<vmem>>, vector<16x128xbf16>
    tpu.vector_store %arg21[%c0_55, %c0_56], %106 {strides = array<i32>} : memref<16x128xbf16, #tpu.memory_space<vmem>>, vector<16x128xbf16>,
    %108 = arith.truncf %105 : vector<16x128xf32> to vector<16x128xbf16>
    %c0_57 = arith.constant 0 : index
    %c0_58 = arith.constant 0 : index
    %109 = vector.load %arg22[%c0_57, %c0_58] : memref<16x128xbf16, #tpu.memory_space<vmem>>, vector<16x128xbf16>
    tpu.vector_store %arg22[%c0_57, %c0_58], %108 {strides = array<i32>} : memref<16x128xbf16, #tpu.memory_space<vmem>>, vector<16x128xbf16>,
    return
  }
  func.func @transform_0(%arg0: i32) -> (i32, i32) {
    %c0_i32 = arith.constant 0 : i32
    %c0_i32_0 = arith.constant 0 : i32
    return %arg0, %c0_i32 : i32, i32
  }
  func.func @transform_1(%arg0: i32) -> (i32, i32) {
    %c0_i32 = arith.constant 0 : i32
    %c0_i32_0 = arith.constant 0 : i32
    return %arg0, %c0_i32 : i32, i32
  }
  func.func @transform_2(%arg0: i32) -> (i32, i32) {
    %c0_i32 = arith.constant 0 : i32
    %c0_i32_0 = arith.constant 0 : i32
    return %arg0, %c0_i32 : i32, i32
  }
  func.func @transform_3(%arg0: i32) -> (i32, i32) {
    %c0_i32 = arith.constant 0 : i32
    %c0_i32_0 = arith.constant 0 : i32
    return %arg0, %c0_i32 : i32, i32
  }
  func.func @transform_4(%arg0: i32) -> (i32, i32) {
    %c0_i32 = arith.constant 0 : i32
    %c0_i32_0 = arith.constant 0 : i32
    %c0_i32_1 = arith.constant 0 : i32
    return %c0_i32, %c0_i32_0 : i32, i32
  }
  func.func @transform_5(%arg0: i32) -> (i32, i32) {
    %c0_i32 = arith.constant 0 : i32
    %c0_i32_0 = arith.constant 0 : i32
    %c0_i32_1 = arith.constant 0 : i32
    return %c0_i32, %c0_i32_0 : i32, i32
  }
  func.func @transform_6(%arg0: i32) -> (i32, i32) {
    %c0_i32 = arith.constant 0 : i32
    %c0_i32_0 = arith.constant 0 : i32
    %c0_i32_1 = arith.constant 0 : i32
    return %c0_i32, %c0_i32_0 : i32, i32
  }
  func.func @transform_7(%arg0: i32) -> (i32, i32) {
    %c0_i32 = arith.constant 0 : i32
    %c0_i32_0 = arith.constant 0 : i32
    %c0_i32_1 = arith.constant 0 : i32
    return %c0_i32, %c0_i32_0 : i32, i32
  }
  func.func @transform_8(%arg0: i32) -> (i32, i32) {
    %c0_i32 = arith.constant 0 : i32
    %c0_i32_0 = arith.constant 0 : i32
    %c0_i32_1 = arith.constant 0 : i32
    return %c0_i32, %c0_i32_0 : i32, i32
  }
  func.func @transform_9(%arg0: i32) -> (i32, i32) {
    %c0_i32 = arith.constant 0 : i32
    %c0_i32_0 = arith.constant 0 : i32
    %c0_i32_1 = arith.constant 0 : i32
    return %c0_i32, %c0_i32_0 : i32, i32
  }
  func.func @transform_10(%arg0: i32) -> (i32, i32) {
    %c0_i32 = arith.constant 0 : i32
    %c0_i32_0 = arith.constant 0 : i32
    %c0_i32_1 = arith.constant 0 : i32
    return %c0_i32, %c0_i32_0 : i32, i32
  }
  func.func @transform_11(%arg0: i32) -> (i32, i32) {
    %c0_i32 = arith.constant 0 : i32
    %c0_i32_0 = arith.constant 0 : i32
    %c0_i32_1 = arith.constant 0 : i32
    return %c0_i32, %c0_i32_0 : i32, i32
  }
  func.func @transform_12(%arg0: i32) -> (i32, i32) {
    %c0_i32 = arith.constant 0 : i32
    %c0_i32_0 = arith.constant 0 : i32
    %c0_i32_1 = arith.constant 0 : i32
    return %c0_i32, %c0_i32_0 : i32, i32
  }
  func.func @transform_13(%arg0: i32) -> (i32, i32) {
    %c0_i32 = arith.constant 0 : i32
    %c0_i32_0 = arith.constant 0 : i32
    %c0_i32_1 = arith.constant 0 : i32
    return %c0_i32, %c0_i32_0 : i32, i32
  }
  func.func @transform_14(%arg0: i32) -> (i32, i32) {
    %c0_i32 = arith.constant 0 : i32
    %c0_i32_0 = arith.constant 0 : i32
    %c0_i32_1 = arith.constant 0 : i32
    return %c0_i32, %c0_i32_0 : i32, i32
  }
  func.func @transform_15(%arg0: i32) -> (i32, i32) {
    %c0_i32 = arith.constant 0 : i32
    %c0_i32_0 = arith.constant 0 : i32
    %c0_i32_1 = arith.constant 0 : i32
    return %c0_i32, %c0_i32_0 : i32, i32
  }
  func.func @transform_16(%arg0: i32) -> (i32, i32) {
    %c0_i32 = arith.constant 0 : i32
    %c0_i32_0 = arith.constant 0 : i32
    %c0_i32_1 = arith.constant 0 : i32
    return %c0_i32, %c0_i32_0 : i32, i32
  }
  func.func @transform_17(%arg0: i32) -> (i32, i32) {
    %c0_i32 = arith.constant 0 : i32
    %c0_i32_0 = arith.constant 0 : i32
    %c0_i32_1 = arith.constant 0 : i32
    return %c0_i32, %c0_i32_0 : i32, i32
  }
  func.func @transform_18(%arg0: i32) -> (i32, i32) {
    %c0_i32 = arith.constant 0 : i32
    %c0_i32_0 = arith.constant 0 : i32
    %c0_i32_1 = arith.constant 0 : i32
    return %c0_i32, %c0_i32_0 : i32, i32
  }
  func.func @transform_19(%arg0: i32) -> (i32, i32) {
    %c0_i32 = arith.constant 0 : i32
    %c0_i32_0 = arith.constant 0 : i32
    %c0_i32_1 = arith.constant 0 : i32
    return %c0_i32, %c0_i32_0 : i32, i32
  }
  func.func @transform_20(%arg0: i32) -> (i32, i32) {
    %c0_i32 = arith.constant 0 : i32
    %c0_i32_0 = arith.constant 0 : i32
    return %arg0, %c0_i32 : i32, i32
  }
  func.func @transform_21(%arg0: i32) -> (i32, i32) {
    %c0_i32 = arith.constant 0 : i32
    %c0_i32_0 = arith.constant 0 : i32
    return %arg0, %c0_i32 : i32, i32
  }
}

module attributes {stable_mosaic.version = 11 : i64} {
  func.func @kernel(%arg0: i32, %arg1: memref<16x128xbf16, #tpu.memory_space<vmem>>, %arg2: memref<128x128xbf16, #tpu.memory_space<vmem>>, %arg3: memref<1x128xf32, #tpu.memory_space<vmem>>, %arg4: memref<128x128xbf16, #tpu.memory_space<vmem>>, %arg5: memref<1x128xf32, #tpu.memory_space<vmem>>, %arg6: memref<128x128xbf16, #tpu.memory_space<vmem>>, %arg7: memref<1x128xf32, #tpu.memory_space<vmem>>, %arg8: memref<128x8xbf16, #tpu.memory_space<vmem>>, %arg9: memref<16x8xf32, #tpu.memory_space<vmem>>) attributes {dimension_semantics = [#tpu.dimension_semantics<parallel>], iteration_bounds = array<i64: 1>, scalar_prefetch = 0 : i64, scratch_operands = 0 : i64, tpu.core_type = #tpu.core_type<tc>, window_params = [{transform_indices = @transform_0, window_bounds = array<i64: 16, 128>}, {pipeline_mode = #tpu.pipeline_mode<synchronous>, transform_indices = @transform_1, window_bounds = array<i64: 128, 128>}, {pipeline_mode = #tpu.pipeline_mode<synchronous>, transform_indices = @transform_2, window_bounds = array<i64: 1, 128>}, {pipeline_mode = #tpu.pipeline_mode<synchronous>, transform_indices = @transform_3, window_bounds = array<i64: 128, 128>}, {pipeline_mode = #tpu.pipeline_mode<synchronous>, transform_indices = @transform_4, window_bounds = array<i64: 1, 128>}, {pipeline_mode = #tpu.pipeline_mode<synchronous>, transform_indices = @transform_5, window_bounds = array<i64: 128, 128>}, {pipeline_mode = #tpu.pipeline_mode<synchronous>, transform_indices = @transform_6, window_bounds = array<i64: 1, 128>}, {pipeline_mode = #tpu.pipeline_mode<synchronous>, transform_indices = @transform_7, window_bounds = array<i64: 128, 8>}, {transform_indices = @transform_8, window_bounds = array<i64: 16, 8>}]} {
    %c0 = arith.constant 0 : index
    %c0_0 = arith.constant 0 : index
    %0 = vector.load %arg1[%c0, %c0_0] : memref<16x128xbf16, #tpu.memory_space<vmem>>, vector<16x128xbf16>
    %c0_1 = arith.constant 0 : index
    %c0_2 = arith.constant 0 : index
    %1 = vector.load %arg2[%c0_1, %c0_2] : memref<128x128xbf16, #tpu.memory_space<vmem>>, vector<128x128xbf16>
    %c0_3 = arith.constant 0 : index
    %c0_4 = arith.constant 0 : index
    %2 = vector.load %arg3[%c0_3, %c0_4] : memref<1x128xf32, #tpu.memory_space<vmem>>, vector<1x128xf32>
    %c0_5 = arith.constant 0 : index
    %c0_6 = arith.constant 0 : index
    %3 = vector.load %arg4[%c0_5, %c0_6] : memref<128x128xbf16, #tpu.memory_space<vmem>>, vector<128x128xbf16>
    %c0_7 = arith.constant 0 : index
    %c0_8 = arith.constant 0 : index
    %4 = vector.load %arg5[%c0_7, %c0_8] : memref<1x128xf32, #tpu.memory_space<vmem>>, vector<1x128xf32>
    %c0_9 = arith.constant 0 : index
    %c0_10 = arith.constant 0 : index
    %5 = vector.load %arg6[%c0_9, %c0_10] : memref<128x128xbf16, #tpu.memory_space<vmem>>, vector<128x128xbf16>
    %c0_11 = arith.constant 0 : index
    %c0_12 = arith.constant 0 : index
    %6 = vector.load %arg7[%c0_11, %c0_12] : memref<1x128xf32, #tpu.memory_space<vmem>>, vector<1x128xf32>
    %c0_13 = arith.constant 0 : index
    %c0_14 = arith.constant 0 : index
    %7 = vector.load %arg8[%c0_13, %c0_14] : memref<128x8xbf16, #tpu.memory_space<vmem>>, vector<128x8xbf16>
    %cst = arith.constant dense<0.000000e+00> : vector<16x128xf32>
    %8 = tpu.matmul %0, %1, %cst {dimension_numbers = #tpu.dot_dimension_numbers<[1], [0], [0], [1], [0, 0, 1, 1], [], []>} : vector<16x128xbf16>, vector<128x128xbf16>, vector<16x128xf32> -> vector<16x128xf32>
    %9 = vector.broadcast %2 : vector<1x128xf32> to vector<16x128xf32>
    %10 = arith.addf %8, %9 : vector<16x128xf32>
    %11 = arith.truncf %10 : vector<16x128xf32> to vector<16x128xbf16>
    %cst_15 = arith.constant dense<0.000000e+00> : vector<16x128xf32>
    %12 = tpu.matmul %11, %3, %cst_15 {dimension_numbers = #tpu.dot_dimension_numbers<[1], [0], [0], [1], [0, 0, 1, 1], [], []>} : vector<16x128xbf16>, vector<128x128xbf16>, vector<16x128xf32> -> vector<16x128xf32>
    %13 = vector.broadcast %4 : vector<1x128xf32> to vector<16x128xf32>
    %14 = arith.addf %12, %13 : vector<16x128xf32>
    %15 = arith.negf %14 : vector<16x128xf32>
    %16 = math.exp %15 : vector<16x128xf32>
    %cst_16 = arith.constant 1.000000e+00 : f32
    %17 = vector.broadcast %cst_16 : f32 to vector<16x128xf32>
    %18 = arith.addf %17, %16 : vector<16x128xf32>
    %19 = arith.divf %17, %18 : vector<16x128xf32>
    %20 = arith.mulf %14, %19 : vector<16x128xf32>
    %21 = arith.truncf %20 : vector<16x128xf32> to vector<16x128xbf16>
    %cst_17 = arith.constant dense<0.000000e+00> : vector<16x128xf32>
    %22 = tpu.matmul %21, %5, %cst_17 {dimension_numbers = #tpu.dot_dimension_numbers<[1], [0], [0], [1], [0, 0, 1, 1], [], []>} : vector<16x128xbf16>, vector<128x128xbf16>, vector<16x128xf32> -> vector<16x128xf32>
    %23 = vector.broadcast %6 : vector<1x128xf32> to vector<16x128xf32>
    %24 = arith.addf %22, %23 : vector<16x128xf32>
    %25 = arith.negf %24 : vector<16x128xf32>
    %26 = math.exp %25 : vector<16x128xf32>
    %cst_18 = arith.constant 1.000000e+00 : f32
    %27 = vector.broadcast %cst_18 : f32 to vector<16x128xf32>
    %28 = arith.addf %27, %26 : vector<16x128xf32>
    %29 = arith.divf %27, %28 : vector<16x128xf32>
    %30 = arith.mulf %24, %29 : vector<16x128xf32>
    %31 = arith.truncf %30 : vector<16x128xf32> to vector<16x128xbf16>
    %cst_19 = arith.constant dense<0.000000e+00> : vector<16x8xf32>
    %32 = tpu.matmul %31, %7, %cst_19 {dimension_numbers = #tpu.dot_dimension_numbers<[1], [0], [0], [1], [0, 0, 1, 1], [], []>} : vector<16x128xbf16>, vector<128x8xbf16>, vector<16x8xf32> -> vector<16x8xf32>
    %c0_20 = arith.constant 0 : index
    %c0_21 = arith.constant 0 : index
    %33 = vector.load %arg9[%c0_20, %c0_21] : memref<16x8xf32, #tpu.memory_space<vmem>>, vector<16x8xf32>
    tpu.vector_store %arg9[%c0_20, %c0_21], %32 {strides = array<i32>} : memref<16x8xf32, #tpu.memory_space<vmem>>, vector<16x8xf32>,
    return
  }
  func.func @transform_0(%arg0: i32) -> (i32, i32) {
    %c0_i32 = arith.constant 0 : i32
    %c0_i32_0 = arith.constant 0 : i32
    return %arg0, %c0_i32 : i32, i32
  }
  func.func @transform_1(%arg0: i32) -> (i32, i32) {
    %c0_i32 = arith.constant 0 : i32
    %c0_i32_0 = arith.constant 0 : i32
    %c0_i32_1 = arith.constant 0 : i32
    return %c0_i32, %c0_i32_0 : i32, i32
  }
  func.func @transform_2(%arg0: i32) -> (i32, i32) {
    %c0_i32 = arith.constant 0 : i32
    %c0_i32_0 = arith.constant 0 : i32
    %c0_i32_1 = arith.constant 0 : i32
    return %c0_i32, %c0_i32_0 : i32, i32
  }
  func.func @transform_3(%arg0: i32) -> (i32, i32) {
    %c0_i32 = arith.constant 0 : i32
    %c0_i32_0 = arith.constant 0 : i32
    %c0_i32_1 = arith.constant 0 : i32
    return %c0_i32, %c0_i32_0 : i32, i32
  }
  func.func @transform_4(%arg0: i32) -> (i32, i32) {
    %c0_i32 = arith.constant 0 : i32
    %c0_i32_0 = arith.constant 0 : i32
    %c0_i32_1 = arith.constant 0 : i32
    return %c0_i32, %c0_i32_0 : i32, i32
  }
  func.func @transform_5(%arg0: i32) -> (i32, i32) {
    %c0_i32 = arith.constant 0 : i32
    %c0_i32_0 = arith.constant 0 : i32
    %c0_i32_1 = arith.constant 0 : i32
    return %c0_i32, %c0_i32_0 : i32, i32
  }
  func.func @transform_6(%arg0: i32) -> (i32, i32) {
    %c0_i32 = arith.constant 0 : i32
    %c0_i32_0 = arith.constant 0 : i32
    %c0_i32_1 = arith.constant 0 : i32
    return %c0_i32, %c0_i32_0 : i32, i32
  }
  func.func @transform_7(%arg0: i32) -> (i32, i32) {
    %c0_i32 = arith.constant 0 : i32
    %c0_i32_0 = arith.constant 0 : i32
    %c0_i32_1 = arith.constant 0 : i32
    return %c0_i32, %c0_i32_0 : i32, i32
  }
  func.func @transform_8(%arg0: i32) -> (i32, i32) {
    %c0_i32 = arith.constant 0 : i32
    %c0_i32_0 = arith.constant 0 : i32
    return %arg0, %c0_i32 : i32, i32
  }
}

</mosaic_0001>

<bundles_post_ra>
// kernel: dimenetpp_forward.12
= control target key start
LH: loop header
LB: loop body
LE: loop exit
PB: predicated region body
PF: predicated region fallthrough
CT: control target
= control target key end

     0   :  { %v713_v0 = vmov 0.0   ;;  %vm714_vm0 = vmmov 0   ;;  %vm331_vm1 = vcmask 1043456   ;;  %vm327_vm2 = vcmask 195584   ;;  %s898_s2 = inlined_call_operand.vmem [shape: bf16[128,128], index: 2, kind: input, shape index: {}]   ;;  %s899_s4 = inlined_call_operand.vmem [shape: bf16[128,128], index: 4, kind: input, shape index: {}]   ;;  %s900_s0 = inlined_call_operand.vmem [shape: bf16[16,128], index: 0, kind: input, shape index: {}]   ;;  %s901_s6 = inlined_call_operand.vmem [shape: bf16[24,128], index: 6, kind: input, shape index: {}]   ;;  %s902_s1 = inlined_call_operand.vmem [shape: bf16[16,24], index: 1, kind: input, shape index: {}]   ;;  %s903_s7 = inlined_call_operand.vmem [shape: bf16[128,64], index: 7, kind: input, shape index: {}]   ;;  %s904_s3 = inlined_call_operand.vmem [shape: f32[1,128], index: 3, kind: input, shape index: {}]   ;;  %s905_s5 = inlined_call_operand.vmem [shape: f32[1,128], index: 5, kind: input, shape index: {}]   ;;  %s906_s8 = inlined_call_operand.vmem [shape: bf16[16,128], index: 8, kind: output, shape index: {0}]   ;;  %s907_s9 = inlined_call_operand.vmem [shape: bf16[16,64], index: 9, kind: output, shape index: {1}]  }
   0x1   :  { %591 = vmatprep.subr.bf16.mxu0 %v713_v0  ;;  %611 = vmatprep.subr.bf16.mxu1 %v713_v0  ;;  %v661_v1 = vld [vmem:[%s898_s2 + $0x38] sm:$0xff]   ;;  %v663_v3 = vld [vmem:[%s898_s2 + $0x30] sm:$0xff]   ;;  %v665_v5 = vld [vmem:[%s898_s2 + $0x28] sm:$0xff]   ;;  %vm500_vm3 = vcmask 519168  }
   0x2   :  { %v662_v2 = vld [vmem:[%s899_s4 + $0x38] sm:$0xff]   ;;  %607 = vmatprep.mubr.msk.bf16.mxu0 %vm714_vm0, %v713_v0  ;;  %627 = vmatprep.mubr.msk.bf16.mxu1 %vm714_vm0, %v713_v0  ;;  %v664_v4 = vld [vmem:[%s899_s4 + $0x30] sm:$0xff]   ;;  %v666_v6 = vld [vmem:[%s899_s4 + $0x28] sm:$0xff]  }
   0x3   :  { %592 = vmatpush3.bf16.msra.mxu0 %v661_v1  ;;  %612 = vmatpush3.bf16.msra.mxu1 %v662_v2  ;;  %v667_v7 = vld [vmem:[%s898_s2 + $0x20] sm:$0xff]   ;;  %v669_v9 = vld [vmem:[%s898_s2 + $0x18] sm:$0xff]   ;;  %v671_v11 = vld [vmem:[%s898_s2 + $0x10] sm:$0xff]  }
   0x4   :  { %593 = vmatprep.subr.bf16.mxu0 %v713_v0  ;;  %613 = vmatprep.subr.bf16.mxu1 %v713_v0  ;;  %v668_v8 = vld [vmem:[%s899_s4 + $0x20] sm:$0xff]   ;;  %v670_v10 = vld [vmem:[%s899_s4 + $0x18] sm:$0xff]   ;;  %v672_v12 = vld [vmem:[%s899_s4 + $0x10] sm:$0xff]  }
   0x5   :  { %v673_v13 = vld [vmem:[%s898_s2 + $0x8] sm:$0xff]   ;;  %v675_v15 = vld [vmem:[%s898_s2] sm:$0xff]   ;;  %v681_v22 = vld [vmem:[%s903_s7 + $0x38] sm:$0xff]  }
   0x6   :  { %v674_v14 = vld [vmem:[%s899_s4 + $0x8] sm:$0xff]   ;;  %v676_v16 = vld [vmem:[%s899_s4] sm:$0xff]   ;;  %v682_v23 = vld [vmem:[%s903_s7 + $0x30] sm:$0xff]  }
   0x7   :  { %594 = vmatpush3.bf16.msra.mxu0 %v663_v3  ;;  %614 = vmatpush3.bf16.msra.mxu1 %v664_v4  ;;  %v678_v17 = vld [vmem:[%s901_s6 + $0x8] ss:$0 sps:$4 sm:$0xff]   ;;  %v677_v18 = vld [vmem:[%s900_s0] sm:$0xff]   ;;  %v685_v26 = vld [vmem:[%s903_s7 + $0x18] sm:$0xff]  }
   0x8   :  { %595 = vmatprep.subr.bf16.mxu0 %v713_v0  ;;  %615 = vmatprep.subr.bf16.mxu1 %v713_v0  ;;  %v333_v19 = vsel %vm331_vm1, %v678_v17, 0  ;;  %v679_v20 = vld [vmem:[%s901_s6] sm:$0xff]   ;;  %v683_v24 = vld [vmem:[%s903_s7 + $0x28] sm:$0xff]   ;;  %v686_v27 = vld [vmem:[%s903_s7 + $0x10] sm:$0xff]  }
   0x9   :  { %v680_v21 = vld [vmem:[%s902_s1] sm:$0xff]   ;;  %v687_v28 = vld [vmem:[%s903_s7 + $0x8] sm:$0xff]  }
   0xa   :  { %v684_v25 = vld [vmem:[%s903_s7 + $0x20] sm:$0xff]  }
   0xb   :  { %596 = vmatpush3.bf16.msra.mxu0 %v665_v5  ;;  %616 = vmatpush3.bf16.msra.mxu1 %v666_v6  ;;  %v688_v29 = vld [vmem:[%s903_s7] sm:$0xff]  }
   0xc   :  { %597 = vmatprep.subr.bf16.mxu0 %v713_v0  ;;  %617 = vmatprep.subr.bf16.mxu1 %v713_v0  ;;  %v511_v30 = vld [vmem:[%s904_s3] ss:$0 sm:$0xff] }
   0xd   :  { %v523_v31 = vld [vmem:[%s905_s5] ss:$0 sm:$0xff] }
   0xf   :  { %598 = vmatpush3.bf16.msra.mxu0 %v667_v7  ;;  %618 = vmatpush3.bf16.msra.mxu1 %v668_v8 }
  0x10   :  { %599 = vmatprep.subr.bf16.mxu0 %v713_v0  ;;  %619 = vmatprep.subr.bf16.mxu1 %v713_v0 }
  0x13   :  { %600 = vmatpush3.bf16.msra.mxu0 %v669_v9  ;;  %620 = vmatpush3.bf16.msra.mxu1 %v670_v10 }
  0x14   :  { %601 = vmatprep.subr.bf16.mxu0 %v713_v0  ;;  %621 = vmatprep.subr.bf16.mxu1 %v713_v0 }
  0x17   :  { %602 = vmatpush3.bf16.msra.mxu0 %v671_v11  ;;  %622 = vmatpush3.bf16.msra.mxu1 %v672_v12 }
  0x18   :  { %603 = vmatprep.subr.bf16.mxu0 %v713_v0  ;;  %623 = vmatprep.subr.bf16.mxu1 %v713_v0 }
  0x1b   :  { %604 = vmatpush3.bf16.msra.mxu0 %v673_v13  ;;  %624 = vmatpush3.bf16.msra.mxu1 %v674_v14 }
  0x1c   :  { %605 = vmatprep.subr.bf16.mxu0 %v713_v0  ;;  %625 = vmatprep.subr.bf16.mxu1 %v713_v0 }
  0x1f   :  { %606 = vmatpush3.bf16.msra.mxu0 %v675_v15  ;;  %626 = vmatpush3.bf16.msra.mxu1 %v676_v16 }
  0x20   :  { %631 = vmatprep.subr.bf16.mxu0 %v713_v0  ;;  %639 = vmatprep.subr.bf16.mxu1 %v713_v0 }
  0x22   :  { %608 = vmatmul.mubr.bf16.vlgmr.msra.gmra.mxu0 %v677_v18  ;;  %628 = vmatmul.mubr.bf16.vlgmr.msra.gmra.mxu1 %v677_v18 }
  0x23   :  { %632 = vmatpush3.bf16.msra.mxu0 %v333_v19  ;;  %635 = vmatprep.mubr.msk.bf16.mxu0 %vm714_vm0, %v713_v0 }
  0x24   :  { %633 = vmatprep.subr.bf16.mxu0 %v713_v0  ;;  %655 = vmatprep.mubr.msk.bf16.mxu1 %vm714_vm0, %v713_v0 }
  0x25   :  { %640 = vmatpush3.bf16.msra.mxu1 %v681_v22 }
  0x26   :  { %641 = vmatprep.subr.bf16.mxu1 %v713_v0 }
  0x27   :  { %634 = vmatpush3.bf16.msra.mxu0 %v679_v20 }
  0x29   :  { %642 = vmatpush3.bf16.msra.mxu1 %v682_v23 }
  0x2a   :  { %636 = vmatmul.mubr.msk.bf16.vlgmr.msra.gmra.mxu0 %vm327_vm2, %v680_v21  ;;  %643 = vmatprep.subr.bf16.mxu1 %v713_v0 }
  0x2d   :  { %644 = vmatpush3.bf16.msra.mxu1 %v683_v24 }
  0x2e   :  { %645 = vmatprep.subr.bf16.mxu1 %v713_v0 }
  0x31   :  { %646 = vmatpush3.bf16.msra.mxu1 %v684_v25 }
  0x32   :  { %647 = vmatprep.subr.bf16.mxu1 %v713_v0 }
  0x35   :  { %648 = vmatpush3.bf16.msra.mxu1 %v685_v26 }
  0x36   :  { %649 = vmatprep.subr.bf16.mxu1 %v713_v0 }
  0x39   :  { %650 = vmatpush3.bf16.msra.mxu1 %v686_v27 }
  0x3a   :  { %651 = vmatprep.subr.bf16.mxu1 %v713_v0 }
  0x3d   :  { %652 = vmatpush3.bf16.msra.mxu1 %v687_v28 }
  0x3e   :  { %653 = vmatprep.subr.bf16.mxu1 %v713_v0 }
  0x41   :  { %654 = vmatpush3.bf16.msra.mxu1 %v688_v29 }
  0xe2   :  { %v183_v32 = vpop.f32.mrf.mxu0  ;;  %v292_v34 = vpop.f32.mrf.mxu1 }
  0xe3   :  { %v184_v33 = vadd.f32 %v511_v30, %v183_v32  ;;  %v293_v35 = vadd.f32 %v523_v31, %v292_v34 }
  0xe4   :  { %v609_v36 = vpop.f32.mrf.mxu0  ;;  %v629_v38 = vpop.f32.mrf.mxu1 }
  0xe5   :  { %v521_v37 = vmul.f32 -1.442695, %v184_v33  ;;  %v532_v39 = vmul.f32 -1.442695, %v293_v35 }
  0xe6   :  { %v186_v40 = vpop.f32.mrf.mxu0  ;;  %v295_v42 = vpop.f32.mrf.mxu1 }
  0xe7   :  { %689 = vpow2.f32 %v521_v37  ;;  %v187_v41 = vadd.f32 %v511_v30, %v186_v40  ;;  %v296_v43 = vadd.f32 %v523_v31, %v295_v42 }
  0xe8   :  { %691 = vpow2.f32 %v532_v39  ;;  %v610_v44 = vpop.f32.mrf.mxu0  ;;  %v630_v46 = vpop.f32.mrf.mxu1 }
  0xe9   :  { %v522_v45 = vmul.f32 -1.442695, %v187_v41  ;;  %v533_v47 = vmul.f32 -1.442695, %v296_v43 }
  0xea   :  { %v369_v48 = vpop.f32.mrf.mxu0 }
  0xeb   :  { %693 = vpow2.f32 %v522_v45 }
  0xec   :  { %695 = vpow2.f32 %v533_v47  ;;  %v637_v49 = vpop.f32.mrf.mxu0 }
  0xee   :  { %v372_v50 = vpop.f32.mrf.mxu0 }
  0xf0   :  { %v638_v51 = vpop.f32.mrf.mxu0 }
  0xf4   :  { %v690_v52 = vpop.eup %689 }
  0xf5   :  { %v692_v53 = vpop.eup %691  ;;  %v196_v54 = vadd.f32 1.0, %v690_v52 }
  0xf6   :  { %v305_v55 = vadd.f32 1.0, %v692_v53 }
  0xf8   :  { %v694_v56 = vpop.eup %693  ;;  %697 = vrcp.f32 %v305_v55 }
  0xf9   :  { %v696_v57 = vpop.eup %695  ;;  %699 = vrcp.f32 %v196_v54  ;;  %v197_v58 = vadd.f32 1.0, %v694_v56 }
  0xfa   :  { %v306_v59 = vadd.f32 1.0, %v696_v57 }
  0xfb   :  { %701 = vrcp.f32 %v197_v58 }
  0xfc   :  { %703 = vrcp.f32 %v306_v59 }
 0x105   :  { %v698_v60 = vpop.eup %697 }
 0x106   :  { %v700_v61 = vpop.eup %699  ;;  %v311_v63 = vmul.f32 %v698_v60, %v293_v35 }
 0x107   :  { %v202_v1 = vmul.f32 %v700_v61, %v184_v33 }
 0x108   :  { %v702_v62 = vpop.eup %701  ;;  %v376_v5 = vmul.f32 %v369_v48, %v311_v63 }
 0x109   :  { %v704_v0 = vpop.eup %703  ;;  %v203_v2 = vmul.f32 %v702_v62, %v187_v41 }
 0x10a   :  { %v312_v3 = vmul.f32 %v704_v0, %v296_v43 }
 0x10b   :  { %v559_v4 = vpack.c.bf16 %v203_v2, %v202_v1 }
 0x10c   :  { %v377_v6 = vmul.f32 %v372_v50, %v312_v3 }
 0x10d   :  { %560 = vst [vmem:[%s906_s8] sm:$0xff] %v559_v4  }
 0x10e   :  { %v378_v7 = vpack.c.bf16 %v377_v6, %v376_v5 }
 0x110   :  { %656 = vmatmul.mubr.bf16.vlgmr.msra.gmra.mxu1 %v378_v7 }
 0x1d0   :  { %v461_v8 = vpop.f32.mrf.mxu1 }
 0x1d1   :  { %v546_v9 = vmul.f32 -1.442695, %v461_v8 }
 0x1d2   :  { %v657_v10 = vpop.f32.mrf.mxu1 }
 0x1d3   :  { %705 = vpow2.f32 %v546_v9 }
 0x1d4   :  { %v464_v11 = vpop.f32.mrf.mxu1 }
 0x1d5   :  { %v547_v12 = vmul.f32 -1.442695, %v464_v11 }
 0x1d6   :  { %v658_v13 = vpop.f32.mrf.mxu1 }
 0x1d7   :  { %707 = vpow2.f32 %v547_v12 }
 0x1e0   :  { %v706_v14 = vpop.eup %705 }
 0x1e1   :  { %v474_v15 = vadd.f32 1.0, %v706_v14 }
 0x1e3   :  { %709 = vrcp.f32 %v474_v15 }
 0x1e4   :  { %v708_v16 = vpop.eup %707 }
 0x1e5   :  { %v475_v17 = vadd.f32 1.0, %v708_v16 }
 0x1e7   :  { %711 = vrcp.f32 %v475_v17 }
 0x1f0   :  { %v710_v18 = vpop.eup %709 }
 0x1f1   :  { %v480_v19 = vmul.f32 %v710_v18, %v461_v8 }
 0x1f3   :  { %v554_v20 = vpack.c.bf16 %v480_v19, %v480_v19 }
 0x1f4   :  { %v712_v21 = vpop.eup %711 }
 0x1f5   :  { %501 = vst.msk [vmem:[%s907_s9] sm:$0xf] %vm500_vm3, %v554_v20  ;;  %v481_v22 = vmul.f32 %v712_v21, %v464_v11 }
 0x1f7   :  { %v555_v23 = vpack.c.bf16 %v481_v22, %v481_v22 }
 0x1f9   :  { %502 = vst.msk [vmem:[%s907_s9 + $0x4] sm:$0xf] %vm500_vm3, %v555_v23 }

// kernel: dimenetpp_forward.10
= control target key start
LH: loop header
LB: loop body
LE: loop exit
PB: predicated region body
PF: predicated region fallthrough
CT: control target
= control target key end

     0   :  { %vm124_vm0 = vcmask 1043456   ;;  %v785_v0 = vmov 0.0   ;;  %vm786_vm1 = vmmov 0   ;;  %vm120_vm2 = vcmask 195584   ;;  %s998_s3 = inlined_call_operand.vmem [shape: bf16[24,128], index: 3, kind: input, shape index: {}]   ;;  %s999_s9 = inlined_call_operand.vmem [shape: bf16[24,128], index: 9, kind: input, shape index: {}]   ;;  %s1000_s2 = inlined_call_operand.vmem [shape: bf16[16,24], index: 2, kind: input, shape index: {}]   ;;  %s1001_s6 = inlined_call_operand.vmem [shape: bf16[128,128], index: 6, kind: input, shape index: {}]   ;;  %s1002_s5 = inlined_call_operand.vmem [shape: bf16[128,128], index: 5, kind: input, shape index: {}]   ;;  %s1003_s1 = inlined_call_operand.vmem [shape: bf16[16,128], index: 1, kind: input, shape index: {}]   ;;  %s1004_s0 = inlined_call_operand.vmem [shape: bf16[16,128], index: 0, kind: input, shape index: {}]   ;;  %s1005_s7 = inlined_call_operand.vmem [shape: bf16[128,128], index: 7, kind: input, shape index: {}]   ;;  %s1006_s4 = inlined_call_operand.vmem [shape: f32[1,128], index: 4, kind: input, shape index: {}]   ;;  %s1007_s8 = inlined_call_operand.vmem [shape: f32[1,128], index: 8, kind: input, shape index: {}]   ;;  %s1008_s10 = inlined_call_operand.vmem [shape: bf16[16,128], index: 10, kind: output, shape index: {0}]   ;;  %s1009_s11 = inlined_call_operand.vmem [shape: bf16[16,128], index: 11, kind: output, shape index: {1}]  }
   0x1   :  { %660 = vmatprep.subr.bf16.mxu0 %v785_v0  ;;  %v738_v1 = vld [vmem:[%s998_s3 + $0x8] ss:$0 sps:$4 sm:$0xff]   ;;  %664 = vmatprep.mubr.msk.bf16.mxu0 %vm786_vm1, %v785_v0  ;;  %v740_v3 = vld [vmem:[%s998_s3] sm:$0xff]   ;;  %v742_v4 = vld [vmem:[%s1001_s6 + $0x38] sm:$0xff]  }
   0x2   :  { %668 = vmatprep.subr.bf16.mxu1 %v785_v0  ;;  %684 = vmatprep.mubr.msk.bf16.mxu1 %vm786_vm1, %v785_v0  ;;  %v126_v2 = vsel %vm124_vm0, %v738_v1, 0  ;;  %v867_v5 = vld [vmem:[%s1000_s2] sm:$0xff]   ;;  %v744_v6 = vld [vmem:[%s1001_s6 + $0x30] sm:$0xff]   ;;  %v743_v7 = vld [vmem:[%s1002_s5 + $0x38] sm:$0xff]  }
   0x3   :  { %661 = vmatpush3.bf16.msra.mxu0 %v126_v2  ;;  %669 = vmatpush3.bf16.msra.mxu1 %v742_v4  ;;  %v746_v8 = vld [vmem:[%s1001_s6 + $0x28] sm:$0xff]   ;;  %v745_v9 = vld [vmem:[%s1002_s5 + $0x30] sm:$0xff]   ;;  %v748_v10 = vld [vmem:[%s1001_s6 + $0x20] sm:$0xff]  }
   0x4   :  { %662 = vmatprep.subr.bf16.mxu0 %v785_v0  ;;  %670 = vmatprep.subr.bf16.mxu1 %v785_v0  ;;  %v747_v11 = vld [vmem:[%s1002_s5 + $0x28] sm:$0xff]   ;;  %v750_v12 = vld [vmem:[%s1001_s6 + $0x18] sm:$0xff]   ;;  %v749_v13 = vld [vmem:[%s1002_s5 + $0x20] sm:$0xff]  }
   0x5   :  { %v752_v14 = vld [vmem:[%s1001_s6 + $0x10] sm:$0xff]   ;;  %v751_v15 = vld [vmem:[%s1002_s5 + $0x18] sm:$0xff]   ;;  %v754_v16 = vld [vmem:[%s1001_s6 + $0x8] sm:$0xff]  }
   0x6   :  { %v753_v17 = vld [vmem:[%s1002_s5 + $0x10] sm:$0xff]   ;;  %v755_v18 = vld [vmem:[%s1002_s5 + $0x8] sm:$0xff]   ;;  %v756_v19 = vld [vmem:[%s1001_s6] sm:$0xff]  }
   0x7   :  { %663 = vmatpush3.bf16.msra.mxu0 %v740_v3  ;;  %671 = vmatpush3.bf16.msra.mxu1 %v744_v6  ;;  %v739_v20 = vld [vmem:[%s999_s9 + $0x8] ss:$0 sps:$4 sm:$0xff]   ;;  %v757_v21 = vld [vmem:[%s1002_s5] sm:$0xff]   ;;  %v760_v25 = vld [vmem:[%s1005_s7 + $0x38] sm:$0xff]  }
   0x8   :  { %688 = vmatprep.subr.bf16.mxu0 %v785_v0  ;;  %672 = vmatprep.subr.bf16.mxu1 %v785_v0  ;;  %v758_v22 = vld [vmem:[%s1003_s1] sm:$0xff]   ;;  %v497_v23 = vsel %vm124_vm0, %v739_v20, 0  ;;  %v761_v26 = vld [vmem:[%s1005_s7 + $0x30] sm:$0xff]   ;;  %v762_v27 = vld [vmem:[%s1005_s7 + $0x28] sm:$0xff]  }
   0x9   :  { %v759_v24 = vld [vmem:[%s1004_s0] sm:$0xff]   ;;  %v764_v29 = vld [vmem:[%s1005_s7 + $0x18] sm:$0xff]   ;;  %v765_v30 = vld [vmem:[%s1005_s7 + $0x10] sm:$0xff]  }
   0xa   :  { %665 = vmatmul.mubr.msk.bf16.vlgmr.msra.gmra.mxu0 %vm120_vm2, %v867_v5  ;;  %v763_v28 = vld [vmem:[%s1005_s7 + $0x20] sm:$0xff]   ;;  %v766_v31 = vld [vmem:[%s1005_s7 + $0x8] sm:$0xff]  }
   0xb   :  { %689 = vmatpush3.bf16.msra.mxu0 %v743_v7  ;;  %704 = vmatprep.mubr.msk.bf16.mxu0 %vm786_vm1, %v785_v0  ;;  %v767_v32 = vld [vmem:[%s1005_s7] sm:$0xff]  }
   0xc   :  { %690 = vmatprep.subr.bf16.mxu0 %v785_v0  ;;  %673 = vmatpush3.bf16.msra.mxu1 %v746_v8  ;;  %v768_v33 = vld [vmem:[%s999_s9] sm:$0xff]  }
   0xd   :  { %674 = vmatprep.subr.bf16.mxu1 %v785_v0  ;;  %v570_v34 = vld [vmem:[%s1006_s4] ss:$0 sm:$0xff] }
   0xe   :  { %v603_v2 = vld [vmem:[%s1007_s8] ss:$0 sm:$0xff] }
   0xf   :  { %691 = vmatpush3.bf16.msra.mxu0 %v745_v9 }
  0x10   :  { %692 = vmatprep.subr.bf16.mxu0 %v785_v0  ;;  %675 = vmatpush3.bf16.msra.mxu1 %v748_v10 }
  0x11   :  { %676 = vmatprep.subr.bf16.mxu1 %v785_v0 }
  0x13   :  { %693 = vmatpush3.bf16.msra.mxu0 %v747_v11 }
  0x14   :  { %694 = vmatprep.subr.bf16.mxu0 %v785_v0  ;;  %677 = vmatpush3.bf16.msra.mxu1 %v750_v12 }
  0x15   :  { %678 = vmatprep.subr.bf16.mxu1 %v785_v0 }
  0x17   :  { %695 = vmatpush3.bf16.msra.mxu0 %v749_v13 }
  0x18   :  { %696 = vmatprep.subr.bf16.mxu0 %v785_v0  ;;  %679 = vmatpush3.bf16.msra.mxu1 %v752_v14 }
  0x19   :  { %680 = vmatprep.subr.bf16.mxu1 %v785_v0 }
  0x1b   :  { %697 = vmatpush3.bf16.msra.mxu0 %v751_v15 }
  0x1c   :  { %698 = vmatprep.subr.bf16.mxu0 %v785_v0  ;;  %681 = vmatpush3.bf16.msra.mxu1 %v754_v16 }
  0x1d   :  { %682 = vmatprep.subr.bf16.mxu1 %v785_v0 }
  0x1f   :  { %699 = vmatpush3.bf16.msra.mxu0 %v753_v17 }
  0x20   :  { %700 = vmatprep.subr.bf16.mxu0 %v785_v0  ;;  %683 = vmatpush3.bf16.msra.mxu1 %v756_v19 }
  0x21   :  { %708 = vmatprep.subr.bf16.mxu1 %v785_v0 }
  0x23   :  { %701 = vmatpush3.bf16.msra.mxu0 %v755_v18  ;;  %685 = vmatmul.mubr.bf16.vlgmr.msra.gmra.mxu1 %v758_v22 }
  0x24   :  { %702 = vmatprep.subr.bf16.mxu0 %v785_v0  ;;  %724 = vmatprep.mubr.msk.bf16.mxu1 %vm786_vm1, %v785_v0 }
  0x25   :  { %709 = vmatpush3.bf16.msra.mxu1 %v760_v25 }
  0x26   :  { %710 = vmatprep.subr.bf16.mxu1 %v785_v0 }
  0x27   :  { %703 = vmatpush3.bf16.msra.mxu0 %v757_v21 }
  0x28   :  { %728 = vmatprep.subr.bf16.mxu0 %v785_v0 }
  0x29   :  { %711 = vmatpush3.bf16.msra.mxu1 %v761_v26 }
  0x2a   :  { %705 = vmatmul.mubr.bf16.vlgmr.msra.gmra.mxu0 %v759_v24  ;;  %712 = vmatprep.subr.bf16.mxu1 %v785_v0 }
  0x2b   :  { %729 = vmatpush3.bf16.msra.mxu0 %v497_v23  ;;  %732 = vmatprep.mubr.msk.bf16.mxu0 %vm786_vm1, %v785_v0 }
  0x2c   :  { %730 = vmatprep.subr.bf16.mxu0 %v785_v0 }
  0x2d   :  { %713 = vmatpush3.bf16.msra.mxu1 %v762_v27 }
  0x2e   :  { %714 = vmatprep.subr.bf16.mxu1 %v785_v0 }
  0x2f   :  { %731 = vmatpush3.bf16.msra.mxu0 %v768_v33 }
  0x31   :  { %715 = vmatpush3.bf16.msra.mxu1 %v763_v28 }
  0x32   :  { %716 = vmatprep.subr.bf16.mxu1 %v785_v0  ;;  %733 = vmatmul.mubr.msk.bf16.vlgmr.msra.gmra.mxu0 %vm120_vm2, %v867_v5 }
  0x35   :  { %717 = vmatpush3.bf16.msra.mxu1 %v764_v29 }
  0x36   :  { %718 = vmatprep.subr.bf16.mxu1 %v785_v0 }
  0x39   :  { %719 = vmatpush3.bf16.msra.mxu1 %v765_v30 }
  0x3a   :  { %720 = vmatprep.subr.bf16.mxu1 %v785_v0 }
  0x3d   :  { %721 = vmatpush3.bf16.msra.mxu1 %v766_v31 }
  0x3e   :  { %722 = vmatprep.subr.bf16.mxu1 %v785_v0 }
  0x41   :  { %723 = vmatpush3.bf16.msra.mxu1 %v767_v32 }
  0xca   :  { %v162_v35 = vpop.f32.mrf.mxu0 }
  0xcb   :  { %v163_v36 = vadd.f32 %v570_v34, %v162_v35 }
  0xcc   :  { %v666_v37 = vpop.f32.mrf.mxu0 }
  0xcd   :  { %v575_v38 = vmul.f32 -1.442695, %v163_v36 }
  0xce   :  { %v165_v39 = vpop.f32.mrf.mxu0 }
  0xcf   :  { %769 = vpow2.f32 %v575_v38  ;;  %v166_v40 = vadd.f32 %v570_v34, %v165_v39 }
  0xd0   :  { %v667_v41 = vpop.f32.mrf.mxu0 }
  0xd1   :  { %v576_v42 = vmul.f32 -1.442695, %v166_v40 }
  0xd3   :  { %771 = vpow2.f32 %v576_v42 }
  0xdc   :  { %v770_v43 = vpop.eup %769 }
  0xdd   :  { %v175_v44 = vadd.f32 1.0, %v770_v43 }
  0xdf   :  { %773 = vrcp.f32 %v175_v44 }
  0xe0   :  { %v772_v45 = vpop.eup %771 }
  0xe1   :  { %v176_v46 = vadd.f32 1.0, %v772_v45 }
  0xe3   :  { %775 = vrcp.f32 %v176_v46  ;;  %v271_v52 = vpop.f32.mrf.mxu1 }
  0xe5   :  { %v686_v53 = vpop.f32.mrf.mxu1 }
  0xe7   :  { %v274_v56 = vpop.f32.mrf.mxu1 }
  0xe9   :  { %v687_v58 = vpop.f32.mrf.mxu1 }
  0xea   :  { %v366_v54 = vpop.f32.mrf.mxu0 }
  0xeb   :  { %v367_v55 = vadd.f32 %v366_v54, %v271_v52 }
  0xec   :  { %v774_v47 = vpop.eup %773  ;;  %v706_v57 = vpop.f32.mrf.mxu0 }
  0xed   :  { %v181_v49 = vmul.f32 %v774_v47, %v163_v36 }
  0xee   :  { %v369_v59 = vpop.f32.mrf.mxu0 }
  0xef   :  { %v370_v60 = vadd.f32 %v369_v59, %v274_v56 }
  0xf0   :  { %v776_v48 = vpop.eup %775  ;;  %v707_v61 = vpop.f32.mrf.mxu0 }
  0xf1   :  { %v182_v50 = vmul.f32 %v776_v48, %v166_v40 }
  0xf2   :  { %v533_v62 = vpop.f32.mrf.mxu0 }
  0xf3   :  { %v373_v51 = vpack.c.bf16 %v182_v50, %v181_v49 }
  0xf4   :  { %v734_v63 = vpop.f32.mrf.mxu0 }
  0xf5   :  { %725 = vmatmul.mubr.bf16.vlgmr.msra.gmra.mxu1 %v373_v51 }
  0xf6   :  { %v536_v0 = vpop.f32.mrf.mxu0 }
  0xf8   :  { %v735_v1 = vpop.f32.mrf.mxu0 }
 0x1b5   :  { %v456_v3 = vpop.f32.mrf.mxu1 }
 0x1b6   :  { %v463_v4 = vadd.f32 %v456_v3, %v367_v55 }
 0x1b7   :  { %v726_v5 = vpop.f32.mrf.mxu1 }
 0x1b8   :  { %v471_v6 = vadd.f32 %v603_v2, %v463_v4 }
 0x1b9   :  { %v459_v7 = vpop.f32.mrf.mxu1 }
 0x1ba   :  { %v604_v8 = vmul.f32 -1.442695, %v471_v6  ;;  %v464_v9 = vadd.f32 %v459_v7, %v370_v60 }
 0x1bb   :  { %v727_v10 = vpop.f32.mrf.mxu1 }
 0x1bc   :  { %777 = vpow2.f32 %v604_v8  ;;  %v472_v11 = vadd.f32 %v603_v2, %v464_v9 }
 0x1be   :  { %v605_v12 = vmul.f32 -1.442695, %v472_v11 }
 0x1c0   :  { %779 = vpow2.f32 %v605_v12 }
 0x1c9   :  { %v778_v13 = vpop.eup %777 }
 0x1ca   :  { %v479_v14 = vadd.f32 1.0, %v778_v13 }
 0x1cc   :  { %781 = vrcp.f32 %v479_v14 }
 0x1cd   :  { %v780_v15 = vpop.eup %779 }
 0x1ce   :  { %v480_v16 = vadd.f32 1.0, %v780_v15 }
 0x1d0   :  { %783 = vrcp.f32 %v480_v16 }
 0x1d9   :  { %v782_v17 = vpop.eup %781 }
 0x1da   :  { %v485_v18 = vmul.f32 %v782_v17, %v471_v6 }
 0x1dc   :  { %v540_v21 = vmul.f32 %v533_v62, %v485_v18 }
 0x1dd   :  { %v784_v19 = vpop.eup %783 }
 0x1de   :  { %v486_v20 = vmul.f32 %v784_v19, %v472_v11 }
 0x1e0   :  { %v541_v22 = vmul.f32 %v536_v0, %v486_v20  ;;  %v620_v23 = vpack.c.bf16 %v486_v20, %v485_v18 }
 0x1e2   :  { %621 = vst [vmem:[%s1008_s10] sm:$0xff] %v620_v23   ;;  %v625_v24 = vpack.c.bf16 %v541_v22, %v540_v21 }
 0x1e4   :  { %626 = vst [vmem:[%s1009_s11] sm:$0xff] %v625_v24  }

// kernel: dimenetpp_forward.13
= control target key start
LH: loop header
LB: loop body
LE: loop exit
PB: predicated region body
PF: predicated region fallthrough
CT: control target
= control target key end

     0   :  { %v184_v0 = vmov 0.0   ;;  %vm185_vm0 = vmmov 0   ;;  %vm72_vm1 = vcmask 785408   ;;  %vm129_vm2 = vcmask 519168   ;;  %s236_s2 = inlined_call_operand.vmem [shape: bf16[96,64], index: 2, kind: input, shape index: {}]   ;;  %s237_s0 = inlined_call_operand.vmem [shape: bf16[16,96], index: 0, kind: input, shape index: {}]   ;;  %s238_s1 = inlined_call_operand.vmem [shape: bf16[16,64], index: 1, kind: input, shape index: {}]   ;;  %s239_s3 = inlined_call_operand.vmem [shape: bf16[16,64], index: 3, kind: output, shape index: {}]  }
   0x1   :  { %159 = vmatprep.subr.bf16.mxu0 %v184_v0  ;;  %v177_v1 = vld [vmem:[%s236_s2 + $0x28] sm:$0xff]   ;;  %171 = vmatprep.mubr.msk.bf16.mxu0 %vm185_vm0, %v184_v0  ;;  %v178_v2 = vld [vmem:[%s236_s2 + $0x20] sm:$0xff]   ;;  %v179_v3 = vld [vmem:[%s236_s2 + $0x18] sm:$0xff]  }
   0x2   :  { %160 = vmatpush3.bf16.msra.mxu0 %v177_v1  ;;  %v180_v4 = vld [vmem:[%s236_s2 + $0x10] sm:$0xff]   ;;  %v181_v5 = vld [vmem:[%s236_s2 + $0x8] sm:$0xff]   ;;  %v182_v6 = vld [vmem:[%s236_s2] sm:$0xff]  }
   0x3   :  { %161 = vmatprep.subr.bf16.mxu0 %v184_v0  ;;  %v183_v7 = vld [vmem:[%s237_s0] sm:$0xff]  }
   0x4   :  { %v149_v8 = vld [vmem:[%s238_s1] sm:$0xff]  }
   0x5   :  { %v150_v9 = vunpack.c.l.bf16 %v149_v8  ;;  %v151_v12 = vunpack.c.h.bf16 %v149_v8 }
   0x6   :  { %162 = vmatpush3.bf16.msra.mxu0 %v178_v2 }
   0x7   :  { %163 = vmatprep.subr.bf16.mxu0 %v184_v0 }
   0xa   :  { %164 = vmatpush3.bf16.msra.mxu0 %v179_v3 }
   0xb   :  { %165 = vmatprep.subr.bf16.mxu0 %v184_v0 }
   0xe   :  { %166 = vmatpush3.bf16.msra.mxu0 %v180_v4 }
   0xf   :  { %167 = vmatprep.subr.bf16.mxu0 %v184_v0 }
  0x12   :  { %168 = vmatpush3.bf16.msra.mxu0 %v181_v5 }
  0x13   :  { %169 = vmatprep.subr.bf16.mxu0 %v184_v0 }
  0x16   :  { %170 = vmatpush3.bf16.msra.mxu0 %v182_v6 }
  0x19   :  { %172 = vmatmul.mubr.msk.bf16.vlgmr.msra.gmra.mxu0 %vm72_vm1, %v183_v7 }
  0xd9   :  { %v110_v10 = vpop.f32.mrf.mxu0 }
  0xda   :  { %v119_v11 = vmul.f32 %v150_v9, %v110_v10 }
  0xdb   :  { %v173_v13 = vpop.f32.mrf.mxu0 }
  0xdc   :  { %v146_v14 = vpack.c.bf16 %v119_v11, %v119_v11 }
  0xdd   :  { %v113_v15 = vpop.f32.mrf.mxu0 }
  0xde   :  { %130 = vst.msk [vmem:[%s239_s3] sm:$0xf] %vm129_vm2, %v146_v14  ;;  %v120_v16 = vmul.f32 %v151_v12, %v113_v15 }
  0xdf   :  { %v174_v17 = vpop.f32.mrf.mxu0 }
  0xe0   :  { %v147_v18 = vpack.c.bf16 %v120_v16, %v120_v16 }
  0xe2   :  { %131 = vst.msk [vmem:[%s239_s3 + $0x4] sm:$0xf] %vm129_vm2, %v147_v18 }

// kernel: dimenetpp_forward.14
= control target key start
LH: loop header
LB: loop body
LE: loop exit
PB: predicated region body
PF: predicated region fallthrough
CT: control target
= control target key end

     0   :  { %v1647_v0 = vmov 0.0   ;;  %vm1648_vm0 = vmmov 0   ;;  %vm235_vm1 = vcmask 523264   ;;  %vm1096_vm2 = vcmask 1043456   ;;  %s2088_s4 = inlined_call_operand.vmem [shape: bf16[64,128], index: 4, kind: input, shape index: {}]   ;;  %s2089_s0 = inlined_call_operand.vmem [shape: bf16[16,64], index: 0, kind: input, shape index: {}]   ;;  %s2090_s5 = inlined_call_operand.vmem [shape: bf16[128,128], index: 5, kind: input, shape index: {}]   ;;  %s2091_s1 = inlined_call_operand.vmem [shape: bf16[16,128], index: 1, kind: input, shape index: {}]   ;;  %s2092_s7 = inlined_call_operand.vmem [shape: bf16[128,128], index: 7, kind: input, shape index: {}]   ;;  %s2093_s6 = inlined_call_operand.vmem [shape: f32[1,128], index: 6, kind: input, shape index: {}]   ;;  %s2094_s9 = inlined_call_operand.vmem [shape: bf16[128,128], index: 9, kind: input, shape index: {}]   ;;  %s2095_s8 = inlined_call_operand.vmem [shape: f32[1,128], index: 8, kind: input, shape index: {}]   ;;  %s2096_s11 = inlined_call_operand.vmem [shape: bf16[128,128], index: 11, kind: input, shape index: {}]   ;;  %s2097_s10 = inlined_call_operand.vmem [shape: f32[1,128], index: 10, kind: input, shape index: {}]   ;;  %s2098_s2 = inlined_call_operand.vmem [shape: bf16[16,128], index: 2, kind: input, shape index: {}]   ;;  %s2099_s13 = inlined_call_operand.vmem [shape: bf16[128,128], index: 13, kind: input, shape index: {}]   ;;  %s2100_s12 = inlined_call_operand.vmem [shape: f32[1,128], index: 12, kind: input, shape index: {}]   ;;  %s2101_s15 = inlined_call_operand.vmem [shape: bf16[128,128], index: 15, kind: input, shape index: {}]   ;;  %s2102_s14 = inlined_call_operand.vmem [shape: f32[1,128], index: 14, kind: input, shape index: {}]   ;;  %s2103_s17 = inlined_call_operand.vmem [shape: bf16[128,128], index: 17, kind: input, shape index: {}]   ;;  %s2104_s19 = inlined_call_operand.vmem [shape: bf16[24,128], index: 19, kind: input, shape index: {}]   ;;  %s2105_s3 = inlined_call_operand.vmem [shape: bf16[16,24], index: 3, kind: input, shape index: {}]   ;;  %s2106_s16 = inlined_call_operand.vmem [shape: f32[1,128], index: 16, kind: input, shape index: {}]   ;;  %s2107_s18 = inlined_call_operand.vmem [shape: f32[1,128], index: 18, kind: input, shape index: {}]   ;;  %s2108_s20 = inlined_call_operand.vmem [shape: bf16[16,128], index: 20, kind: output, shape index: {0}]   ;;  %s2109_s21 = inlined_call_operand.vmem [shape: bf16[16,128], index: 21, kind: output, shape index: {1}]  }
   0x1   :  { %2113 = sst [smem:[#allocation2_spill]] %s2088_s4  ;;  %1357 = vmatprep.subr.bf16.mxu0 %v1647_v0  ;;  %1365 = vmatprep.mubr.msk.bf16.mxu0 %vm1648_vm0, %v1647_v0  ;;  %v1540_v60 = vld [vmem:[%s2094_s9 + $0x38] sm:$0xff]   ;;  %v1541_v61 = vld [vmem:[%s2094_s9 + $0x30] sm:$0xff]   ;;  %v1542_v62 = vld [vmem:[%s2094_s9 + $0x28] sm:$0xff]   ;;  %vm1092_vm3 = vcmask 195584  }
   0x2   :  { %2114 = sst [smem:[#allocation3_spill]] %s2089_s0  ;;  %1369 = vmatprep.subr.bf16.mxu1 %v1647_v0  ;;  %1385 = vmatprep.mubr.msk.bf16.mxu1 %vm1648_vm0, %v1647_v0  ;;  %v1543_v63 = vld [vmem:[%s2094_s9 + $0x20] sm:$0xff]  }
   0x3   :  { %2115 = sst [smem:[#allocation4_spill]] %s2090_s5 }
   0x4   :  { %2116 = sst [smem:[#allocation5_spill]] %s2091_s1 }
   0x5   :  { %2117 = sst [smem:[#allocation6_spill]] %s2092_s7 }
   0x6   :  { %2118 = sst [smem:[#allocation7_spill]] %s2093_s6 }
   0x7   :  { %s2119_s26 = sld [smem:[#allocation2_spill]] }
   0x8   :  { %s2120_s22 = sld [smem:[#allocation3_spill]] }
   0x9   :  { %s2121_s24 = sld [smem:[#allocation4_spill]] }
   0xa   :  { %s2122_s25 = sld [smem:[#allocation5_spill]] }
   0xb   :  { %s2123_s1 = sld [smem:[#allocation6_spill]] }
   0xc   :  { %s2124_s4 = sld [smem:[#allocation7_spill]] }
   0xd   :  { %v1519_v1 = vld [vmem:[%s2119_s26 + $0x18] sm:$0xff]   ;;  %v1520_v2 = vld [vmem:[%s2119_s26 + $0x10] sm:$0xff]   ;;  %v1521_v3 = vld [vmem:[%s2119_s26 + $0x8] sm:$0xff]  }
   0xe   :  { %1358 = vmatpush3.bf16.msra.mxu0 %v1519_v1  ;;  %v1522_v4 = vld [vmem:[%s2119_s26] sm:$0xff]   ;;  %v1544_v1 = vld [vmem:[%s2094_s9 + $0x18] sm:$0xff]  }
   0xf   :  { %1359 = vmatprep.subr.bf16.mxu0 %v1647_v0  ;;  %v1523_v5 = vld [vmem:[%s2120_s22] sm:$0xff]   ;;  %v1524_v6 = vld [vmem:[%s2121_s24 + $0x38] sm:$0xff]   ;;  %v1525_v7 = vld [vmem:[%s2121_s24 + $0x30] sm:$0xff]  }
  0x10   :  { %1370 = vmatpush3.bf16.msra.mxu1 %v1524_v6  ;;  %v1526_v8 = vld [vmem:[%s2121_s24 + $0x28] sm:$0xff]   ;;  %v1527_v9 = vld [vmem:[%s2121_s24 + $0x20] sm:$0xff]   ;;  %v1528_v10 = vld [vmem:[%s2121_s24 + $0x18] sm:$0xff]  }
  0x11   :  { %1371 = vmatprep.subr.bf16.mxu1 %v1647_v0  ;;  %v1529_v11 = vld [vmem:[%s2121_s24 + $0x10] sm:$0xff]   ;;  %v1530_v12 = vld [vmem:[%s2121_s24 + $0x8] sm:$0xff]   ;;  %v1531_v13 = vld [vmem:[%s2121_s24] sm:$0xff]  }
  0x12   :  { %1360 = vmatpush3.bf16.msra.mxu0 %v1520_v2  ;;  %v1269_v25 = vld [vmem:[%s2122_s25] sm:$0xff]   ;;  %v1532_v34 = vld [vmem:[%s2123_s1 + $0x38] sm:$0xff]   ;;  %v1533_v35 = vld [vmem:[%s2123_s1 + $0x30] sm:$0xff]  }
  0x13   :  { %1361 = vmatprep.subr.bf16.mxu0 %v1647_v0  ;;  %v1270_v26 = vunpack.c.l.bf16 %v1269_v25  ;;  %v1271_v28 = vunpack.c.h.bf16 %v1269_v25  ;;  %v1534_v36 = vld [vmem:[%s2123_s1 + $0x28] sm:$0xff]   ;;  %v1535_v37 = vld [vmem:[%s2123_s1 + $0x20] sm:$0xff]   ;;  %v1536_v38 = vld [vmem:[%s2123_s1 + $0x18] sm:$0xff]  }
  0x14   :  { %1372 = vmatpush3.bf16.msra.mxu1 %v1525_v7  ;;  %v1537_v39 = vld [vmem:[%s2123_s1 + $0x10] sm:$0xff]   ;;  %v1538_v40 = vld [vmem:[%s2123_s1 + $0x8] sm:$0xff]   ;;  %v1539_v41 = vld [vmem:[%s2123_s1] sm:$0xff]  }
  0x15   :  { %1373 = vmatprep.subr.bf16.mxu1 %v1647_v0  ;;  %v1179_v42 = vld [vmem:[%s2124_s4] ss:$0 sm:$0xff]  ;;  %v1545_v2 = vld [vmem:[%s2094_s9 + $0x10] sm:$0xff]   ;;  %v1548_v25 = vld [vmem:[%s2096_s11 + $0x38] sm:$0xff]  }
  0x16   :  { %1362 = vmatpush3.bf16.msra.mxu0 %v1521_v3  ;;  %v1546_v3 = vld [vmem:[%s2094_s9 + $0x8] sm:$0xff]  }
  0x17   :  { %1363 = vmatprep.subr.bf16.mxu0 %v1647_v0 }
  0x18   :  { %1374 = vmatpush3.bf16.msra.mxu1 %v1526_v8 }
  0x19   :  { %1375 = vmatprep.subr.bf16.mxu1 %v1647_v0 }
  0x1a   :  { %1364 = vmatpush3.bf16.msra.mxu0 %v1522_v4  ;;  %v1547_v4 = vld [vmem:[%s2094_s9] sm:$0xff]  }
  0x1b   :  { %1389 = vmatprep.subr.bf16.mxu0 %v1647_v0 }
  0x1c   :  { %1376 = vmatpush3.bf16.msra.mxu1 %v1527_v9 }
  0x1d   :  { %1366 = vmatmul.mubr.msk.bf16.vlgmr.msra.gmra.mxu0 %vm235_vm1, %v1523_v5  ;;  %1377 = vmatprep.subr.bf16.mxu1 %v1647_v0  ;;  %v1190_v5 = vld [vmem:[%s2095_s8] ss:$0 sm:$0xff] }
  0x1e   :  { %1405 = vmatprep.mubr.msk.bf16.mxu0 %vm1648_vm0, %v1647_v0  ;;  %1390 = vmatpush3.bf16.msra.mxu0 %v1532_v34 }
  0x1f   :  { %1391 = vmatprep.subr.bf16.mxu0 %v1647_v0 }
  0x20   :  { %1378 = vmatpush3.bf16.msra.mxu1 %v1528_v10 }
  0x21   :  { %1379 = vmatprep.subr.bf16.mxu1 %v1647_v0 }
  0x22   :  { %1392 = vmatpush3.bf16.msra.mxu0 %v1533_v35 }
  0x23   :  { %1393 = vmatprep.subr.bf16.mxu0 %v1647_v0 }
  0x24   :  { %1380 = vmatpush3.bf16.msra.mxu1 %v1529_v11 }
  0x25   :  { %1381 = vmatprep.subr.bf16.mxu1 %v1647_v0 }
  0x26   :  { %1394 = vmatpush3.bf16.msra.mxu0 %v1534_v36 }
  0x27   :  { %1395 = vmatprep.subr.bf16.mxu0 %v1647_v0 }
  0x28   :  { %1382 = vmatpush3.bf16.msra.mxu1 %v1530_v12 }
  0x29   :  { %1383 = vmatprep.subr.bf16.mxu1 %v1647_v0 }
  0x2a   :  { %1396 = vmatpush3.bf16.msra.mxu0 %v1535_v37 }
  0x2b   :  { %1397 = vmatprep.subr.bf16.mxu0 %v1647_v0 }
  0x2c   :  { %1384 = vmatpush3.bf16.msra.mxu1 %v1531_v13 }
  0x2d   :  { %1409 = vmatprep.subr.bf16.mxu1 %v1647_v0 }
  0x2e   :  { %1398 = vmatpush3.bf16.msra.mxu0 %v1536_v38 }
  0x2f   :  { %1399 = vmatprep.subr.bf16.mxu0 %v1647_v0 }
  0x32   :  { %1400 = vmatpush3.bf16.msra.mxu0 %v1537_v39 }
  0x33   :  { %1401 = vmatprep.subr.bf16.mxu0 %v1647_v0 }
  0x36   :  { %1402 = vmatpush3.bf16.msra.mxu0 %v1538_v40 }
  0x37   :  { %1403 = vmatprep.subr.bf16.mxu0 %v1647_v0 }
  0x3a   :  { %1404 = vmatpush3.bf16.msra.mxu0 %v1539_v41 }
  0x3b   :  { %1429 = vmatprep.subr.bf16.mxu0 %v1647_v0 }
  0xdd   :  { %v273_v14 = vpop.f32.mrf.mxu0 }
  0xde   :  { %v1177_v15 = vmul.f32 -1.442695, %v273_v14 }
  0xdf   :  { %v1367_v16 = vpop.f32.mrf.mxu0 }
  0xe0   :  { %1583 = vpow2.f32 %v1177_v15 }
  0xe1   :  { %v276_v17 = vpop.f32.mrf.mxu0 }
  0xe2   :  { %v1178_v18 = vmul.f32 -1.442695, %v276_v17 }
  0xe3   :  { %v1368_v19 = vpop.f32.mrf.mxu0 }
  0xe4   :  { %1585 = vpow2.f32 %v1178_v18 }
  0xed   :  { %v1584_v20 = vpop.eup %1583 }
  0xee   :  { %v286_v21 = vadd.f32 1.0, %v1584_v20 }
  0xf0   :  { %1587 = vrcp.f32 %v286_v21 }
  0xf1   :  { %v1586_v22 = vpop.eup %1585 }
  0xf2   :  { %v287_v23 = vadd.f32 1.0, %v1586_v22 }
  0xf4   :  { %1589 = vrcp.f32 %v287_v23 }
  0xfd   :  { %v1588_v24 = vpop.eup %1587 }
  0xfe   :  { %v292_v27 = vmul.f32 %v1588_v24, %v273_v14 }
 0x100   :  { %v1821_v31 = vadd.f32 %v1270_v26, %v292_v27  ;;  %v1549_v26 = vld [vmem:[%s2096_s11 + $0x30] sm:$0xff]   ;;  %v1550_v27 = vld [vmem:[%s2096_s11 + $0x28] sm:$0xff]  }
 0x101   :  { %v1590_v29 = vpop.eup %1589 }
 0x102   :  { %v293_v30 = vmul.f32 %v1590_v29, %v276_v17  ;;  %v1552_v29 = vld [vmem:[%s2096_s11 + $0x18] sm:$0xff]  }
 0x104   :  { %v1823_v32 = vadd.f32 %v1271_v28, %v293_v30  ;;  %v1551_v28 = vld [vmem:[%s2096_s11 + $0x20] sm:$0xff]   ;;  %v1553_v30 = vld [vmem:[%s2096_s11 + $0x10] sm:$0xff]  }
 0x106   :  { %v298_v33 = vpack.c.bf16 %v1823_v32, %v1821_v31 }
 0x108   :  { %1386 = vmatmul.mubr.bf16.vlgmr.msra.gmra.mxu1 %v298_v33  ;;  %v1201_v33 = vld [vmem:[%s2097_s10] ss:$0 sm:$0xff] }
 0x109   :  { %1425 = vmatprep.mubr.msk.bf16.mxu1 %vm1648_vm0, %v1647_v0  ;;  %1410 = vmatpush3.bf16.msra.mxu1 %v1540_v60  ;;  %v1560_v60 = vld [vmem:[%s2099_s13 + $0x18] sm:$0xff]  }
 0x10a   :  { %1411 = vmatprep.subr.bf16.mxu1 %v1647_v0 }
 0x10d   :  { %1412 = vmatpush3.bf16.msra.mxu1 %v1541_v61  ;;  %v1561_v61 = vld [vmem:[%s2099_s13 + $0x10] sm:$0xff]  }
 0x10e   :  { %1413 = vmatprep.subr.bf16.mxu1 %v1647_v0 }
 0x111   :  { %1414 = vmatpush3.bf16.msra.mxu1 %v1542_v62  ;;  %v1562_v62 = vld [vmem:[%s2099_s13 + $0x8] sm:$0xff]  }
 0x112   :  { %1415 = vmatprep.subr.bf16.mxu1 %v1647_v0 }
 0x115   :  { %1416 = vmatpush3.bf16.msra.mxu1 %v1543_v63  ;;  %v1563_v63 = vld [vmem:[%s2099_s13] sm:$0xff]  }
 0x116   :  { %1417 = vmatprep.subr.bf16.mxu1 %v1647_v0 }
 0x119   :  { %1418 = vmatpush3.bf16.msra.mxu1 %v1544_v1  ;;  %v1212_v1 = vld [vmem:[%s2100_s12] ss:$0 sm:$0xff] }
 0x11a   :  { %1419 = vmatprep.subr.bf16.mxu1 %v1647_v0 }
 0x11d   :  { %1420 = vmatpush3.bf16.msra.mxu1 %v1545_v2 }
 0x11e   :  { %1421 = vmatprep.subr.bf16.mxu1 %v1647_v0 }
 0x121   :  { %1422 = vmatpush3.bf16.msra.mxu1 %v1546_v3 }
 0x122   :  { %1423 = vmatprep.subr.bf16.mxu1 %v1647_v0 }
 0x125   :  { %1424 = vmatpush3.bf16.msra.mxu1 %v1547_v4 }
 0x126   :  { %1449 = vmatprep.subr.bf16.mxu1 %v1647_v0 }
 0x1c8   :  { %v387_v43 = vpop.f32.mrf.mxu1 }
 0x1c9   :  { %v388_v44 = vadd.f32 %v1179_v42, %v387_v43 }
 0x1ca   :  { %v1387_v45 = vpop.f32.mrf.mxu1 }
 0x1cb   :  { %v1188_v46 = vmul.f32 -1.442695, %v388_v44 }
 0x1cc   :  { %v390_v47 = vpop.f32.mrf.mxu1 }
 0x1cd   :  { %1591 = vpow2.f32 %v1188_v46  ;;  %v391_v48 = vadd.f32 %v1179_v42, %v390_v47  ;;  %v1273_v47 = vld [vmem:[%s2098_s2] sm:$0xff]  }
 0x1ce   :  { %v1388_v49 = vpop.f32.mrf.mxu1 }
 0x1cf   :  { %v1189_v50 = vmul.f32 -1.442695, %v391_v48 }
 0x1d1   :  { %1593 = vpow2.f32 %v1189_v50  ;;  %v1275_v50 = vunpack.c.h.bf16 %v1273_v47 }
 0x1da   :  { %v1592_v51 = vpop.eup %1591 }
 0x1db   :  { %v400_v52 = vadd.f32 1.0, %v1592_v51 }
 0x1dd   :  { %1595 = vrcp.f32 %v400_v52 }
 0x1de   :  { %v1594_v53 = vpop.eup %1593 }
 0x1df   :  { %v401_v54 = vadd.f32 1.0, %v1594_v53 }
 0x1e1   :  { %1597 = vrcp.f32 %v401_v54 }
 0x1ea   :  { %v1596_v55 = vpop.eup %1595 }
 0x1eb   :  { %v406_v57 = vmul.f32 %v1596_v55, %v388_v44 }
 0x1ee   :  { %v1598_v56 = vpop.eup %1597 }
 0x1ef   :  { %v407_v58 = vmul.f32 %v1598_v56, %v391_v48  ;;  %v1274_v48 = vunpack.c.l.bf16 %v1273_v47  ;;  %v1556_v56 = vld [vmem:[%s2099_s13 + $0x38] sm:$0xff]  }
 0x1f0   :  { %v1572_v47 = vld [vmem:[%s2103_s17 + $0x38] sm:$0xff]  }
 0x1f1   :  { %v408_v59 = vpack.c.bf16 %v407_v58, %v406_v57  ;;  %v1557_v57 = vld [vmem:[%s2099_s13 + $0x30] sm:$0xff]   ;;  %v1558_v58 = vld [vmem:[%s2099_s13 + $0x28] sm:$0xff]  }
 0x1f3   :  { %1406 = vmatmul.mubr.bf16.vlgmr.msra.gmra.mxu0 %v408_v59  ;;  %v1559_v59 = vld [vmem:[%s2099_s13 + $0x20] sm:$0xff]  }
 0x1f4   :  { %1445 = vmatprep.mubr.msk.bf16.mxu0 %vm1648_vm0, %v1647_v0  ;;  %1430 = vmatpush3.bf16.msra.mxu0 %v1548_v25  ;;  %v1570_v25 = vld [vmem:[%s2101_s15 + $0x8] sm:$0xff]  }
 0x1f5   :  { %1431 = vmatprep.subr.bf16.mxu0 %v1647_v0 }
 0x1f8   :  { %1432 = vmatpush3.bf16.msra.mxu0 %v1549_v26  ;;  %v1571_v26 = vld [vmem:[%s2101_s15] sm:$0xff]  }
 0x1f9   :  { %1433 = vmatprep.subr.bf16.mxu0 %v1647_v0 }
 0x1fc   :  { %1434 = vmatpush3.bf16.msra.mxu0 %v1550_v27  ;;  %v1223_v27 = vld [vmem:[%s2102_s14] ss:$0 sm:$0xff] }
 0x1fd   :  { %1435 = vmatprep.subr.bf16.mxu0 %v1647_v0 }
 0x200   :  { %1436 = vmatpush3.bf16.msra.mxu0 %v1551_v28 }
 0x201   :  { %1437 = vmatprep.subr.bf16.mxu0 %v1647_v0 }
 0x204   :  { %1438 = vmatpush3.bf16.msra.mxu0 %v1552_v29 }
 0x205   :  { %1439 = vmatprep.subr.bf16.mxu0 %v1647_v0 }
 0x208   :  { %1440 = vmatpush3.bf16.msra.mxu0 %v1553_v30 }
 0x209   :  { %1441 = vmatprep.subr.bf16.mxu0 %v1647_v0 }
 0x2b3   :  { %v497_v6 = vpop.f32.mrf.mxu0 }
 0x2b4   :  { %v498_v7 = vadd.f32 %v1190_v5, %v497_v6 }
 0x2b5   :  { %v1407_v8 = vpop.f32.mrf.mxu0 }
 0x2b6   :  { %v1199_v9 = vmul.f32 -1.442695, %v498_v7 }
 0x2b7   :  { %v500_v10 = vpop.f32.mrf.mxu0 }
 0x2b8   :  { %1599 = vpow2.f32 %v1199_v9  ;;  %v501_v11 = vadd.f32 %v1190_v5, %v500_v10 }
 0x2b9   :  { %v1408_v12 = vpop.f32.mrf.mxu0 }
 0x2ba   :  { %v1200_v13 = vmul.f32 -1.442695, %v501_v11 }
 0x2bc   :  { %1601 = vpow2.f32 %v1200_v13 }
 0x2c5   :  { %v1600_v14 = vpop.eup %1599 }
 0x2c6   :  { %v510_v15 = vadd.f32 1.0, %v1600_v14 }
 0x2c8   :  { %1603 = vrcp.f32 %v510_v15 }
 0x2c9   :  { %v1602_v16 = vpop.eup %1601 }
 0x2ca   :  { %v511_v17 = vadd.f32 1.0, %v1602_v16 }
 0x2cc   :  { %1605 = vrcp.f32 %v511_v17 }
 0x2d5   :  { %v1604_v18 = vpop.eup %1603 }
 0x2d6   :  { %v516_v19 = vmul.f32 %v1604_v18, %v498_v7 }
 0x2d8   :  { %v518_v22 = vadd.f32 %v516_v19, %v1821_v31  ;;  %v1554_v31 = vld [vmem:[%s2096_s11 + $0x8] sm:$0xff]   ;;  %v1564_v19 = vld [vmem:[%s2101_s15 + $0x38] sm:$0xff]  }
 0x2d9   :  { %v1606_v20 = vpop.eup %1605  ;;  %1442 = vmatpush3.bf16.msra.mxu0 %v1554_v31 }
 0x2da   :  { %v517_v21 = vmul.f32 %v1606_v20, %v501_v11  ;;  %1443 = vmatprep.subr.bf16.mxu0 %v1647_v0  ;;  %v1565_v20 = vld [vmem:[%s2101_s15 + $0x30] sm:$0xff]  }
 0x2dc   :  { %v519_v23 = vadd.f32 %v517_v21, %v1823_v32  ;;  %v1555_v32 = vld [vmem:[%s2096_s11] sm:$0xff]   ;;  %v1566_v21 = vld [vmem:[%s2101_s15 + $0x28] sm:$0xff]  }
 0x2dd   :  { %1444 = vmatpush3.bf16.msra.mxu0 %v1555_v32 }
 0x2de   :  { %v520_v24 = vpack.c.bf16 %v519_v23, %v518_v22  ;;  %1469 = vmatprep.subr.bf16.mxu0 %v1647_v0  ;;  %v1567_v22 = vld [vmem:[%s2101_s15 + $0x20] sm:$0xff]   ;;  %v1568_v23 = vld [vmem:[%s2101_s15 + $0x18] sm:$0xff]  }
 0x2e0   :  { %1426 = vmatmul.mubr.bf16.vlgmr.msra.gmra.mxu1 %v520_v24  ;;  %v1569_v24 = vld [vmem:[%s2101_s15 + $0x10] sm:$0xff]  }
 0x2e1   :  { %1465 = vmatprep.mubr.msk.bf16.mxu1 %vm1648_vm0, %v1647_v0  ;;  %1450 = vmatpush3.bf16.msra.mxu1 %v1556_v56 }
 0x2e2   :  { %1451 = vmatprep.subr.bf16.mxu1 %v1647_v0 }
 0x2e5   :  { %1452 = vmatpush3.bf16.msra.mxu1 %v1557_v57  ;;  %v1581_v57 = vld [vmem:[%s2104_s19] sm:$0xff]  }
 0x2e6   :  { %1453 = vmatprep.subr.bf16.mxu1 %v1647_v0 }
 0x2e9   :  { %1454 = vmatpush3.bf16.msra.mxu1 %v1558_v58  ;;  %v1582_v58 = vld [vmem:[%s2105_s3] sm:$0xff]  }
 0x2ea   :  { %1455 = vmatprep.subr.bf16.mxu1 %v1647_v0 }
 0x2ed   :  { %1456 = vmatpush3.bf16.msra.mxu1 %v1559_v59  ;;  %v1234_v59 = vld [vmem:[%s2106_s16] ss:$0 sm:$0xff] }
 0x2ee   :  { %1457 = vmatprep.subr.bf16.mxu1 %v1647_v0 }
 0x2f1   :  { %1458 = vmatpush3.bf16.msra.mxu1 %v1560_v60 }
 0x2f2   :  { %1459 = vmatprep.subr.bf16.mxu1 %v1647_v0 }
 0x2f5   :  { %1460 = vmatpush3.bf16.msra.mxu1 %v1561_v61 }
 0x2f6   :  { %1461 = vmatprep.subr.bf16.mxu1 %v1647_v0 }
 0x2f9   :  { %1462 = vmatpush3.bf16.msra.mxu1 %v1562_v62 }
 0x2fa   :  { %1463 = vmatprep.subr.bf16.mxu1 %v1647_v0 }
 0x2fd   :  { %1464 = vmatpush3.bf16.msra.mxu1 %v1563_v63 }
 0x2fe   :  { %1489 = vmatprep.subr.bf16.mxu1 %v1647_v0 }
 0x3a0   :  { %v609_v34 = vpop.f32.mrf.mxu1 }
 0x3a1   :  { %v610_v35 = vadd.f32 %v1201_v33, %v609_v34 }
 0x3a2   :  { %v1427_v36 = vpop.f32.mrf.mxu1 }
 0x3a3   :  { %v1210_v37 = vmul.f32 -1.442695, %v610_v35 }
 0x3a4   :  { %v612_v38 = vpop.f32.mrf.mxu1 }
 0x3a5   :  { %1607 = vpow2.f32 %v1210_v37  ;;  %v613_v39 = vadd.f32 %v1201_v33, %v612_v38 }
 0x3a6   :  { %v1428_v40 = vpop.f32.mrf.mxu1 }
 0x3a7   :  { %v1211_v41 = vmul.f32 -1.442695, %v613_v39 }
 0x3a9   :  { %1609 = vpow2.f32 %v1211_v41 }
 0x3b2   :  { %v1608_v42 = vpop.eup %1607 }
 0x3b3   :  { %v622_v43 = vadd.f32 1.0, %v1608_v42 }
 0x3b5   :  { %1611 = vrcp.f32 %v622_v43 }
 0x3b6   :  { %v1610_v44 = vpop.eup %1609 }
 0x3b7   :  { %v623_v45 = vadd.f32 1.0, %v1610_v44 }
 0x3b9   :  { %1613 = vrcp.f32 %v623_v45 }
 0x3c2   :  { %v1612_v46 = vpop.eup %1611 }
 0x3c3   :  { %v628_v49 = vmul.f32 %v1612_v46, %v610_v35 }
 0x3c5   :  { %v1943_v53 = vadd.f32 %v1274_v48, %v628_v49  ;;  %v1573_v48 = vld [vmem:[%s2103_s17 + $0x30] sm:$0xff]   ;;  %v1574_v49 = vld [vmem:[%s2103_s17 + $0x28] sm:$0xff]  }
 0x3c6   :  { %v1614_v51 = vpop.eup %1613 }
 0x3c7   :  { %v629_v52 = vmul.f32 %v1614_v51, %v613_v39  ;;  %v1576_v51 = vld [vmem:[%s2103_s17 + $0x18] sm:$0xff]  }
 0x3c9   :  { %v1945_v54 = vadd.f32 %v1275_v50, %v629_v52  ;;  %v1575_v50 = vld [vmem:[%s2103_s17 + $0x20] sm:$0xff]   ;;  %v1577_v52 = vld [vmem:[%s2103_s17 + $0x10] sm:$0xff]  }
 0x3cb   :  { %v634_v55 = vpack.c.bf16 %v1945_v54, %v1943_v53 }
 0x3cd   :  { %1446 = vmatmul.mubr.bf16.vlgmr.msra.gmra.mxu0 %v634_v55  ;;  %v1580_v55 = vld [vmem:[%s2104_s19 + $0x8] ss:$0 sps:$4 sm:$0xff]  }
 0x3ce   :  { %1485 = vmatprep.mubr.msk.bf16.mxu0 %vm1648_vm0, %v1647_v0  ;;  %1470 = vmatpush3.bf16.msra.mxu0 %v1564_v19  ;;  %v1098_v56 = vsel %vm1096_vm2, %v1580_v55, 0 }
 0x3cf   :  { %1471 = vmatprep.subr.bf16.mxu0 %v1647_v0 }
 0x3d2   :  { %1472 = vmatpush3.bf16.msra.mxu0 %v1565_v20 }
 0x3d3   :  { %1473 = vmatprep.subr.bf16.mxu0 %v1647_v0 }
 0x3d6   :  { %1474 = vmatpush3.bf16.msra.mxu0 %v1566_v21 }
 0x3d7   :  { %1475 = vmatprep.subr.bf16.mxu0 %v1647_v0 }
 0x3da   :  { %1476 = vmatpush3.bf16.msra.mxu0 %v1567_v22 }
 0x3db   :  { %1477 = vmatprep.subr.bf16.mxu0 %v1647_v0 }
 0x3de   :  { %1478 = vmatpush3.bf16.msra.mxu0 %v1568_v23 }
 0x3df   :  { %1479 = vmatprep.subr.bf16.mxu0 %v1647_v0 }
 0x3e2   :  { %1480 = vmatpush3.bf16.msra.mxu0 %v1569_v24 }
 0x3e3   :  { %1481 = vmatprep.subr.bf16.mxu0 %v1647_v0 }
 0x3e6   :  { %1482 = vmatpush3.bf16.msra.mxu0 %v1570_v25 }
 0x3e7   :  { %1483 = vmatprep.subr.bf16.mxu0 %v1647_v0 }
 0x3ea   :  { %1484 = vmatpush3.bf16.msra.mxu0 %v1571_v26 }
 0x3eb   :  { %1509 = vmatprep.subr.bf16.mxu0 %v1647_v0 }
 0x48d   :  { %v723_v2 = vpop.f32.mrf.mxu0 }
 0x48e   :  { %v724_v3 = vadd.f32 %v1212_v1, %v723_v2 }
 0x48f   :  { %v1447_v4 = vpop.f32.mrf.mxu0 }
 0x490   :  { %v1221_v5 = vmul.f32 -1.442695, %v724_v3 }
 0x491   :  { %v726_v6 = vpop.f32.mrf.mxu0 }
 0x492   :  { %1615 = vpow2.f32 %v1221_v5  ;;  %v727_v7 = vadd.f32 %v1212_v1, %v726_v6 }
 0x493   :  { %v1448_v8 = vpop.f32.mrf.mxu0 }
 0x494   :  { %v1222_v9 = vmul.f32 -1.442695, %v727_v7 }
 0x496   :  { %1617 = vpow2.f32 %v1222_v9 }
 0x49f   :  { %v1616_v10 = vpop.eup %1615 }
 0x4a0   :  { %v736_v11 = vadd.f32 1.0, %v1616_v10 }
 0x4a2   :  { %1619 = vrcp.f32 %v736_v11 }
 0x4a3   :  { %v1618_v12 = vpop.eup %1617 }
 0x4a4   :  { %v737_v13 = vadd.f32 1.0, %v1618_v12 }
 0x4a6   :  { %1621 = vrcp.f32 %v737_v13 }
 0x4af   :  { %v1620_v14 = vpop.eup %1619 }
 0x4b0   :  { %v742_v16 = vmul.f32 %v1620_v14, %v724_v3 }
 0x4b3   :  { %v1622_v15 = vpop.eup %1621 }
 0x4b4   :  { %v743_v17 = vmul.f32 %v1622_v15, %v727_v7 }
 0x4b6   :  { %v744_v18 = vpack.c.bf16 %v743_v17, %v742_v16  ;;  %v1245_v17 = vld [vmem:[%s2107_s18] ss:$0 sm:$0xff] }
 0x4b8   :  { %1466 = vmatmul.mubr.bf16.vlgmr.msra.gmra.mxu1 %v744_v18 }
 0x4b9   :  { %1505 = vmatprep.mubr.msk.bf16.mxu1 %vm1648_vm0, %v1647_v0  ;;  %1490 = vmatpush3.bf16.msra.mxu1 %v1572_v47 }
 0x4ba   :  { %1491 = vmatprep.subr.bf16.mxu1 %v1647_v0 }
 0x4bd   :  { %1492 = vmatpush3.bf16.msra.mxu1 %v1573_v48 }
 0x4be   :  { %1493 = vmatprep.subr.bf16.mxu1 %v1647_v0 }
 0x4c1   :  { %1494 = vmatpush3.bf16.msra.mxu1 %v1574_v49 }
 0x4c2   :  { %1495 = vmatprep.subr.bf16.mxu1 %v1647_v0 }
 0x4c5   :  { %1496 = vmatpush3.bf16.msra.mxu1 %v1575_v50 }
 0x4c6   :  { %1497 = vmatprep.subr.bf16.mxu1 %v1647_v0 }
 0x4c9   :  { %1498 = vmatpush3.bf16.msra.mxu1 %v1576_v51 }
 0x4ca   :  { %1499 = vmatprep.subr.bf16.mxu1 %v1647_v0 }
 0x4cd   :  { %1500 = vmatpush3.bf16.msra.mxu1 %v1577_v52 }
 0x4ce   :  { %1501 = vmatprep.subr.bf16.mxu1 %v1647_v0 }
 0x578   :  { %v833_v28 = vpop.f32.mrf.mxu1 }
 0x579   :  { %v834_v29 = vadd.f32 %v1223_v27, %v833_v28 }
 0x57a   :  { %v1467_v30 = vpop.f32.mrf.mxu1 }
 0x57b   :  { %v1232_v31 = vmul.f32 -1.442695, %v834_v29 }
 0x57c   :  { %v836_v32 = vpop.f32.mrf.mxu1 }
 0x57d   :  { %1623 = vpow2.f32 %v1232_v31  ;;  %v837_v33 = vadd.f32 %v1223_v27, %v836_v32 }
 0x57e   :  { %v1468_v34 = vpop.f32.mrf.mxu1 }
 0x57f   :  { %v1233_v35 = vmul.f32 -1.442695, %v837_v33 }
 0x581   :  { %1625 = vpow2.f32 %v1233_v35 }
 0x58a   :  { %v1624_v36 = vpop.eup %1623 }
 0x58b   :  { %v846_v37 = vadd.f32 1.0, %v1624_v36 }
 0x58d   :  { %1627 = vrcp.f32 %v846_v37 }
 0x58e   :  { %v1626_v38 = vpop.eup %1625 }
 0x58f   :  { %v847_v39 = vadd.f32 1.0, %v1626_v38 }
 0x591   :  { %1629 = vrcp.f32 %v847_v39 }
 0x59a   :  { %v1628_v40 = vpop.eup %1627 }
 0x59b   :  { %v852_v41 = vmul.f32 %v1628_v40, %v834_v29 }
 0x59d   :  { %v2024_v44 = vadd.f32 %v852_v41, %v1943_v53  ;;  %v1578_v53 = vld [vmem:[%s2103_s17 + $0x8] sm:$0xff]  }
 0x59e   :  { %v1630_v42 = vpop.eup %1629  ;;  %1502 = vmatpush3.bf16.msra.mxu1 %v1578_v53 }
 0x59f   :  { %v853_v43 = vmul.f32 %v1630_v42, %v837_v33  ;;  %1503 = vmatprep.subr.bf16.mxu1 %v1647_v0 }
 0x5a1   :  { %v2027_v45 = vadd.f32 %v853_v43, %v1945_v54  ;;  %v1579_v54 = vld [vmem:[%s2103_s17] sm:$0xff]  }
 0x5a2   :  { %1504 = vmatpush3.bf16.msra.mxu1 %v1579_v54 }
 0x5a3   :  { %v856_v46 = vpack.c.bf16 %v2027_v45, %v2024_v44 }
 0x5a5   :  { %1486 = vmatmul.mubr.bf16.vlgmr.msra.gmra.mxu0 %v856_v46 }
 0x5a6   :  { %1513 = vmatprep.mubr.msk.bf16.mxu0 %vm1648_vm0, %v1647_v0  ;;  %1510 = vmatpush3.bf16.msra.mxu0 %v1098_v56 }
 0x5a7   :  { %1511 = vmatprep.subr.bf16.mxu0 %v1647_v0 }
 0x5aa   :  { %1512 = vmatpush3.bf16.msra.mxu0 %v1581_v57 }
 0x5ad   :  { %1514 = vmatmul.mubr.msk.bf16.vlgmr.msra.gmra.mxu0 %vm1092_vm3, %v1582_v58 }
 0x665   :  { %v945_v60 = vpop.f32.mrf.mxu0 }
 0x666   :  { %v946_v61 = vadd.f32 %v1234_v59, %v945_v60 }
 0x667   :  { %v1487_v62 = vpop.f32.mrf.mxu0 }
 0x668   :  { %v1243_v63 = vmul.f32 -1.442695, %v946_v61 }
 0x669   :  { %v948_v1 = vpop.f32.mrf.mxu0 }
 0x66a   :  { %1631 = vpow2.f32 %v1243_v63  ;;  %v949_v2 = vadd.f32 %v1234_v59, %v948_v1 }
 0x66b   :  { %v1488_v3 = vpop.f32.mrf.mxu0 }
 0x66c   :  { %v1244_v0 = vmul.f32 -1.442695, %v949_v2 }
 0x66d   :  { %v1134_v13 = vpop.f32.mrf.mxu0 }
 0x66e   :  { %1633 = vpow2.f32 %v1244_v0 }
 0x66f   :  { %v1515_v14 = vpop.f32.mrf.mxu0 }
 0x671   :  { %v1137_v15 = vpop.f32.mrf.mxu0 }
 0x673   :  { %v1516_v16 = vpop.f32.mrf.mxu0 }
 0x677   :  { %v1632_v4 = vpop.eup %1631 }
 0x678   :  { %v958_v5 = vadd.f32 1.0, %v1632_v4 }
 0x67a   :  { %1635 = vrcp.f32 %v958_v5 }
 0x67b   :  { %v1634_v6 = vpop.eup %1633 }
 0x67c   :  { %v959_v7 = vadd.f32 1.0, %v1634_v6 }
 0x67e   :  { %1637 = vrcp.f32 %v959_v7 }
 0x687   :  { %v1636_v8 = vpop.eup %1635 }
 0x688   :  { %v964_v10 = vmul.f32 %v1636_v8, %v946_v61 }
 0x68b   :  { %v1638_v9 = vpop.eup %1637 }
 0x68c   :  { %v965_v11 = vmul.f32 %v1638_v9, %v949_v2 }
 0x68e   :  { %v966_v12 = vpack.c.bf16 %v965_v11, %v964_v10 }
 0x690   :  { %1506 = vmatmul.mubr.bf16.vlgmr.msra.gmra.mxu1 %v966_v12 }
 0x750   :  { %v1055_v18 = vpop.f32.mrf.mxu1 }
 0x751   :  { %v1056_v19 = vadd.f32 %v1245_v17, %v1055_v18 }
 0x752   :  { %v1507_v20 = vpop.f32.mrf.mxu1 }
 0x753   :  { %v1254_v21 = vmul.f32 -1.442695, %v1056_v19 }
 0x754   :  { %v1058_v22 = vpop.f32.mrf.mxu1 }
 0x755   :  { %1639 = vpow2.f32 %v1254_v21  ;;  %v1059_v23 = vadd.f32 %v1245_v17, %v1058_v22 }
 0x756   :  { %v1508_v24 = vpop.f32.mrf.mxu1 }
 0x757   :  { %v1255_v25 = vmul.f32 -1.442695, %v1059_v23 }
 0x759   :  { %1641 = vpow2.f32 %v1255_v25 }
 0x762   :  { %v1640_v26 = vpop.eup %1639 }
 0x763   :  { %v1068_v27 = vadd.f32 1.0, %v1640_v26 }
 0x765   :  { %1643 = vrcp.f32 %v1068_v27 }
 0x766   :  { %v1642_v28 = vpop.eup %1641 }
 0x767   :  { %v1069_v29 = vadd.f32 1.0, %v1642_v28 }
 0x769   :  { %1645 = vrcp.f32 %v1069_v29 }
 0x772   :  { %v1644_v30 = vpop.eup %1643 }
 0x773   :  { %v1074_v31 = vmul.f32 %v1644_v30, %v1056_v19 }
 0x775   :  { %v1076_v34 = vadd.f32 %v1074_v31, %v2024_v44 }
 0x776   :  { %v1646_v32 = vpop.eup %1645 }
 0x777   :  { %v1075_v33 = vmul.f32 %v1646_v32, %v1059_v23  ;;  %v1141_v36 = vmul.f32 %v1134_v13, %v1076_v34 }
 0x779   :  { %v1077_v35 = vadd.f32 %v1075_v33, %v2027_v45 }
 0x77b   :  { %v1142_v37 = vmul.f32 %v1137_v15, %v1077_v35  ;;  %v1279_v38 = vpack.c.bf16 %v1077_v35, %v1076_v34 }
 0x77d   :  { %1280 = vst [vmem:[%s2108_s20] sm:$0xff] %v1279_v38   ;;  %v1284_v39 = vpack.c.bf16 %v1142_v37, %v1141_v36 }
 0x77f   :  { %1285 = vst [vmem:[%s2109_s21] sm:$0xff] %v1284_v39  }

// kernel: dimenetpp_forward.18
= control target key start
LH: loop header
LB: loop body
LE: loop exit
PB: predicated region body
PF: predicated region fallthrough
CT: control target
= control target key end

     0   :  { %s2129_s0 = inlined_call_operand.vmem [shape: bf16[16,64], index: 0, kind: input, shape index: {}]   ;;  %s2130_s1 = inlined_call_operand.vmem [shape: bf16[16,128], index: 1, kind: input, shape index: {}]   ;;  %s2131_s2 = inlined_call_operand.vmem [shape: bf16[16,128], index: 2, kind: input, shape index: {}]   ;;  %s2132_s3 = inlined_call_operand.vmem [shape: bf16[16,24], index: 3, kind: input, shape index: {}]   ;;  %s2133_s4 = inlined_call_operand.vmem [shape: bf16[64,128], index: 4, kind: input, shape index: {}]   ;;  %s2134_s5 = inlined_call_operand.vmem [shape: bf16[128,128], index: 5, kind: input, shape index: {}]   ;;  %s2135_s6 = inlined_call_operand.vmem [shape: f32[1,128], index: 6, kind: input, shape index: {}]   ;;  %s2136_s7 = inlined_call_operand.vmem [shape: bf16[128,128], index: 7, kind: input, shape index: {}]   ;;  %s2137_s8 = inlined_call_operand.vmem [shape: f32[1,128], index: 8, kind: input, shape index: {}]   ;;  %s2138_s9 = inlined_call_operand.vmem [shape: bf16[128,128], index: 9, kind: input, shape index: {}]   ;;  %s2139_s10 = inlined_call_operand.vmem [shape: f32[1,128], index: 10, kind: input, shape index: {}]   ;;  %s2140_s11 = inlined_call_operand.vmem [shape: bf16[128,128], index: 11, kind: input, shape index: {}]   ;;  %s2141_s12 = inlined_call_operand.vmem [shape: f32[1,128], index: 12, kind: input, shape index: {}]   ;;  %s2142_s13 = inlined_call_operand.vmem [shape: bf16[128,128], index: 13, kind: input, shape index: {}]   ;;  %s2143_s14 = inlined_call_operand.vmem [shape: f32[1,128], index: 14, kind: input, shape index: {}]   ;;  %s2144_s15 = inlined_call_operand.vmem [shape: bf16[128,128], index: 15, kind: input, shape index: {}]   ;;  %s2145_s16 = inlined_call_operand.vmem [shape: f32[1,128], index: 16, kind: input, shape index: {}]   ;;  %s2146_s17 = inlined_call_operand.vmem [shape: bf16[128,128], index: 17, kind: input, shape index: {}]   ;;  %s2147_s18 = inlined_call_operand.vmem [shape: f32[1,128], index: 18, kind: input, shape index: {}]   ;;  %s2148_s19 = inlined_call_operand.vmem [shape: bf16[24,128], index: 19, kind: input, shape index: {}]   ;;  %s2149_s20 = inlined_call_operand.hbm [shape: bf16[16,128], index: 20, kind: output, shape index: {0}]   ;;  %s2150_s21 = inlined_call_operand.vmem [shape: bf16[16,128], index: 21, kind: output, shape index: {1}]  }
   0x1   :  { %2153 = sst [smem:[#allocation5_spill]] %s2129_s0 }
   0x2   :  { %2154 = sst [smem:[#allocation6_spill]] %s2130_s1 }
   0x3   :  { %2155 = sst [smem:[#allocation7_spill]] %s2131_s2 }
   0x4   :  { %2156 = sst [smem:[#allocation8_spill]] %s2132_s3 }
   0x5   :  { %2157 = sst [smem:[#allocation9_spill]] %s2133_s4 }
   0x6   :  { %2158 = sst [smem:[#allocation10_spill]] %s2134_s5 }
   0x7   :  { %s2159_s26 = sld [smem:[#allocation9_spill]]  ;;  %v1685_v1 = vmov 0.0   ;;  %vm1686_vm0 = vmmov 0   ;;  %vm236_vm1 = vcmask 523264  }
   0x8   :  { %1370 = vmatprep.subr.bf16.mxu0 %v1685_v1  ;;  %1382 = vmatprep.subr.bf16.mxu1 %v1685_v1  ;;  %s2160_s22 = sld [smem:[#allocation5_spill]] }
   0x9   :  { %1378 = vmatprep.mubr.msk.bf16.mxu0 %vm1686_vm0, %v1685_v1  ;;  %1398 = vmatprep.mubr.msk.bf16.mxu1 %vm1686_vm0, %v1685_v1 }
   0xd   :  { %v1535_v0 = vld [vmem:[%s2159_s26 + $0x18] sm:$0xff]   ;;  %v1536_v2 = vld [vmem:[%s2159_s26 + $0x10] sm:$0xff]   ;;  %v1537_v3 = vld [vmem:[%s2159_s26 + $0x8] sm:$0xff]  }
   0xe   :  { %1371 = vmatpush3.bf16.msra.mxu0 %v1535_v0  ;;  %v1538_v4 = vld [vmem:[%s2159_s26] sm:$0xff]  }
   0xf   :  { %1372 = vmatprep.subr.bf16.mxu0 %v1685_v1  ;;  %v1539_v5 = vld [vmem:[%s2160_s22] sm:$0xff]  }
  0x12   :  { %1373 = vmatpush3.bf16.msra.mxu0 %v1536_v2 }
  0x13   :  { %1374 = vmatprep.subr.bf16.mxu0 %v1685_v1 }
  0x16   :  { %1375 = vmatpush3.bf16.msra.mxu0 %v1537_v3 }
  0x17   :  { %1376 = vmatprep.subr.bf16.mxu0 %v1685_v1 }
  0x1a   :  { %1377 = vmatpush3.bf16.msra.mxu0 %v1538_v4 }
  0x1b   :  { %1402 = vmatprep.subr.bf16.mxu0 %v1685_v1 }
  0x1d   :  { %1379 = vmatmul.mubr.msk.bf16.vlgmr.msra.gmra.mxu0 %vm236_vm1, %v1539_v5 }
  0x1e   :  { %1418 = vmatprep.mubr.msk.bf16.mxu0 %vm1686_vm0, %v1685_v1 }
  0x1f   :  { %27 = vsyncpa [#allocation3], 0  ;;  %s2161_s24 = sld [smem:[#allocation10_spill]]  ;;  %v1548_v34 = vld [vmem:[%s2136_s7 + $0x38] sm:$0xff]   ;;  %v1549_v35 = vld [vmem:[%s2136_s7 + $0x30] sm:$0xff]   ;;  %vm1097_vm2 = vcmask 1043456  }
  0x20   :  { %s2162_s25 = sld [smem:[#allocation6_spill]]  ;;  %1403 = vmatpush3.bf16.msra.mxu0 %v1548_v34  ;;  %v1550_v36 = vld [vmem:[%s2136_s7 + $0x28] sm:$0xff]   ;;  %v1551_v37 = vld [vmem:[%s2136_s7 + $0x20] sm:$0xff]   ;;  %v1552_v38 = vld [vmem:[%s2136_s7 + $0x18] sm:$0xff]   ;;  %vm1093_vm3 = vcmask 195584  }
  0x21   :  { %1404 = vmatprep.subr.bf16.mxu0 %v1685_v1  ;;  %v1553_v39 = vld [vmem:[%s2136_s7 + $0x10] sm:$0xff]   ;;  %v1554_v40 = vld [vmem:[%s2136_s7 + $0x8] sm:$0xff]   ;;  %v1555_v41 = vld [vmem:[%s2136_s7] sm:$0xff]   ;;  %s2164_s23 = sld [smem:[#allocation8_spill]] }
  0x22   :  { %v1192_v42 = vld [vmem:[%s2135_s6] ss:$0 sm:$0xff]  ;;  %v1556_v60 = vld [vmem:[%s2138_s9 + $0x38] sm:$0xff]   ;;  %v1557_v61 = vld [vmem:[%s2138_s9 + $0x30] sm:$0xff]  }
  0x23   :  { %v1558_v62 = vld [vmem:[%s2138_s9 + $0x28] sm:$0xff]   ;;  %v1559_v63 = vld [vmem:[%s2138_s9 + $0x20] sm:$0xff]   ;;  %v1560_v0 = vld [vmem:[%s2138_s9 + $0x18] sm:$0xff]  }
  0x24   :  { %1405 = vmatpush3.bf16.msra.mxu0 %v1549_v35  ;;  %v1561_v2 = vld [vmem:[%s2138_s9 + $0x10] sm:$0xff]   ;;  %v1562_v3 = vld [vmem:[%s2138_s9 + $0x8] sm:$0xff]   ;;  %v1563_v4 = vld [vmem:[%s2138_s9] sm:$0xff]  }
  0x25   :  { %v1540_v6 = vld [vmem:[%s2161_s24 + $0x38] sm:$0xff]   ;;  %v1541_v7 = vld [vmem:[%s2161_s24 + $0x30] sm:$0xff]   ;;  %v1542_v8 = vld [vmem:[%s2161_s24 + $0x28] sm:$0xff]   ;;  %1406 = vmatprep.subr.bf16.mxu0 %v1685_v1 }
  0x26   :  { %1383 = vmatpush3.bf16.msra.mxu1 %v1540_v6  ;;  %v1543_v9 = vld [vmem:[%s2161_s24 + $0x20] sm:$0xff]   ;;  %v1544_v10 = vld [vmem:[%s2161_s24 + $0x18] sm:$0xff]   ;;  %v1545_v11 = vld [vmem:[%s2161_s24 + $0x10] sm:$0xff]  }
  0x27   :  { %1384 = vmatprep.subr.bf16.mxu1 %v1685_v1  ;;  %v1546_v12 = vld [vmem:[%s2161_s24 + $0x8] sm:$0xff]   ;;  %v1547_v13 = vld [vmem:[%s2161_s24] sm:$0xff]  }
  0x28   :  { %v1282_v25 = vld [vmem:[%s2162_s25] sm:$0xff]   ;;  %1407 = vmatpush3.bf16.msra.mxu0 %v1550_v36 }
  0x29   :  { %v1283_v26 = vunpack.c.l.bf16 %v1282_v25  ;;  %v1284_v28 = vunpack.c.h.bf16 %v1282_v25  ;;  %1408 = vmatprep.subr.bf16.mxu0 %v1685_v1  ;;  %v1203_v5 = vld [vmem:[%s2137_s8] ss:$0 sm:$0xff]  ;;  %v1564_v25 = vld [vmem:[%s2140_s11 + $0x38] sm:$0xff]  }
  0x2a   :  { %1385 = vmatpush3.bf16.msra.mxu1 %v1541_v7 }
  0x2b   :  { %1386 = vmatprep.subr.bf16.mxu1 %v1685_v1 }
  0x2c   :  { %1409 = vmatpush3.bf16.msra.mxu0 %v1551_v37 }
  0x2d   :  { %1410 = vmatprep.subr.bf16.mxu0 %v1685_v1 }
  0x2e   :  { %1387 = vmatpush3.bf16.msra.mxu1 %v1542_v8 }
  0x2f   :  { %1388 = vmatprep.subr.bf16.mxu1 %v1685_v1 }
  0x30   :  { %1411 = vmatpush3.bf16.msra.mxu0 %v1552_v38 }
  0x31   :  { %1412 = vmatprep.subr.bf16.mxu0 %v1685_v1 }
  0x32   :  { %1389 = vmatpush3.bf16.msra.mxu1 %v1543_v9 }
  0x33   :  { %1390 = vmatprep.subr.bf16.mxu1 %v1685_v1 }
  0x34   :  { %1413 = vmatpush3.bf16.msra.mxu0 %v1553_v39 }
  0x35   :  { %1414 = vmatprep.subr.bf16.mxu0 %v1685_v1 }
  0x36   :  { %1391 = vmatpush3.bf16.msra.mxu1 %v1544_v10 }
  0x37   :  { %1392 = vmatprep.subr.bf16.mxu1 %v1685_v1 }
  0x38   :  { %1415 = vmatpush3.bf16.msra.mxu0 %v1554_v40 }
  0x39   :  { %1416 = vmatprep.subr.bf16.mxu0 %v1685_v1 }
  0x3a   :  { %1393 = vmatpush3.bf16.msra.mxu1 %v1545_v11 }
  0x3b   :  { %1394 = vmatprep.subr.bf16.mxu1 %v1685_v1 }
  0x3c   :  { %1417 = vmatpush3.bf16.msra.mxu0 %v1555_v41 }
  0x3d   :  { %1442 = vmatprep.subr.bf16.mxu0 %v1685_v1 }
  0x3e   :  { %1395 = vmatpush3.bf16.msra.mxu1 %v1546_v12 }
  0x3f   :  { %1396 = vmatprep.subr.bf16.mxu1 %v1685_v1 }
  0x42   :  { %1397 = vmatpush3.bf16.msra.mxu1 %v1547_v13 }
  0x43   :  { %1422 = vmatprep.subr.bf16.mxu1 %v1685_v1 }
  0xdd   :  { %v274_v14 = vpop.f32.mrf.mxu0 }
  0xde   :  { %v1190_v15 = vmul.f32 -1.442695, %v274_v14 }
  0xdf   :  { %v1380_v16 = vpop.f32.mrf.mxu0 }
  0xe0   :  { %1599 = vpow2.f32 %v1190_v15 }
  0xe1   :  { %v277_v17 = vpop.f32.mrf.mxu0 }
  0xe2   :  { %v1191_v18 = vmul.f32 -1.442695, %v277_v17 }
  0xe3   :  { %v1381_v19 = vpop.f32.mrf.mxu0 }
  0xe4   :  { %1601 = vpow2.f32 %v1191_v18 }
  0xed   :  { %v1600_v20 = vpop.eup %1599 }
  0xee   :  { %v287_v21 = vadd.f32 1.0, %v1600_v20 }
  0xf0   :  { %1603 = vrcp.f32 %v287_v21 }
  0xf1   :  { %v1602_v22 = vpop.eup %1601 }
  0xf2   :  { %v288_v23 = vadd.f32 1.0, %v1602_v22 }
  0xf4   :  { %1605 = vrcp.f32 %v288_v23 }
  0xfd   :  { %v1604_v24 = vpop.eup %1603 }
  0xfe   :  { %v293_v27 = vmul.f32 %v1604_v24, %v274_v14 }
 0x100   :  { %v1862_v31 = vadd.f32 %v1283_v26, %v293_v27  ;;  %v1565_v26 = vld [vmem:[%s2140_s11 + $0x30] sm:$0xff]   ;;  %v1566_v27 = vld [vmem:[%s2140_s11 + $0x28] sm:$0xff]  }
 0x101   :  { %v1606_v29 = vpop.eup %1605 }
 0x102   :  { %v294_v30 = vmul.f32 %v1606_v29, %v277_v17  ;;  %v1568_v29 = vld [vmem:[%s2140_s11 + $0x18] sm:$0xff]  }
 0x104   :  { %v1864_v32 = vadd.f32 %v1284_v28, %v294_v30  ;;  %v1567_v28 = vld [vmem:[%s2140_s11 + $0x20] sm:$0xff]   ;;  %v1569_v30 = vld [vmem:[%s2140_s11 + $0x10] sm:$0xff]  }
 0x106   :  { %v299_v33 = vpack.c.bf16 %v1864_v32, %v1862_v31 }
 0x108   :  { %1399 = vmatmul.mubr.bf16.vlgmr.msra.gmra.mxu1 %v299_v33  ;;  %v1214_v33 = vld [vmem:[%s2139_s10] ss:$0 sm:$0xff]  ;;  %s2163_s10 = sld [smem:[#allocation7_spill]] }
 0x109   :  { %1438 = vmatprep.mubr.msk.bf16.mxu1 %vm1686_vm0, %v1685_v1  ;;  %1423 = vmatpush3.bf16.msra.mxu1 %v1556_v60  ;;  %v1576_v60 = vld [vmem:[%s2142_s13 + $0x18] sm:$0xff]  }
 0x10a   :  { %1424 = vmatprep.subr.bf16.mxu1 %v1685_v1 }
 0x10d   :  { %1425 = vmatpush3.bf16.msra.mxu1 %v1557_v61  ;;  %v1577_v61 = vld [vmem:[%s2142_s13 + $0x10] sm:$0xff]  }
 0x10e   :  { %1426 = vmatprep.subr.bf16.mxu1 %v1685_v1 }
 0x111   :  { %1427 = vmatpush3.bf16.msra.mxu1 %v1558_v62  ;;  %v1578_v62 = vld [vmem:[%s2142_s13 + $0x8] sm:$0xff]  }
 0x112   :  { %1428 = vmatprep.subr.bf16.mxu1 %v1685_v1 }
 0x115   :  { %1429 = vmatpush3.bf16.msra.mxu1 %v1559_v63  ;;  %v1579_v63 = vld [vmem:[%s2142_s13] sm:$0xff]  }
 0x116   :  { %1430 = vmatprep.subr.bf16.mxu1 %v1685_v1 }
 0x119   :  { %1431 = vmatpush3.bf16.msra.mxu1 %v1560_v0  ;;  %v1225_v0 = vld [vmem:[%s2141_s12] ss:$0 sm:$0xff] }
 0x11a   :  { %1432 = vmatprep.subr.bf16.mxu1 %v1685_v1 }
 0x11d   :  { %1433 = vmatpush3.bf16.msra.mxu1 %v1561_v2 }
 0x11e   :  { %1434 = vmatprep.subr.bf16.mxu1 %v1685_v1 }
 0x121   :  { %1435 = vmatpush3.bf16.msra.mxu1 %v1562_v3 }
 0x122   :  { %1436 = vmatprep.subr.bf16.mxu1 %v1685_v1 }
 0x125   :  { %1437 = vmatpush3.bf16.msra.mxu1 %v1563_v4 }
 0x126   :  { %1462 = vmatprep.subr.bf16.mxu1 %v1685_v1 }
 0x1c8   :  { %v388_v43 = vpop.f32.mrf.mxu1 }
 0x1c9   :  { %v389_v44 = vadd.f32 %v1192_v42, %v388_v43 }
 0x1ca   :  { %v1400_v45 = vpop.f32.mrf.mxu1 }
 0x1cb   :  { %v1201_v46 = vmul.f32 -1.442695, %v389_v44 }
 0x1cc   :  { %v391_v47 = vpop.f32.mrf.mxu1 }
 0x1cd   :  { %1607 = vpow2.f32 %v1201_v46  ;;  %v392_v48 = vadd.f32 %v1192_v42, %v391_v47  ;;  %v1286_v47 = vld [vmem:[%s2163_s10] sm:$0xff]  }
 0x1ce   :  { %v1401_v49 = vpop.f32.mrf.mxu1 }
 0x1cf   :  { %v1202_v50 = vmul.f32 -1.442695, %v392_v48 }
 0x1d1   :  { %1609 = vpow2.f32 %v1202_v50  ;;  %v1288_v50 = vunpack.c.h.bf16 %v1286_v47 }
 0x1da   :  { %v1608_v51 = vpop.eup %1607 }
 0x1db   :  { %v401_v52 = vadd.f32 1.0, %v1608_v51 }
 0x1dd   :  { %1611 = vrcp.f32 %v401_v52 }
 0x1de   :  { %v1610_v53 = vpop.eup %1609 }
 0x1df   :  { %v402_v54 = vadd.f32 1.0, %v1610_v53 }
 0x1e1   :  { %1613 = vrcp.f32 %v402_v54 }
 0x1ea   :  { %v1612_v55 = vpop.eup %1611 }
 0x1eb   :  { %v407_v57 = vmul.f32 %v1612_v55, %v389_v44 }
 0x1ee   :  { %v1614_v56 = vpop.eup %1613 }
 0x1ef   :  { %v408_v58 = vmul.f32 %v1614_v56, %v392_v48  ;;  %v1287_v48 = vunpack.c.l.bf16 %v1286_v47  ;;  %v1572_v56 = vld [vmem:[%s2142_s13 + $0x38] sm:$0xff]  }
 0x1f0   :  { %v1588_v47 = vld [vmem:[%s2146_s17 + $0x38] sm:$0xff]  }
 0x1f1   :  { %v409_v59 = vpack.c.bf16 %v408_v58, %v407_v57  ;;  %v1573_v57 = vld [vmem:[%s2142_s13 + $0x30] sm:$0xff]   ;;  %v1574_v58 = vld [vmem:[%s2142_s13 + $0x28] sm:$0xff]  }
 0x1f3   :  { %1419 = vmatmul.mubr.bf16.vlgmr.msra.gmra.mxu0 %v409_v59  ;;  %v1575_v59 = vld [vmem:[%s2142_s13 + $0x20] sm:$0xff]  }
 0x1f4   :  { %1458 = vmatprep.mubr.msk.bf16.mxu0 %vm1686_vm0, %v1685_v1  ;;  %1443 = vmatpush3.bf16.msra.mxu0 %v1564_v25  ;;  %v1586_v25 = vld [vmem:[%s2144_s15 + $0x8] sm:$0xff]  }
 0x1f5   :  { %1444 = vmatprep.subr.bf16.mxu0 %v1685_v1 }
 0x1f8   :  { %1445 = vmatpush3.bf16.msra.mxu0 %v1565_v26  ;;  %v1587_v26 = vld [vmem:[%s2144_s15] sm:$0xff]  }
 0x1f9   :  { %1446 = vmatprep.subr.bf16.mxu0 %v1685_v1 }
 0x1fc   :  { %1447 = vmatpush3.bf16.msra.mxu0 %v1566_v27  ;;  %v1236_v27 = vld [vmem:[%s2143_s14] ss:$0 sm:$0xff] }
 0x1fd   :  { %1448 = vmatprep.subr.bf16.mxu0 %v1685_v1 }
 0x200   :  { %1449 = vmatpush3.bf16.msra.mxu0 %v1567_v28 }
 0x201   :  { %1450 = vmatprep.subr.bf16.mxu0 %v1685_v1 }
 0x204   :  { %1451 = vmatpush3.bf16.msra.mxu0 %v1568_v29 }
 0x205   :  { %1452 = vmatprep.subr.bf16.mxu0 %v1685_v1 }
 0x208   :  { %1453 = vmatpush3.bf16.msra.mxu0 %v1569_v30 }
 0x209   :  { %1454 = vmatprep.subr.bf16.mxu0 %v1685_v1 }
 0x2b3   :  { %v498_v6 = vpop.f32.mrf.mxu0 }
 0x2b4   :  { %v499_v7 = vadd.f32 %v1203_v5, %v498_v6 }
 0x2b5   :  { %v1420_v8 = vpop.f32.mrf.mxu0 }
 0x2b6   :  { %v1212_v9 = vmul.f32 -1.442695, %v499_v7 }
 0x2b7   :  { %v501_v10 = vpop.f32.mrf.mxu0 }
 0x2b8   :  { %1615 = vpow2.f32 %v1212_v9  ;;  %v502_v11 = vadd.f32 %v1203_v5, %v501_v10 }
 0x2b9   :  { %v1421_v12 = vpop.f32.mrf.mxu0 }
 0x2ba   :  { %v1213_v13 = vmul.f32 -1.442695, %v502_v11 }
 0x2bc   :  { %1617 = vpow2.f32 %v1213_v13 }
 0x2c5   :  { %v1616_v14 = vpop.eup %1615 }
 0x2c6   :  { %v511_v15 = vadd.f32 1.0, %v1616_v14 }
 0x2c8   :  { %1619 = vrcp.f32 %v511_v15 }
 0x2c9   :  { %v1618_v16 = vpop.eup %1617 }
 0x2ca   :  { %v512_v17 = vadd.f32 1.0, %v1618_v16 }
 0x2cc   :  { %1621 = vrcp.f32 %v512_v17 }
 0x2d5   :  { %v1620_v18 = vpop.eup %1619 }
 0x2d6   :  { %v517_v19 = vmul.f32 %v1620_v18, %v499_v7 }
 0x2d8   :  { %v519_v22 = vadd.f32 %v517_v19, %v1862_v31  ;;  %v1570_v31 = vld [vmem:[%s2140_s11 + $0x8] sm:$0xff]   ;;  %v1580_v19 = vld [vmem:[%s2144_s15 + $0x38] sm:$0xff]  }
 0x2d9   :  { %v1622_v20 = vpop.eup %1621  ;;  %1455 = vmatpush3.bf16.msra.mxu0 %v1570_v31 }
 0x2da   :  { %v518_v21 = vmul.f32 %v1622_v20, %v502_v11  ;;  %1456 = vmatprep.subr.bf16.mxu0 %v1685_v1  ;;  %v1581_v20 = vld [vmem:[%s2144_s15 + $0x30] sm:$0xff]  }
 0x2dc   :  { %v520_v23 = vadd.f32 %v518_v21, %v1864_v32  ;;  %v1571_v32 = vld [vmem:[%s2140_s11] sm:$0xff]   ;;  %v1582_v21 = vld [vmem:[%s2144_s15 + $0x28] sm:$0xff]  }
 0x2dd   :  { %1457 = vmatpush3.bf16.msra.mxu0 %v1571_v32 }
 0x2de   :  { %v521_v24 = vpack.c.bf16 %v520_v23, %v519_v22  ;;  %1482 = vmatprep.subr.bf16.mxu0 %v1685_v1  ;;  %v1583_v22 = vld [vmem:[%s2144_s15 + $0x20] sm:$0xff]   ;;  %v1584_v23 = vld [vmem:[%s2144_s15 + $0x18] sm:$0xff]  }
 0x2e0   :  { %1439 = vmatmul.mubr.bf16.vlgmr.msra.gmra.mxu1 %v521_v24  ;;  %v1585_v24 = vld [vmem:[%s2144_s15 + $0x10] sm:$0xff]  }
 0x2e1   :  { %1478 = vmatprep.mubr.msk.bf16.mxu1 %vm1686_vm0, %v1685_v1  ;;  %1463 = vmatpush3.bf16.msra.mxu1 %v1572_v56 }
 0x2e2   :  { %1464 = vmatprep.subr.bf16.mxu1 %v1685_v1 }
 0x2e5   :  { %1465 = vmatpush3.bf16.msra.mxu1 %v1573_v57  ;;  %v1597_v57 = vld [vmem:[%s2148_s19] sm:$0xff]  }
 0x2e6   :  { %1466 = vmatprep.subr.bf16.mxu1 %v1685_v1 }
 0x2e9   :  { %1467 = vmatpush3.bf16.msra.mxu1 %v1574_v58  ;;  %v1598_v58 = vld [vmem:[%s2164_s23] sm:$0xff]  }
 0x2ea   :  { %1468 = vmatprep.subr.bf16.mxu1 %v1685_v1 }
 0x2ed   :  { %1469 = vmatpush3.bf16.msra.mxu1 %v1575_v59  ;;  %v1247_v59 = vld [vmem:[%s2145_s16] ss:$0 sm:$0xff] }
 0x2ee   :  { %1470 = vmatprep.subr.bf16.mxu1 %v1685_v1 }
 0x2f1   :  { %1471 = vmatpush3.bf16.msra.mxu1 %v1576_v60 }
 0x2f2   :  { %1472 = vmatprep.subr.bf16.mxu1 %v1685_v1 }
 0x2f5   :  { %1473 = vmatpush3.bf16.msra.mxu1 %v1577_v61 }
 0x2f6   :  { %1474 = vmatprep.subr.bf16.mxu1 %v1685_v1 }
 0x2f9   :  { %1475 = vmatpush3.bf16.msra.mxu1 %v1578_v62 }
 0x2fa   :  { %1476 = vmatprep.subr.bf16.mxu1 %v1685_v1 }
 0x2fd   :  { %1477 = vmatpush3.bf16.msra.mxu1 %v1579_v63 }
 0x2fe   :  { %1502 = vmatprep.subr.bf16.mxu1 %v1685_v1 }
 0x3a0   :  { %v610_v34 = vpop.f32.mrf.mxu1 }
 0x3a1   :  { %v611_v35 = vadd.f32 %v1214_v33, %v610_v34 }
 0x3a2   :  { %v1440_v36 = vpop.f32.mrf.mxu1 }
 0x3a3   :  { %v1223_v37 = vmul.f32 -1.442695, %v611_v35 }
 0x3a4   :  { %v613_v38 = vpop.f32.mrf.mxu1 }
 0x3a5   :  { %1623 = vpow2.f32 %v1223_v37  ;;  %v614_v39 = vadd.f32 %v1214_v33, %v613_v38 }
 0x3a6   :  { %v1441_v40 = vpop.f32.mrf.mxu1 }
 0x3a7   :  { %v1224_v41 = vmul.f32 -1.442695, %v614_v39 }
 0x3a9   :  { %1625 = vpow2.f32 %v1224_v41 }
 0x3b2   :  { %v1624_v42 = vpop.eup %1623 }
 0x3b3   :  { %v623_v43 = vadd.f32 1.0, %v1624_v42 }
 0x3b5   :  { %1627 = vrcp.f32 %v623_v43 }
 0x3b6   :  { %v1626_v44 = vpop.eup %1625 }
 0x3b7   :  { %v624_v45 = vadd.f32 1.0, %v1626_v44 }
 0x3b9   :  { %1629 = vrcp.f32 %v624_v45 }
 0x3c2   :  { %v1628_v46 = vpop.eup %1627 }
 0x3c3   :  { %v629_v49 = vmul.f32 %v1628_v46, %v611_v35 }
 0x3c5   :  { %v1984_v53 = vadd.f32 %v1287_v48, %v629_v49  ;;  %v1589_v48 = vld [vmem:[%s2146_s17 + $0x30] sm:$0xff]   ;;  %v1590_v49 = vld [vmem:[%s2146_s17 + $0x28] sm:$0xff]  }
 0x3c6   :  { %v1630_v51 = vpop.eup %1629 }
 0x3c7   :  { %v630_v52 = vmul.f32 %v1630_v51, %v614_v39  ;;  %v1592_v51 = vld [vmem:[%s2146_s17 + $0x18] sm:$0xff]  }
 0x3c9   :  { %v1986_v54 = vadd.f32 %v1288_v50, %v630_v52  ;;  %v1591_v50 = vld [vmem:[%s2146_s17 + $0x20] sm:$0xff]   ;;  %v1593_v52 = vld [vmem:[%s2146_s17 + $0x10] sm:$0xff]  }
 0x3cb   :  { %v635_v55 = vpack.c.bf16 %v1986_v54, %v1984_v53 }
 0x3cd   :  { %1459 = vmatmul.mubr.bf16.vlgmr.msra.gmra.mxu0 %v635_v55  ;;  %v1596_v55 = vld [vmem:[%s2148_s19 + $0x8] ss:$0 sps:$4 sm:$0xff]  }
 0x3ce   :  { %1498 = vmatprep.mubr.msk.bf16.mxu0 %vm1686_vm0, %v1685_v1  ;;  %1483 = vmatpush3.bf16.msra.mxu0 %v1580_v19  ;;  %v1099_v56 = vsel %vm1097_vm2, %v1596_v55, 0 }
 0x3cf   :  { %1484 = vmatprep.subr.bf16.mxu0 %v1685_v1 }
 0x3d2   :  { %1485 = vmatpush3.bf16.msra.mxu0 %v1581_v20 }
 0x3d3   :  { %1486 = vmatprep.subr.bf16.mxu0 %v1685_v1 }
 0x3d6   :  { %1487 = vmatpush3.bf16.msra.mxu0 %v1582_v21 }
 0x3d7   :  { %1488 = vmatprep.subr.bf16.mxu0 %v1685_v1 }
 0x3da   :  { %1489 = vmatpush3.bf16.msra.mxu0 %v1583_v22 }
 0x3db   :  { %1490 = vmatprep.subr.bf16.mxu0 %v1685_v1 }
 0x3de   :  { %1491 = vmatpush3.bf16.msra.mxu0 %v1584_v23 }
 0x3df   :  { %1492 = vmatprep.subr.bf16.mxu0 %v1685_v1 }
 0x3e2   :  { %1493 = vmatpush3.bf16.msra.mxu0 %v1585_v24 }
 0x3e3   :  { %1494 = vmatprep.subr.bf16.mxu0 %v1685_v1 }
 0x3e6   :  { %1495 = vmatpush3.bf16.msra.mxu0 %v1586_v25 }
 0x3e7   :  { %1496 = vmatprep.subr.bf16.mxu0 %v1685_v1 }
 0x3ea   :  { %1497 = vmatpush3.bf16.msra.mxu0 %v1587_v26 }
 0x3eb   :  { %1522 = vmatprep.subr.bf16.mxu0 %v1685_v1 }
 0x48d   :  { %v724_v2 = vpop.f32.mrf.mxu0 }
 0x48e   :  { %v725_v3 = vadd.f32 %v1225_v0, %v724_v2 }
 0x48f   :  { %v1460_v4 = vpop.f32.mrf.mxu0 }
 0x490   :  { %v1234_v5 = vmul.f32 -1.442695, %v725_v3 }
 0x491   :  { %v727_v6 = vpop.f32.mrf.mxu0 }
 0x492   :  { %1631 = vpow2.f32 %v1234_v5  ;;  %v728_v7 = vadd.f32 %v1225_v0, %v727_v6 }
 0x493   :  { %v1461_v8 = vpop.f32.mrf.mxu0 }
 0x494   :  { %v1235_v9 = vmul.f32 -1.442695, %v728_v7 }
 0x496   :  { %1633 = vpow2.f32 %v1235_v9 }
 0x49f   :  { %v1632_v10 = vpop.eup %1631 }
 0x4a0   :  { %v737_v11 = vadd.f32 1.0, %v1632_v10 }
 0x4a2   :  { %1635 = vrcp.f32 %v737_v11 }
 0x4a3   :  { %v1634_v12 = vpop.eup %1633 }
 0x4a4   :  { %v738_v13 = vadd.f32 1.0, %v1634_v12 }
 0x4a6   :  { %1637 = vrcp.f32 %v738_v13 }
 0x4af   :  { %v1636_v14 = vpop.eup %1635 }
 0x4b0   :  { %v743_v16 = vmul.f32 %v1636_v14, %v725_v3 }
 0x4b3   :  { %v1638_v15 = vpop.eup %1637 }
 0x4b4   :  { %v744_v17 = vmul.f32 %v1638_v15, %v728_v7 }
 0x4b6   :  { %v745_v18 = vpack.c.bf16 %v744_v17, %v743_v16  ;;  %v1258_v17 = vld [vmem:[%s2147_s18] ss:$0 sm:$0xff]  ;;  %s1687_s18 = smov [#allocation2]  }
 0x4b7   :  { %s1169_s2 = sshll.u32 %s1687_s18, 4  ;;  %s1170_s2 = int_to_ptr.vmem [resolvable:$true] %s1169_s2 }
 0x4b8   :  { %1479 = vmatmul.mubr.bf16.vlgmr.msra.gmra.mxu1 %v745_v18  ;;  %s1663_s14 = scalar_lea.vmem %s1170_s2, 128  ;;  %p1668_p1 = scmp.lt.s32.totalorder %s1170_s2, %s1170_s2 }
 0x4b9   :  { %1518 = vmatprep.mubr.msk.bf16.mxu1 %vm1686_vm0, %v1685_v1  ;;  %1503 = vmatpush3.bf16.msra.mxu1 %v1588_v47  ;;  %p1664_p0 = scmp.ne.s32.totalorder %s1170_s2, %s1663_s14  ;;  %p1669_p2 = scmp.lt.s32.totalorder %s1663_s14, %s1663_s14 }
 0x4ba   :  { %1504 = vmatprep.subr.bf16.mxu1 %v1685_v1 }
 0x4bb   :  { %p1670_p3 = por %p1669_p2, %p1668_p1 }
 0x4bd   :  { %1505 = vmatpush3.bf16.msra.mxu1 %v1589_v48  ;;  %p1671_p4 = pnand %p1670_p3, %p1664_p0 }
 0x4be   :  { %1506 = vmatprep.subr.bf16.mxu1 %v1685_v1 }
 0x4c1   :  { %1507 = vmatpush3.bf16.msra.mxu1 %v1590_v49 }
 0x4c2   :  { %1508 = vmatprep.subr.bf16.mxu1 %v1685_v1 }
 0x4c5   :  { %1509 = vmatpush3.bf16.msra.mxu1 %v1591_v50 }
 0x4c6   :  { %1510 = vmatprep.subr.bf16.mxu1 %v1685_v1 }
 0x4c9   :  { %1511 = vmatpush3.bf16.msra.mxu1 %v1592_v51 }
 0x4ca   :  { %1512 = vmatprep.subr.bf16.mxu1 %v1685_v1 }
 0x4cd   :  { %1513 = vmatpush3.bf16.msra.mxu1 %v1593_v52 }
 0x4ce   :  { %1514 = vmatprep.subr.bf16.mxu1 %v1685_v1 }
 0x578   :  { %v834_v28 = vpop.f32.mrf.mxu1 }
 0x579   :  { %v835_v29 = vadd.f32 %v1236_v27, %v834_v28 }
 0x57a   :  { %v1480_v30 = vpop.f32.mrf.mxu1 }
 0x57b   :  { %v1245_v31 = vmul.f32 -1.442695, %v835_v29 }
 0x57c   :  { %v837_v32 = vpop.f32.mrf.mxu1 }
 0x57d   :  { %1639 = vpow2.f32 %v1245_v31  ;;  %v838_v33 = vadd.f32 %v1236_v27, %v837_v32 }
 0x57e   :  { %v1481_v34 = vpop.f32.mrf.mxu1 }
 0x57f   :  { %v1246_v35 = vmul.f32 -1.442695, %v838_v33 }
 0x581   :  { %1641 = vpow2.f32 %v1246_v35 }
 0x58a   :  { %v1640_v36 = vpop.eup %1639 }
 0x58b   :  { %v847_v37 = vadd.f32 1.0, %v1640_v36 }
 0x58d   :  { %1643 = vrcp.f32 %v847_v37 }
 0x58e   :  { %v1642_v38 = vpop.eup %1641 }
 0x58f   :  { %v848_v39 = vadd.f32 1.0, %v1642_v38 }
 0x591   :  { %1645 = vrcp.f32 %v848_v39 }
 0x59a   :  { %v1644_v40 = vpop.eup %1643 }
 0x59b   :  { %v853_v41 = vmul.f32 %v1644_v40, %v835_v29 }
 0x59d   :  { %v2065_v44 = vadd.f32 %v853_v41, %v1984_v53  ;;  %v1594_v53 = vld [vmem:[%s2146_s17 + $0x8] sm:$0xff]  }
 0x59e   :  { %v1646_v42 = vpop.eup %1645  ;;  %1515 = vmatpush3.bf16.msra.mxu1 %v1594_v53 }
 0x59f   :  { %v854_v43 = vmul.f32 %v1646_v42, %v838_v33  ;;  %1516 = vmatprep.subr.bf16.mxu1 %v1685_v1 }
 0x5a1   :  { %v2068_v45 = vadd.f32 %v854_v43, %v1986_v54  ;;  %v1595_v54 = vld [vmem:[%s2146_s17] sm:$0xff]  }
 0x5a2   :  { %1517 = vmatpush3.bf16.msra.mxu1 %v1595_v54 }
 0x5a3   :  { %v857_v46 = vpack.c.bf16 %v2068_v45, %v2065_v44 }
 0x5a5   :  { %1499 = vmatmul.mubr.bf16.vlgmr.msra.gmra.mxu0 %v857_v46 }
 0x5a6   :  { %1526 = vmatprep.mubr.msk.bf16.mxu0 %vm1686_vm0, %v1685_v1  ;;  %1523 = vmatpush3.bf16.msra.mxu0 %v1099_v56 }
 0x5a7   :  { %1524 = vmatprep.subr.bf16.mxu0 %v1685_v1 }
 0x5aa   :  { %1525 = vmatpush3.bf16.msra.mxu0 %v1597_v57 }
 0x5ad   :  { %1527 = vmatmul.mubr.msk.bf16.vlgmr.msra.gmra.mxu0 %vm1093_vm3, %v1598_v58 }
 0x665   :  { %v946_v60 = vpop.f32.mrf.mxu0 }
 0x666   :  { %v947_v61 = vadd.f32 %v1247_v59, %v946_v60 }
 0x667   :  { %v1500_v62 = vpop.f32.mrf.mxu0 }
 0x668   :  { %v1256_v63 = vmul.f32 -1.442695, %v947_v61 }
 0x669   :  { %v949_v0 = vpop.f32.mrf.mxu0 }
 0x66a   :  { %1647 = vpow2.f32 %v1256_v63  ;;  %v950_v2 = vadd.f32 %v1247_v59, %v949_v0 }
 0x66b   :  { %v1501_v3 = vpop.f32.mrf.mxu0 }
 0x66c   :  { %v1257_v1 = vmul.f32 -1.442695, %v950_v2 }
 0x66d   :  { %v1135_v13 = vpop.f32.mrf.mxu0 }
 0x66e   :  { %1649 = vpow2.f32 %v1257_v1 }
 0x66f   :  { %v1528_v14 = vpop.f32.mrf.mxu0 }
 0x671   :  { %v1138_v15 = vpop.f32.mrf.mxu0 }
 0x673   :  { %v1529_v16 = vpop.f32.mrf.mxu0 }
 0x677   :  { %v1648_v4 = vpop.eup %1647 }
 0x678   :  { %v959_v5 = vadd.f32 1.0, %v1648_v4 }
 0x67a   :  { %1651 = vrcp.f32 %v959_v5 }
 0x67b   :  { %v1650_v6 = vpop.eup %1649 }
 0x67c   :  { %v960_v7 = vadd.f32 1.0, %v1650_v6 }
 0x67e   :  { %1653 = vrcp.f32 %v960_v7 }
 0x687   :  { %v1652_v8 = vpop.eup %1651 }
 0x688   :  { %v965_v10 = vmul.f32 %v1652_v8, %v947_v61 }
 0x68b   :  { %v1654_v9 = vpop.eup %1653 }
 0x68c   :  { %v966_v11 = vmul.f32 %v1654_v9, %v950_v2 }
 0x68e   :  { %v967_v12 = vpack.c.bf16 %v966_v11, %v965_v10 }
 0x690   :  { %1519 = vmatmul.mubr.bf16.vlgmr.msra.gmra.mxu1 %v967_v12 }
 0x750   :  { %v1056_v18 = vpop.f32.mrf.mxu1 }
 0x751   :  { %v1057_v19 = vadd.f32 %v1258_v17, %v1056_v18 }
 0x752   :  { %v1520_v20 = vpop.f32.mrf.mxu1 }
 0x753   :  { %v1267_v21 = vmul.f32 -1.442695, %v1057_v19 }
 0x754   :  { %v1059_v22 = vpop.f32.mrf.mxu1 }
 0x755   :  { %1655 = vpow2.f32 %v1267_v21  ;;  %v1060_v23 = vadd.f32 %v1258_v17, %v1059_v22 }
 0x756   :  { %v1521_v24 = vpop.f32.mrf.mxu1 }
 0x757   :  { %v1268_v25 = vmul.f32 -1.442695, %v1060_v23 }
 0x759   :  { %1657 = vpow2.f32 %v1268_v25 }
 0x762   :  { %v1656_v26 = vpop.eup %1655 }
 0x763   :  { %v1069_v27 = vadd.f32 1.0, %v1656_v26 }
 0x765   :  { %1659 = vrcp.f32 %v1069_v27 }
 0x766   :  { %v1658_v28 = vpop.eup %1657 }
 0x767   :  { %v1070_v29 = vadd.f32 1.0, %v1658_v28 }
 0x769   :  { %1661 = vrcp.f32 %v1070_v29 }
 0x772   :  { %v1660_v30 = vpop.eup %1659 }
 0x773   :  { %v1075_v31 = vmul.f32 %v1660_v30, %v1057_v19 }
 0x775   :  { %v1077_v34 = vadd.f32 %v1075_v31, %v2065_v44 }
 0x776   :  { %v1662_v32 = vpop.eup %1661 }
 0x777   :  { %v1076_v33 = vmul.f32 %v1662_v32, %v1060_v23  ;;  %v1142_v36 = vmul.f32 %v1135_v13, %v1077_v34 }
 0x779   :  { %v1078_v35 = vadd.f32 %v1076_v33, %v2068_v45 }
 0x77b   :  { %v1143_v37 = vmul.f32 %v1138_v15, %v1078_v35  ;;  %v1292_v38 = vpack.c.bf16 %v1078_v35, %v1077_v34 }
 0x77d   :  { %1293 = vst [vmem:[#allocation2] sm:$0xff] %v1292_v38   ;;  %v1297_v39 = vpack.c.bf16 %v1143_v37, %v1142_v36 }
 0x77e   :  { %1674 = shalt.err (!%p1671_p4)
}
 0x77f   :  { %s1688_s15 = smov 64   ;;  %s1689_s24 = smov 4   ;;  %1298 = vst [vmem:[%s2150_s21] sm:$0xff] %v1297_v39  }
 0x780   :  { %1175 = dma.vmem_to_hbm [thread:$0]  %s1170_s2, 128, %s2149_s20, [#allocation3], %s1688_s15, %s1688_s15, %s1689_s24  }
 0x781   :  { %1683 = dma.done.wait [#allocation3], 128  }
 0x782   :  { %1684 = vsyncadd [#allocation3], 4294967168 }
 0x783   :  { %1183 = vsyncpa [#allocation3], 1 }

// kernel: dimenetpp_forward.19
= control target key start
LH: loop header
LB: loop body
LE: loop exit
PB: predicated region body
PF: predicated region fallthrough
CT: control target
= control target key end

     0   :  { %v724_v0 = vmov 0.0   ;;  %vm725_vm0 = vmmov 0   ;;  %vm510_vm1 = vcmask 64512   ;;  %s925_s1 = inlined_call_operand.vmem [shape: bf16[128,128], index: 1, kind: input, shape index: {}]   ;;  %s926_s3 = inlined_call_operand.vmem [shape: bf16[128,128], index: 3, kind: input, shape index: {}]   ;;  %s927_s0 = inlined_call_operand.vmem [shape: bf16[16,128], index: 0, kind: input, shape index: {}]   ;;  %s928_s2 = inlined_call_operand.vmem [shape: f32[1,128], index: 2, kind: input, shape index: {}]   ;;  %s929_s5 = inlined_call_operand.vmem [shape: bf16[128,128], index: 5, kind: input, shape index: {}]   ;;  %s930_s4 = inlined_call_operand.vmem [shape: f32[1,128], index: 4, kind: input, shape index: {}]   ;;  %s931_s7 = inlined_call_operand.vmem [shape: bf16[128,8], index: 7, kind: input, shape index: {}]   ;;  %s932_s6 = inlined_call_operand.vmem [shape: f32[1,128], index: 6, kind: input, shape index: {}]   ;;  %s933_s8 = inlined_call_operand.vmem [shape: f32[16,8], index: 8, kind: output, shape index: {}]  }
   0x1   :  { %593 = vmatprep.subr.bf16.mxu0 %v724_v0  ;;  %v675_v1 = vld [vmem:[%s925_s1 + $0x38] sm:$0xff]   ;;  %609 = vmatprep.mubr.msk.bf16.mxu0 %vm725_vm0, %v724_v0  ;;  %v676_v2 = vld [vmem:[%s925_s1 + $0x30] sm:$0xff]   ;;  %v677_v3 = vld [vmem:[%s925_s1 + $0x28] sm:$0xff]  }
   0x2   :  { %613 = vmatprep.subr.bf16.mxu1 %v724_v0  ;;  %629 = vmatprep.mubr.msk.bf16.mxu1 %vm725_vm0, %v724_v0  ;;  %v684_v4 = vld [vmem:[%s926_s3 + $0x38] sm:$0xff]   ;;  %v678_v5 = vld [vmem:[%s925_s1 + $0x20] sm:$0xff]   ;;  %v685_v6 = vld [vmem:[%s926_s3 + $0x30] sm:$0xff]  }
   0x3   :  { %594 = vmatpush3.bf16.msra.mxu0 %v675_v1  ;;  %614 = vmatpush3.bf16.msra.mxu1 %v684_v4  ;;  %v679_v7 = vld [vmem:[%s925_s1 + $0x18] sm:$0xff]   ;;  %v686_v8 = vld [vmem:[%s926_s3 + $0x28] sm:$0xff]   ;;  %v680_v9 = vld [vmem:[%s925_s1 + $0x10] sm:$0xff]  }
   0x4   :  { %595 = vmatprep.subr.bf16.mxu0 %v724_v0  ;;  %615 = vmatprep.subr.bf16.mxu1 %v724_v0  ;;  %v687_v10 = vld [vmem:[%s926_s3 + $0x20] sm:$0xff]   ;;  %v681_v11 = vld [vmem:[%s925_s1 + $0x8] sm:$0xff]   ;;  %v688_v12 = vld [vmem:[%s926_s3 + $0x18] sm:$0xff]  }
   0x5   :  { %v682_v13 = vld [vmem:[%s925_s1] sm:$0xff]   ;;  %v689_v14 = vld [vmem:[%s926_s3 + $0x10] sm:$0xff]   ;;  %v690_v16 = vld [vmem:[%s926_s3 + $0x8] sm:$0xff]  }
   0x6   :  { %v683_v15 = vld [vmem:[%s927_s0] sm:$0xff]   ;;  %v692_v26 = vld [vmem:[%s929_s5 + $0x38] sm:$0xff]   ;;  %v693_v27 = vld [vmem:[%s929_s5 + $0x30] sm:$0xff]  }
   0x7   :  { %596 = vmatpush3.bf16.msra.mxu0 %v676_v2  ;;  %616 = vmatpush3.bf16.msra.mxu1 %v685_v6  ;;  %v691_v17 = vld [vmem:[%s926_s3] sm:$0xff]   ;;  %v694_v28 = vld [vmem:[%s929_s5 + $0x28] sm:$0xff]   ;;  %v696_v30 = vld [vmem:[%s929_s5 + $0x18] sm:$0xff]  }
   0x8   :  { %597 = vmatprep.subr.bf16.mxu0 %v724_v0  ;;  %617 = vmatprep.subr.bf16.mxu1 %v724_v0  ;;  %v517_v19 = vld [vmem:[%s928_s2] ss:$0 sm:$0xff]  ;;  %v697_v31 = vld [vmem:[%s929_s5 + $0x10] sm:$0xff]   ;;  %v698_v32 = vld [vmem:[%s929_s5 + $0x8] sm:$0xff]  }
   0x9   :  { %v695_v29 = vld [vmem:[%s929_s5 + $0x20] sm:$0xff]   ;;  %v700_v52 = vld [vmem:[%s931_s7 + $0x38] sm:$0xff]   ;;  %v701_v53 = vld [vmem:[%s931_s7 + $0x30] sm:$0xff]  }
   0xa   :  { %v699_v33 = vld [vmem:[%s929_s5] sm:$0xff]   ;;  %v702_v54 = vld [vmem:[%s931_s7 + $0x28] sm:$0xff]   ;;  %v704_v56 = vld [vmem:[%s931_s7 + $0x18] sm:$0xff]  }
   0xb   :  { %598 = vmatpush3.bf16.msra.mxu0 %v677_v3  ;;  %618 = vmatpush3.bf16.msra.mxu1 %v686_v8  ;;  %v527_v34 = vld [vmem:[%s930_s4] ss:$0 sm:$0xff]  ;;  %v705_v57 = vld [vmem:[%s931_s7 + $0x10] sm:$0xff]   ;;  %v706_v58 = vld [vmem:[%s931_s7 + $0x8] sm:$0xff]  }
   0xc   :  { %599 = vmatprep.subr.bf16.mxu0 %v724_v0  ;;  %619 = vmatprep.subr.bf16.mxu1 %v724_v0  ;;  %v703_v55 = vld [vmem:[%s931_s7 + $0x20] sm:$0xff]  }
   0xd   :  { %v707_v59 = vld [vmem:[%s931_s7] sm:$0xff]  }
   0xe   :  { %v538_v60 = vld [vmem:[%s932_s6] ss:$0 sm:$0xff] }
   0xf   :  { %600 = vmatpush3.bf16.msra.mxu0 %v678_v5  ;;  %620 = vmatpush3.bf16.msra.mxu1 %v687_v10 }
  0x10   :  { %601 = vmatprep.subr.bf16.mxu0 %v724_v0  ;;  %621 = vmatprep.subr.bf16.mxu1 %v724_v0 }
  0x13   :  { %602 = vmatpush3.bf16.msra.mxu0 %v679_v7  ;;  %622 = vmatpush3.bf16.msra.mxu1 %v688_v12 }
  0x14   :  { %603 = vmatprep.subr.bf16.mxu0 %v724_v0  ;;  %623 = vmatprep.subr.bf16.mxu1 %v724_v0 }
  0x17   :  { %604 = vmatpush3.bf16.msra.mxu0 %v680_v9  ;;  %624 = vmatpush3.bf16.msra.mxu1 %v689_v14 }
  0x18   :  { %605 = vmatprep.subr.bf16.mxu0 %v724_v0  ;;  %625 = vmatprep.subr.bf16.mxu1 %v724_v0 }
  0x1b   :  { %606 = vmatpush3.bf16.msra.mxu0 %v681_v11  ;;  %626 = vmatpush3.bf16.msra.mxu1 %v690_v16 }
  0x1c   :  { %607 = vmatprep.subr.bf16.mxu0 %v724_v0  ;;  %627 = vmatprep.subr.bf16.mxu1 %v724_v0 }
  0x1f   :  { %608 = vmatpush3.bf16.msra.mxu0 %v682_v13  ;;  %628 = vmatpush3.bf16.msra.mxu1 %v691_v17 }
  0x20   :  { %633 = vmatprep.subr.bf16.mxu0 %v724_v0  ;;  %653 = vmatprep.subr.bf16.mxu1 %v724_v0 }
  0x22   :  { %610 = vmatmul.mubr.bf16.vlgmr.msra.gmra.mxu0 %v683_v15 }
  0x23   :  { %649 = vmatprep.mubr.msk.bf16.mxu0 %vm725_vm0, %v724_v0  ;;  %634 = vmatpush3.bf16.msra.mxu0 %v692_v26 }
  0x24   :  { %635 = vmatprep.subr.bf16.mxu0 %v724_v0 }
  0x27   :  { %636 = vmatpush3.bf16.msra.mxu0 %v693_v27 }
  0x28   :  { %637 = vmatprep.subr.bf16.mxu0 %v724_v0 }
  0x2b   :  { %638 = vmatpush3.bf16.msra.mxu0 %v694_v28 }
  0x2c   :  { %639 = vmatprep.subr.bf16.mxu0 %v724_v0 }
  0x2f   :  { %640 = vmatpush3.bf16.msra.mxu0 %v695_v29 }
  0x30   :  { %641 = vmatprep.subr.bf16.mxu0 %v724_v0 }
  0x33   :  { %642 = vmatpush3.bf16.msra.mxu0 %v696_v30 }
  0x34   :  { %643 = vmatprep.subr.bf16.mxu0 %v724_v0 }
  0x37   :  { %644 = vmatpush3.bf16.msra.mxu0 %v697_v31 }
  0x38   :  { %645 = vmatprep.subr.bf16.mxu0 %v724_v0 }
  0x3b   :  { %646 = vmatpush3.bf16.msra.mxu0 %v698_v32 }
  0x3c   :  { %647 = vmatprep.subr.bf16.mxu0 %v724_v0 }
  0x3f   :  { %648 = vmatpush3.bf16.msra.mxu0 %v699_v33 }
  0xe2   :  { %v193_v18 = vpop.f32.mrf.mxu0 }
  0xe3   :  { %v194_v22 = vadd.f32 %v517_v19, %v193_v18 }
  0xe4   :  { %v611_v20 = vpop.f32.mrf.mxu0 }
  0xe6   :  { %v196_v21 = vpop.f32.mrf.mxu0 }
  0xe7   :  { %v197_v23 = vadd.f32 %v517_v19, %v196_v21 }
  0xe8   :  { %v612_v24 = vpop.f32.mrf.mxu0 }
  0xe9   :  { %v200_v25 = vpack.c.bf16 %v197_v23, %v194_v22 }
  0xeb   :  { %630 = vmatmul.mubr.bf16.vlgmr.msra.gmra.mxu1 %v200_v25 }
  0xec   :  { %669 = vmatprep.mubr.msk.bf16.mxu1 %vm725_vm0, %v724_v0  ;;  %654 = vmatpush3.bf16.msra.mxu1 %v700_v52 }
  0xed   :  { %655 = vmatprep.subr.bf16.mxu1 %v724_v0 }
  0xf0   :  { %656 = vmatpush3.bf16.msra.mxu1 %v701_v53 }
  0xf1   :  { %657 = vmatprep.subr.bf16.mxu1 %v724_v0 }
  0xf4   :  { %658 = vmatpush3.bf16.msra.mxu1 %v702_v54 }
  0xf5   :  { %659 = vmatprep.subr.bf16.mxu1 %v724_v0 }
  0xf8   :  { %660 = vmatpush3.bf16.msra.mxu1 %v703_v55 }
  0xf9   :  { %661 = vmatprep.subr.bf16.mxu1 %v724_v0 }
  0xfc   :  { %662 = vmatpush3.bf16.msra.mxu1 %v704_v56 }
  0xfd   :  { %663 = vmatprep.subr.bf16.mxu1 %v724_v0 }
 0x100   :  { %664 = vmatpush3.bf16.msra.mxu1 %v705_v57 }
 0x101   :  { %665 = vmatprep.subr.bf16.mxu1 %v724_v0 }
 0x104   :  { %666 = vmatpush3.bf16.msra.mxu1 %v706_v58 }
 0x105   :  { %667 = vmatprep.subr.bf16.mxu1 %v724_v0 }
 0x108   :  { %668 = vmatpush3.bf16.msra.mxu1 %v707_v59 }
 0x1ab   :  { %v289_v35 = vpop.f32.mrf.mxu1 }
 0x1ac   :  { %v290_v36 = vadd.f32 %v527_v34, %v289_v35 }
 0x1ad   :  { %v631_v37 = vpop.f32.mrf.mxu1 }
 0x1ae   :  { %v536_v38 = vmul.f32 -1.442695, %v290_v36 }
 0x1af   :  { %v292_v39 = vpop.f32.mrf.mxu1 }
 0x1b0   :  { %708 = vpow2.f32 %v536_v38  ;;  %v293_v40 = vadd.f32 %v527_v34, %v292_v39 }
 0x1b1   :  { %v632_v41 = vpop.f32.mrf.mxu1 }
 0x1b2   :  { %v537_v42 = vmul.f32 -1.442695, %v293_v40 }
 0x1b4   :  { %710 = vpow2.f32 %v537_v42 }
 0x1bd   :  { %v709_v43 = vpop.eup %708 }
 0x1be   :  { %v302_v44 = vadd.f32 1.0, %v709_v43 }
 0x1c0   :  { %712 = vrcp.f32 %v302_v44 }
 0x1c1   :  { %v711_v45 = vpop.eup %710 }
 0x1c2   :  { %v303_v46 = vadd.f32 1.0, %v711_v45 }
 0x1c4   :  { %714 = vrcp.f32 %v303_v46 }
 0x1cd   :  { %v713_v47 = vpop.eup %712 }
 0x1ce   :  { %v308_v49 = vmul.f32 %v713_v47, %v290_v36 }
 0x1d1   :  { %v715_v48 = vpop.eup %714 }
 0x1d2   :  { %v309_v50 = vmul.f32 %v715_v48, %v293_v40 }
 0x1d4   :  { %v310_v51 = vpack.c.bf16 %v309_v50, %v308_v49 }
 0x1d6   :  { %650 = vmatmul.mubr.bf16.vlgmr.msra.gmra.mxu0 %v310_v51 }
 0x296   :  { %v399_v61 = vpop.f32.mrf.mxu0 }
 0x297   :  { %v400_v62 = vadd.f32 %v538_v60, %v399_v61 }
 0x298   :  { %v651_v63 = vpop.f32.mrf.mxu0 }
 0x299   :  { %v547_v1 = vmul.f32 -1.442695, %v400_v62 }
 0x29a   :  { %v402_v2 = vpop.f32.mrf.mxu0 }
 0x29b   :  { %716 = vpow2.f32 %v547_v1  ;;  %v403_v3 = vadd.f32 %v538_v60, %v402_v2 }
 0x29c   :  { %v652_v4 = vpop.f32.mrf.mxu0 }
 0x29d   :  { %v548_v5 = vmul.f32 -1.442695, %v403_v3 }
 0x29f   :  { %718 = vpow2.f32 %v548_v5 }
 0x2a8   :  { %v717_v0 = vpop.eup %716 }
 0x2a9   :  { %v412_v6 = vadd.f32 1.0, %v717_v0 }
 0x2ab   :  { %720 = vrcp.f32 %v412_v6 }
 0x2ac   :  { %v719_v7 = vpop.eup %718 }
 0x2ad   :  { %v413_v8 = vadd.f32 1.0, %v719_v7 }
 0x2af   :  { %722 = vrcp.f32 %v413_v8 }
 0x2b8   :  { %v721_v9 = vpop.eup %720 }
 0x2b9   :  { %v418_v11 = vmul.f32 %v721_v9, %v400_v62 }
 0x2bc   :  { %v723_v10 = vpop.eup %722 }
 0x2bd   :  { %v419_v12 = vmul.f32 %v723_v10, %v403_v3 }
 0x2bf   :  { %v420_v13 = vpack.c.bf16 %v419_v12, %v418_v11 }
 0x2c1   :  { %670 = vmatmul.mubr.bf16.vlgmr.msra.gmra.mxu1 %v420_v13 }
 0x381   :  { %v503_v14 = vpop.f32.mrf.mxu1 }
 0x382   :  { %511 = vst.msk [vmem:[%s933_s8] sm:$0xff] %vm510_vm1, %v503_v14 }
 0x383   :  { %v671_v15 = vpop.f32.mrf.mxu1 }
 0x385   :  { %v506_v16 = vpop.f32.mrf.mxu1 }
 0x386   :  { %512 = vst.msk [vmem:[%s933_s8 + $0x8] sm:$0xff] %vm510_vm1, %v506_v16 }
 0x387   :  { %v672_v17 = vpop.f32.mrf.mxu1 }

</bundles_post_ra>
